<compile_context>
chip_gen: v7x
topology: tpu7x:2x2x1
jax: 0.10.0
libtpu: 0.0.40
codegen_flags: <defaults>
</compile_context>

<pallas_src>
import functools

import jax
import jax.numpy as jnp
from jax import lax
from jax.experimental import pallas as pl
from jax.experimental.pallas import tpu as pltpu

_LANE = 128
_BF16 = jnp.bfloat16
_F32 = jnp.float32


def _round_up(v, m):
    return (v + m - 1) // m * m


# --------------------------------------------------------------------------- #
# Kernel
# --------------------------------------------------------------------------- #
def _basic_block_kernel(stride, B, H, W, H1, W1, Cin_p, Cout_p, has_proj, *refs):
    """One batch-tile per grid step.

    conv1: 9 accumulating (M, Cin_p) x (Cin_p, Cout_p) bf16 matmuls whose
           operands come from 3 column-shifted halo-padded staging buffers
           (stride 1) or from the wrapper's phase-split input (stride 2).
           The 1x1 projection shortcut is fused into the centre-tap matmul.
    conv2: same 9-matmul structure over bf16 staging buffers of conv1 output.
    """
    it = iter(refs)
    if stride == 1:
        x_ref = next(it)
        ph_refs = None
    else:
        ph_refs = (next(it), next(it), next(it), next(it))
        x_ref = None
    w1_ref = next(it)
    wcs_ref = next(it) if has_proj else None
    b1_ref = next(it)
    w2_ref = next(it)
    b2_ref = next(it)
    bs_ref = next(it) if has_proj else None
    o_ref = next(it)
    if stride == 1:
        c_bufs = (next(it), next(it), next(it))
    m_bufs = (next(it), next(it), next(it))
    sc_ref = next(it) if has_proj else None

    M = B * H1 * W1
    taps = [(kh, kw) for kh in range(3) for kw in range(3)]

    # ---------------- conv1 operand staging ---------------------------------
    if stride == 1:
        xb = x_ref[...]                                    # (B, H, W, Cin_p) bf16
        zrow = jnp.zeros((B, 1, W, Cin_p), _BF16)
        zcol = jnp.zeros((B, H + 2, 1, Cin_p), _BF16)
        c0, c1, c2 = c_bufs
        for c in c_bufs:                                   # zero halo rows (per step)
            c[:, 0:1, :, :] = zrow
            c[:, H + 1:H + 2, :, :] = zrow
        c0[:, :, 0:1, :] = zcol                            # left halo column (kw=0)
        c2[:, :, W - 1:W, :] = zcol                        # right halo column (kw=2)
        c1[:, 1:H + 1, :, :] = xb
        if W > 1:
            c0[:, 1:H + 1, 1:W, :] = xb[:, :, 0:W - 1, :]
            c2[:, 1:H + 1, 0:W - 1, :] = xb[:, :, 1:W, :]

        def conv1_tap(kh, kw):
            # contiguous row window -> clean (lane-dense) load, no strided gather
            return c_bufs[kw][:, kh:kh + H1, :, :].reshape(M, Cin_p)
    else:
        def conv1_tap(kh, kw):
            p = (kh % 2) * 2 + (kw % 2)                    # phase of padded coords
            return ph_refs[p][:, kh // 2:kh // 2 + H1,
                              kw // 2:kw // 2 + W1, :].reshape(M, Cin_p)

    # ---------------- conv1 (+ fused 1x1 projection on the centre tap) ------
    acc1 = None
    for t, (kh, kw) in enumerate(taps):
        op = conv1_tap(kh, kw)                             # (M, Cin_p) bf16
        if has_proj and t == 4:
            d = jnp.dot(op, wcs_ref[...], preferred_element_type=_F32)
            acc1 = acc1 + d[:, :Cout_p]
            sc_ref[...] = d[:, Cout_p:] + bs_ref[...]      # folded-BN shortcut
        else:
            w = w1_ref[t * Cin_p:(t + 1) * Cin_p, :]
            d = jnp.dot(op, w, preferred_element_type=_F32)
            acc1 = d if acc1 is None else acc1 + d
    h = jnp.maximum(acc1 + b1_ref[...], 0.0)               # bn1 (folded) + relu
    h4 = h.astype(_BF16).reshape(B, H1, W1, Cout_p)        # single cast to bf16

    # ---------------- conv2 operand staging (always stride 1) ---------------
    zrow2 = jnp.zeros((B, 1, W1, Cout_p), _BF16)
    zcol2 = jnp.zeros((B, H1 + 2, 1, Cout_p), _BF16)
    m0, m1, m2 = m_bufs
    for m in m_bufs:
        m[:, 0:1, :, :] = zrow2
        m[:, H1 + 1:H1 + 2, :, :] = zrow2
    m0[:, :, 0:1, :] = zcol2
    m2[:, :, W1 - 1:W1, :] = zcol2
    m1[:, 1:H1 + 1, :, :] = h4
    if W1 > 1:
        m0[:, 1:H1 + 1, 1:W1, :] = h4[:, :, 0:W1 - 1, :]
        m2[:, 1:H1 + 1, 0:W1 - 1, :] = h4[:, :, 1:W1, :]

    # ---------------- conv2 ---------------------------------------------------
    acc2 = None
    for t, (kh, kw) in enumerate(taps):
        op = m_bufs[kw][:, kh:kh + H1, :, :].reshape(M, Cout_p)
        w = w2_ref[t * Cout_p:(t + 1) * Cout_p, :]
        d = jnp.dot(op, w, preferred_element_type=_F32)
        acc2 = d if acc2 is None else acc2 + d

    # ---------------- bn2 + residual + relu ----------------------------------
    if has_proj:
        sc = sc_ref[...]
    else:
        sc = xb.astype(_F32).reshape(M, Cin_p)             # identity (Cin==Cout, s=1)
    out = jnp.maximum(acc2 + b2_ref[...] + sc, 0.0)
    o_ref[...] = out.reshape(B, H1, W1, Cout_p)            # lane-dense f32 store


# --------------------------------------------------------------------------- #
# Wrapper helpers
# --------------------------------------------------------------------------- #
def _fold_bn(gamma, beta, mean, var, cout_p, eps=1e-5):
    scale = gamma / jnp.sqrt(var + eps)                    # (Cout,), folded into W
    bias = beta - mean * scale                             # (Cout,), applied in-kernel
    bias = jnp.pad(bias, (0, cout_p - bias.shape[0]))
    return scale, bias.reshape(1, -1).astype(_F32)


def _prep_conv3x3(w_oihw, scale, cin_p, cout_p):
    """OIHW (cout,cin,3,3) * scale[cout] -> (9*cin_p, cout_p) bf16, rows (kh,kw,ci)."""
    cout, cin = w_oihw.shape[0], w_oihw.shape[1]
    w = jnp.transpose(w_oihw, (2, 3, 1, 0)) * scale[None, None, None, :]
    w = jnp.pad(w, ((0, 0), (0, 0), (0, cin_p - cin), (0, cout_p - cout)))
    return w.reshape(9 * cin_p, cout_p).astype(_BF16)


def _scratch_bytes(B, H, W, H1, W1, Cin_p, Cout_p, stride, has_proj):
    s = 3 * B * (H1 + 2) * W1 * Cout_p * 2                 # conv2 column buffers
    if stride == 1:
        s += 3 * B * (H + 2) * W * Cin_p * 2               # conv1 column buffers
    if has_proj:
        s += B * H1 * W1 * Cout_p * 4                      # shortcut scratch
    return s


def _io_block_bytes(B, H, W, H1, W1, Hh, Wh, Cin_p, Cout_p, stride):
    in_b = B * H * W * Cin_p * 2 if stride == 1 else 4 * B * Hh * Wh * Cin_p * 2
    out_b = B * H1 * W1 * Cout_p * 4
    return in_b, out_b


def _pick_batch_tile(N, H, W, H1, W1, Hh, Wh, Cin_p, Cout_p, stride, has_proj):
    """Pack images per step until the matmul M dim reaches 256 (VMEM permitting)."""
    bt = 1
    for cand in range(1, N + 1):
        if N % cand:
            continue
        in_b, out_b = _io_block_bytes(cand, H, W, H1, W1, Hh, Wh, Cin_p, Cout_p, stride)
        per_step = _scratch_bytes(cand, H, W, H1, W1, Cin_p, Cout_p, stride, has_proj) \
            + 2 * (in_b + out_b)
        if per_step > 8 * 2 ** 20:
            break
        bt = cand
        if cand * H1 * W1 >= 256:
            break
    return bt


def _vmem_limit(B, H, W, H1, W1, Hh, Wh, Cin_p, Cout_p, stride, has_proj):
    in_b, out_b = _io_block_bytes(B, H, W, H1, W1, Hh, Wh, Cin_p, Cout_p, stride)
    weights = (9 * Cin_p + 9 * Cout_p) * Cout_p * 2 + 2 * Cout_p * 4
    if has_proj:
        weights += Cin_p * 2 * Cout_p * 2 + Cout_p * 4
    need = 2 * (in_b + out_b + weights) \
        + _scratch_bytes(B, H, W, H1, W1, Cin_p, Cout_p, stride, has_proj)
    return int(min(100 * 2 ** 20, max(16 * 2 ** 20, 2 * need)))


# --------------------------------------------------------------------------- #
# Forward passes
# --------------------------------------------------------------------------- #
def basic_block_forward_nhwc(x, params, stride=1):
    """Chainable entry point.

    x: (N, H, W, Cin_p) bf16, channels zero-padded to a multiple of 128.
    Returns (N, H1, W1, Cout_p) f32 NHWC with padded channels.
    """
    x = x.astype(_BF16)
    N, H, W, Cin_p = x.shape
    Cout, Cin = params["w1"].shape[0], params["w1"].shape[1]
    Cout_p = _round_up(Cout, _LANE)
    H1 = (H - 1) // stride + 1
    W1 = (W - 1) // stride + 1
    has_proj = (stride != 1) or (Cin != Cout)
    if not has_proj:
        assert Cin == Cout and stride == 1

    # Fold BN scales into bf16 weights; biases stay f32 for the epilogues.
    s1, b1 = _fold_bn(params["bn1_g"], params["bn1_b"],
                      params["bn1_m"], params["bn1_v"], Cout_p)
    s2, b2 = _fold_bn(params["bn2_g"], params["bn2_b"],
                      params["bn2_m"], params["bn2_v"], Cout_p)
    w1 = _prep_conv3x3(params["w1"], s1, Cin_p, Cout_p)
    w2 = _prep_conv3x3(params["w2"], s2, Cout_p, Cout_p)

    wcs = bs = None
    if has_proj:
        ss, bs = _fold_bn(params["bns_g"], params["bns_b"],
                          params["bns_m"], params["bns_v"], Cout_p)
        wc = jnp.transpose(params["w1"][:, :, 1, 1], (1, 0)) * s1[None, :]
        ws = jnp.transpose(params["ws"][:, :, 0, 0], (1, 0)) * ss[None, :]
        wc = jnp.pad(wc, ((0, Cin_p - Cin), (0, Cout_p - Cout)))
        ws = jnp.pad(ws, ((0, Cin_p - Cin), (0, Cout_p - Cout)))
        # centre-tap conv1 weight | 1x1 shortcut weight  -> fused matmul columns
        wcs = jnp.concatenate([wc, ws], axis=1).astype(_BF16)

    # stride 2: one space-to-depth pass (2x2 phase split of the padded input)
    # so every kernel-side tap read is a contiguous unit-stride slice.
    Hh = Wh = 0
    if stride == 1:
        x_in = [x]
    else:
        Hp2, Wp2 = _round_up(H + 2, 2), _round_up(W + 2, 2)
        Hh, Wh = Hp2 // 2, Wp2 // 2
        xp = jnp.pad(x, ((0, 0), (1, Hp2 - H - 1), (1, Wp2 - W - 1), (0, 0)))
        xph = xp.reshape(N, Hh, 2, Wh, 2, Cin_p).transpose(0, 2, 4, 1, 3, 5)
        x_in = [xph[:, 0, 0], xph[:, 0, 1], xph[:, 1, 0], xph[:, 1, 1]]

    B = _pick_batch_tile(N, H, W, H1, W1, Hh, Wh, Cin_p, Cout_p, stride, has_proj)

    full2d = lambda n: (0, 0)
    if stride == 1:
        in_specs = [pl.BlockSpec((B, H, W, Cin_p), lambda n: (n, 0, 0, 0))]
    else:
        in_specs = [pl.BlockSpec((B, Hh, Wh, Cin_p), lambda n: (n, 0, 0, 0))
                    for _ in range(4)]
    args = list(x_in) + [w1]
    in_specs += [pl.BlockSpec((9 * Cin_p, Cout_p), full2d)]
    if has_proj:
        args += [wcs]
        in_specs += [pl.BlockSpec((Cin_p, 2 * Cout_p), full2d)]
    args += [b1, w2, b2]
    in_specs += [pl.BlockSpec((1, Cout_p), full2d),
                 pl.BlockSpec((9 * Cout_p, Cout_p), full2d),
                 pl.BlockSpec((1, Cout_p), full2d)]
    if has_proj:
        args += [bs]
        in_specs += [pl.BlockSpec((1, Cout_p), full2d)]

    scratch = []
    if stride == 1:
        scratch += [pltpu.VMEM((B, H + 2, W, Cin_p), _BF16) for _ in range(3)]
    scratch += [pltpu.VMEM((B, H1 + 2, W1, Cout_p), _BF16) for _ in range(3)]
    if has_proj:
        scratch += [pltpu.VMEM((B * H1 * W1, Cout_p), _F32)]

    kernel = functools.partial(_basic_block_kernel, stride, B, H, W, H1, W1,
                               Cin_p, Cout_p, has_proj)

    out = pl.pallas_call(
        kernel,
        out_shape=jax.ShapeDtypeStruct((N, H1, W1, Cout_p), _F32),
        grid=(N // B,),
        in_specs=in_specs,
        out_specs=pl.BlockSpec((B, H1, W1, Cout_p), lambda n: (n, 0, 0, 0)),
        scratch_shapes=scratch,
        compiler_params=pltpu.CompilerParams(
            dimension_semantics=("parallel",),          # batch tiles independent
            vmem_limit_bytes=_vmem_limit(B, H, W, H1, W1, Hh, Wh,
                                         Cin_p, Cout_p, stride, has_proj),
        ),
    )(*args)
    return out


def basic_block_forward(x_nchw, params, stride=1):
    """BasicBlock forward. x_nchw: (N, Cin, H, W) f32 -> (N, Cout, H1, W1) f32."""
    N, Cin, H, W = x_nchw.shape
    Cout = params["w1"].shape[0]
    Cin_p = _round_up(Cin, _LANE)
    x = jnp.transpose(x_nchw, (0, 2, 3, 1))
    x = jnp.pad(x, ((0, 0), (0, 0), (0, 0), (0, Cin_p - Cin))).astype(_BF16)
    out = basic_block_forward_nhwc(x, params, stride=stride)
    out = out[:, :, :, :Cout]
    return jnp.transpose(out, (0, 3, 1, 2))


# --------------------------------------------------------------------------- #
# Reference + test harness
# --------------------------------------------------------------------------- #
def _reference_forward(x, params, stride=1):
    """Plain-JAX (XLA conv) f32 reference, NCHW, for correctness check."""
    dn = ("NCHW", "OIHW", "NCHW")

    def bn(y, g, b, m, v, eps=1e-5):
        s = g / jnp.sqrt(v + eps)
        return y * s[None, :, None, None] + (b - m * s)[None, :, None, None]

    y = lax.conv_general_dilated(x, params["w1"], (stride, stride),
                                 ((1, 1), (1, 1)), dimension_numbers=dn)
    y = jax.nn.relu(bn(y, params["bn1_g"], params["bn1_b"],
                       params["bn1_m"], params["bn1_v"]))
    y = lax.conv_general_dilated(y, params["w2"], (1, 1),
                                 ((1, 1), (1, 1)), dimension_numbers=dn)
    y = bn(y, params["bn2_g"], params["bn2_b"],
           params["bn2_m"], params["bn2_v"])
    Cin, Cout = x.shape[1], params["w1"].shape[0]
    if stride != 1 or Cin != Cout:
        sc = lax.conv_general_dilated(x, params["ws"], (stride, stride),
                                      ((0, 0), (0, 0)), dimension_numbers=dn)
        sc = bn(sc, params["bns_g"], params["bns_b"],
                params["bns_m"], params["bns_v"])
    else:
        sc = x
    return jax.nn.relu(y + sc)


def make_params(key, in_planes, planes, stride=1):
    k1, k2, k3 = jax.random.split(key, 3)
    p = {
        "w1": 0.1 * jax.random.normal(k1, (planes, in_planes, 3, 3), jnp.float32),
        "bn1_g": jnp.ones((planes,), jnp.float32),
        "bn1_b": jnp.zeros((planes,), jnp.float32),
        "bn1_m": jnp.zeros((planes,), jnp.float32),
        "bn1_v": jnp.ones((planes,), jnp.float32),
        "w2": 0.1 * jax.random.normal(k2, (planes, planes, 3, 3), jnp.float32),
        "bn2_g": jnp.ones((planes,), jnp.float32),
        "bn2_b": jnp.zeros((planes,), jnp.float32),
        "bn2_m": jnp.zeros((planes,), jnp.float32),
        "bn2_v": jnp.ones((planes,), jnp.float32),
    }
    if stride != 1 or in_planes != planes:
        p["ws"] = 0.1 * jax.random.normal(k3, (planes, in_planes, 1, 1), jnp.float32)
        p["bns_g"] = jnp.ones((planes,), jnp.float32)
        p["bns_b"] = jnp.zeros((planes,), jnp.float32)
        p["bns_m"] = jnp.zeros((planes,), jnp.float32)
        p["bns_v"] = jnp.ones((planes,), jnp.float32)
    return p


def _check(case_key, N, Cin, Cout, H, W, stride):
    kx, kp = jax.random.split(case_key)
    x = jax.random.normal(kx, (N, Cin, H, W), jnp.float32)     # NCHW
    params = make_params(kp, Cin, Cout, stride)
    out = jax.block_until_ready(basic_block_forward(x, params, stride=stride))
    ref = jax.block_until_ready(_reference_forward(x, params, stride=stride))
    assert out.shape == ref.shape, (out.shape, ref.shape)
    # bf16 matmuls / bf16-staged residual vs f32 XLA reference -> loose tolerance.
    assert jnp.allclose(out, ref, rtol=3e-2, atol=3e-2), float(
        jnp.max(jnp.abs(out - ref)))


if __name__ == "__main__":
    key = jax.random.PRNGKey(0)
    # 1) projection shortcut (Cin != Cout), stride 1 (fused-centre-tap path).
    _check(jax.random.fold_in(key, 0), N=2, Cin=4, Cout=8, H=16, W=16, stride=1)
    # 2) identity shortcut (Cin == Cout), stride 1 (specialized, no projection).
    _check(jax.random.fold_in(key, 1), N=2, Cin=8, Cout=8, H=16, W=16, stride=1)
    # 3) projection shortcut with stride 2 (wrapper space-to-depth path).
    _check(jax.random.fold_in(key, 2), N=2, Cin=4, Cout=8, H=16, W=16, stride=2)
    # 4) small feature map -> batch packing (B_tile = 4) to fill the MXU M dim.
    _check(jax.random.fold_in(key, 3), N=4, Cin=8, Cout=8, H=8, W=8, stride=1)
    print("KERNEL_OK")
</pallas_src>

<mosaic_0001>
module attributes {stable_mosaic.version = 11 : i64} {
  func.func @_basic_block_kernel(%arg0: i32, %arg1: memref<1x16x16x128xbf16, #tpu.memory_space<vmem>>, %arg2: memref<1152x128xbf16, #tpu.memory_space<vmem>>, %arg3: memref<128x256xbf16, #tpu.memory_space<vmem>>, %arg4: memref<1x128xf32, #tpu.memory_space<vmem>>, %arg5: memref<1152x128xbf16, #tpu.memory_space<vmem>>, %arg6: memref<1x128xf32, #tpu.memory_space<vmem>>, %arg7: memref<1x128xf32, #tpu.memory_space<vmem>>, %arg8: memref<1x16x16x128xf32, #tpu.memory_space<vmem>>, %arg9: memref<1x18x16x128xbf16, #tpu.memory_space<vmem>>, %arg10: memref<1x18x16x128xbf16, #tpu.memory_space<vmem>>, %arg11: memref<1x18x16x128xbf16, #tpu.memory_space<vmem>>, %arg12: memref<1x18x16x128xbf16, #tpu.memory_space<vmem>>, %arg13: memref<1x18x16x128xbf16, #tpu.memory_space<vmem>>, %arg14: memref<1x18x16x128xbf16, #tpu.memory_space<vmem>>, %arg15: memref<256x128xf32, #tpu.memory_space<vmem>>) attributes {dimension_semantics = [#tpu.dimension_semantics<parallel>], iteration_bounds = array<i64: 2>, scalar_prefetch = 0 : i64, scratch_operands = 7 : i64, tpu.core_type = #tpu.core_type<tc>, window_params = [{transform_indices = @transform_0, window_bounds = array<i64: 1, 16, 16, 128>}, {pipeline_mode = #tpu.pipeline_mode<synchronous>, transform_indices = @transform_1, window_bounds = array<i64: 1152, 128>}, {pipeline_mode = #tpu.pipeline_mode<synchronous>, transform_indices = @transform_2, window_bounds = array<i64: 128, 256>}, {pipeline_mode = #tpu.pipeline_mode<synchronous>, transform_indices = @transform_3, window_bounds = array<i64: 1, 128>}, {pipeline_mode = #tpu.pipeline_mode<synchronous>, transform_indices = @transform_4, window_bounds = array<i64: 1152, 128>}, {pipeline_mode = #tpu.pipeline_mode<synchronous>, transform_indices = @transform_5, window_bounds = array<i64: 1, 128>}, {pipeline_mode = #tpu.pipeline_mode<synchronous>, transform_indices = @transform_6, window_bounds = array<i64: 1, 128>}, {transform_indices = @transform_7, window_bounds = array<i64: 1, 16, 16, 128>}]} {
    %c0 = arith.constant 0 : index
    %c0_0 = arith.constant 0 : index
    %c0_1 = arith.constant 0 : index
    %c0_2 = arith.constant 0 : index
    %0 = vector.load %arg1[%c0, %c0_0, %c0_1, %c0_2] : memref<1x16x16x128xbf16, #tpu.memory_space<vmem>>, vector<1x16x16x128xbf16>
    %cst = arith.constant 0.000000e+00 : bf16
    %1 = vector.broadcast %cst : bf16 to vector<1x1x16x128xbf16>
    %cst_3 = arith.constant 0.000000e+00 : bf16
    %2 = vector.broadcast %cst_3 : bf16 to vector<1x18x1x128xbf16>
    %c0_4 = arith.constant 0 : index
    %c0_5 = arith.constant 0 : index
    %c0_6 = arith.constant 0 : index
    %c0_7 = arith.constant 0 : index
    %3 = vector.load %arg9[%c0_4, %c0_5, %c0_6, %c0_7] : memref<1x18x16x128xbf16, #tpu.memory_space<vmem>>, vector<1x1x16x128xbf16>
    tpu.vector_store %arg9[%c0_4, %c0_5, %c0_6, %c0_7], %1 {strides = array<i32>} : memref<1x18x16x128xbf16, #tpu.memory_space<vmem>>, vector<1x1x16x128xbf16>,
    %c0_8 = arith.constant 0 : index
    %c17 = arith.constant 17 : index
    %c0_9 = arith.constant 0 : index
    %c0_10 = arith.constant 0 : index
    %4 = vector.load %arg9[%c0_8, %c17, %c0_9, %c0_10] : memref<1x18x16x128xbf16, #tpu.memory_space<vmem>>, vector<1x1x16x128xbf16>
    tpu.vector_store %arg9[%c0_8, %c17, %c0_9, %c0_10], %1 {strides = array<i32>} : memref<1x18x16x128xbf16, #tpu.memory_space<vmem>>, vector<1x1x16x128xbf16>,
    %c0_11 = arith.constant 0 : index
    %c0_12 = arith.constant 0 : index
    %c0_13 = arith.constant 0 : index
    %c0_14 = arith.constant 0 : index
    %5 = vector.load %arg10[%c0_11, %c0_12, %c0_13, %c0_14] : memref<1x18x16x128xbf16, #tpu.memory_space<vmem>>, vector<1x1x16x128xbf16>
    tpu.vector_store %arg10[%c0_11, %c0_12, %c0_13, %c0_14], %1 {strides = array<i32>} : memref<1x18x16x128xbf16, #tpu.memory_space<vmem>>, vector<1x1x16x128xbf16>,
    %c0_15 = arith.constant 0 : index
    %c17_16 = arith.constant 17 : index
    %c0_17 = arith.constant 0 : index
    %c0_18 = arith.constant 0 : index
    %6 = vector.load %arg10[%c0_15, %c17_16, %c0_17, %c0_18] : memref<1x18x16x128xbf16, #tpu.memory_space<vmem>>, vector<1x1x16x128xbf16>
    tpu.vector_store %arg10[%c0_15, %c17_16, %c0_17, %c0_18], %1 {strides = array<i32>} : memref<1x18x16x128xbf16, #tpu.memory_space<vmem>>, vector<1x1x16x128xbf16>,
    %c0_19 = arith.constant 0 : index
    %c0_20 = arith.constant 0 : index
    %c0_21 = arith.constant 0 : index
    %c0_22 = arith.constant 0 : index
    %7 = vector.load %arg11[%c0_19, %c0_20, %c0_21, %c0_22] : memref<1x18x16x128xbf16, #tpu.memory_space<vmem>>, vector<1x1x16x128xbf16>
    tpu.vector_store %arg11[%c0_19, %c0_20, %c0_21, %c0_22], %1 {strides = array<i32>} : memref<1x18x16x128xbf16, #tpu.memory_space<vmem>>, vector<1x1x16x128xbf16>,
    %c0_23 = arith.constant 0 : index
    %c17_24 = arith.constant 17 : index
    %c0_25 = arith.constant 0 : index
    %c0_26 = arith.constant 0 : index
    %8 = vector.load %arg11[%c0_23, %c17_24, %c0_25, %c0_26] : memref<1x18x16x128xbf16, #tpu.memory_space<vmem>>, vector<1x1x16x128xbf16>
    tpu.vector_store %arg11[%c0_23, %c17_24, %c0_25, %c0_26], %1 {strides = array<i32>} : memref<1x18x16x128xbf16, #tpu.memory_space<vmem>>, vector<1x1x16x128xbf16>,
    %c0_27 = arith.constant 0 : index
    %c0_28 = arith.constant 0 : index
    %c0_29 = arith.constant 0 : index
    %c0_30 = arith.constant 0 : index
    %9 = vector.load %arg9[%c0_27, %c0_28, %c0_29, %c0_30] : memref<1x18x16x128xbf16, #tpu.memory_space<vmem>>, vector<1x18x1x128xbf16>
    tpu.vector_store %arg9[%c0_27, %c0_28, %c0_29, %c0_30], %2 {strides = array<i32>} : memref<1x18x16x128xbf16, #tpu.memory_space<vmem>>, vector<1x18x1x128xbf16>,
    %c0_31 = arith.constant 0 : index
    %c0_32 = arith.constant 0 : index
    %c15 = arith.constant 15 : index
    %c0_33 = arith.constant 0 : index
    %10 = vector.load %arg11[%c0_31, %c0_32, %c15, %c0_33] : memref<1x18x16x128xbf16, #tpu.memory_space<vmem>>, vector<1x18x1x128xbf16>
    tpu.vector_store %arg11[%c0_31, %c0_32, %c15, %c0_33], %2 {strides = array<i32>} : memref<1x18x16x128xbf16, #tpu.memory_space<vmem>>, vector<1x18x1x128xbf16>,
    %c0_34 = arith.constant 0 : index
    %c1 = arith.constant 1 : index
    %c0_35 = arith.constant 0 : index
    %c0_36 = arith.constant 0 : index
    %11 = vector.load %arg10[%c0_34, %c1, %c0_35, %c0_36] : memref<1x18x16x128xbf16, #tpu.memory_space<vmem>>, vector<1x16x16x128xbf16>
    tpu.vector_store %arg10[%c0_34, %c1, %c0_35, %c0_36], %0 {strides = array<i32>} : memref<1x18x16x128xbf16, #tpu.memory_space<vmem>>, vector<1x16x16x128xbf16>,
    %12 = vector.extract_strided_slice %0 {offsets = [0, 0, 0, 0], sizes = [1, 16, 15, 128], strides = [1, 1, 1, 1]} : vector<1x16x16x128xbf16> to vector<1x16x15x128xbf16>
    %c0_37 = arith.constant 0 : index
    %c1_38 = arith.constant 1 : index
    %c1_39 = arith.constant 1 : index
    %c0_40 = arith.constant 0 : index
    %13 = vector.load %arg9[%c0_37, %c1_38, %c1_39, %c0_40] : memref<1x18x16x128xbf16, #tpu.memory_space<vmem>>, vector<1x16x15x128xbf16>
    tpu.vector_store %arg9[%c0_37, %c1_38, %c1_39, %c0_40], %12 {strides = array<i32>} : memref<1x18x16x128xbf16, #tpu.memory_space<vmem>>, vector<1x16x15x128xbf16>,
    %14 = vector.extract_strided_slice %0 {offsets = [0, 0, 1, 0], sizes = [1, 16, 15, 128], strides = [1, 1, 1, 1]} : vector<1x16x16x128xbf16> to vector<1x16x15x128xbf16>
    %c0_41 = arith.constant 0 : index
    %c1_42 = arith.constant 1 : index
    %c0_43 = arith.constant 0 : index
    %c0_44 = arith.constant 0 : index
    %15 = vector.load %arg11[%c0_41, %c1_42, %c0_43, %c0_44] : memref<1x18x16x128xbf16, #tpu.memory_space<vmem>>, vector<1x16x15x128xbf16>
    tpu.vector_store %arg11[%c0_41, %c1_42, %c0_43, %c0_44], %14 {strides = array<i32>} : memref<1x18x16x128xbf16, #tpu.memory_space<vmem>>, vector<1x16x15x128xbf16>,
    %c0_45 = arith.constant 0 : index
    %c0_46 = arith.constant 0 : index
    %c0_47 = arith.constant 0 : index
    %c0_48 = arith.constant 0 : index
    %16 = vector.load %arg9[%c0_45, %c0_46, %c0_47, %c0_48] : memref<1x18x16x128xbf16, #tpu.memory_space<vmem>>, vector<1x16x16x128xbf16>
    %17 = vector.shape_cast %16 : vector<1x16x16x128xbf16> to vector<256x128xbf16>
    %c0_49 = arith.constant 0 : index
    %c0_50 = arith.constant 0 : index
    %18 = vector.load %arg2[%c0_49, %c0_50] : memref<1152x128xbf16, #tpu.memory_space<vmem>>, vector<128x128xbf16>
    %cst_51 = arith.constant dense<0.000000e+00> : vector<256x128xf32>
    %19 = tpu.matmul %17, %18, %cst_51 {dimension_numbers = #tpu.dot_dimension_numbers<[1], [0], [0], [1], [0, 0, 1, 1], [], []>} : vector<256x128xbf16>, vector<128x128xbf16>, vector<256x128xf32> -> vector<256x128xf32>
    %c0_52 = arith.constant 0 : index
    %c0_53 = arith.constant 0 : index
    %c0_54 = arith.constant 0 : index
    %c0_55 = arith.constant 0 : index
    %20 = vector.load %arg10[%c0_52, %c0_53, %c0_54, %c0_55] : memref<1x18x16x128xbf16, #tpu.memory_space<vmem>>, vector<1x16x16x128xbf16>
    %21 = vector.shape_cast %20 : vector<1x16x16x128xbf16> to vector<256x128xbf16>
    %c128 = arith.constant 128 : index
    %c0_56 = arith.constant 0 : index
    %22 = vector.load %arg2[%c128, %c0_56] : memref<1152x128xbf16, #tpu.memory_space<vmem>>, vector<128x128xbf16>
    %cst_57 = arith.constant dense<0.000000e+00> : vector<256x128xf32>
    %23 = tpu.matmul %21, %22, %cst_57 {dimension_numbers = #tpu.dot_dimension_numbers<[1], [0], [0], [1], [0, 0, 1, 1], [], []>} : vector<256x128xbf16>, vector<128x128xbf16>, vector<256x128xf32> -> vector<256x128xf32>
    %24 = arith.addf %19, %23 : vector<256x128xf32>
    %c0_58 = arith.constant 0 : index
    %c0_59 = arith.constant 0 : index
    %c0_60 = arith.constant 0 : index
    %c0_61 = arith.constant 0 : index
    %25 = vector.load %arg11[%c0_58, %c0_59, %c0_60, %c0_61] : memref<1x18x16x128xbf16, #tpu.memory_space<vmem>>, vector<1x16x16x128xbf16>
    %26 = vector.shape_cast %25 : vector<1x16x16x128xbf16> to vector<256x128xbf16>
    %c256 = arith.constant 256 : index
    %c0_62 = arith.constant 0 : index
    %27 = vector.load %arg2[%c256, %c0_62] : memref<1152x128xbf16, #tpu.memory_space<vmem>>, vector<128x128xbf16>
    %cst_63 = arith.constant dense<0.000000e+00> : vector<256x128xf32>
    %28 = tpu.matmul %26, %27, %cst_63 {dimension_numbers = #tpu.dot_dimension_numbers<[1], [0], [0], [1], [0, 0, 1, 1], [], []>} : vector<256x128xbf16>, vector<128x128xbf16>, vector<256x128xf32> -> vector<256x128xf32>
    %29 = arith.addf %24, %28 : vector<256x128xf32>
    %c0_64 = arith.constant 0 : index
    %c1_65 = arith.constant 1 : index
    %c0_66 = arith.constant 0 : index
    %c0_67 = arith.constant 0 : index
    %30 = vector.load %arg9[%c0_64, %c1_65, %c0_66, %c0_67] : memref<1x18x16x128xbf16, #tpu.memory_space<vmem>>, vector<1x16x16x128xbf16>
    %31 = vector.shape_cast %30 : vector<1x16x16x128xbf16> to vector<256x128xbf16>
    %c384 = arith.constant 384 : index
    %c0_68 = arith.constant 0 : index
    %32 = vector.load %arg2[%c384, %c0_68] : memref<1152x128xbf16, #tpu.memory_space<vmem>>, vector<128x128xbf16>
    %cst_69 = arith.constant dense<0.000000e+00> : vector<256x128xf32>
    %33 = tpu.matmul %31, %32, %cst_69 {dimension_numbers = #tpu.dot_dimension_numbers<[1], [0], [0], [1], [0, 0, 1, 1], [], []>} : vector<256x128xbf16>, vector<128x128xbf16>, vector<256x128xf32> -> vector<256x128xf32>
    %34 = arith.addf %29, %33 : vector<256x128xf32>
    %c0_70 = arith.constant 0 : index
    %c1_71 = arith.constant 1 : index
    %c0_72 = arith.constant 0 : index
    %c0_73 = arith.constant 0 : index
    %35 = vector.load %arg10[%c0_70, %c1_71, %c0_72, %c0_73] : memref<1x18x16x128xbf16, #tpu.memory_space<vmem>>, vector<1x16x16x128xbf16>
    %36 = vector.shape_cast %35 : vector<1x16x16x128xbf16> to vector<256x128xbf16>
    %c0_74 = arith.constant 0 : index
    %c0_75 = arith.constant 0 : index
    %37 = vector.load %arg3[%c0_74, %c0_75] : memref<128x256xbf16, #tpu.memory_space<vmem>>, vector<128x256xbf16>
    %cst_76 = arith.constant dense<0.000000e+00> : vector<256x256xf32>
    %38 = tpu.matmul %36, %37, %cst_76 {dimension_numbers = #tpu.dot_dimension_numbers<[1], [0], [0], [1], [0, 0, 1, 1], [], []>} : vector<256x128xbf16>, vector<128x256xbf16>, vector<256x256xf32> -> vector<256x256xf32>
    %39 = vector.extract_strided_slice %38 {offsets = [0, 0], sizes = [256, 128], strides = [1, 1]} : vector<256x256xf32> to vector<256x128xf32>
    %40 = arith.addf %34, %39 : vector<256x128xf32>
    %41 = vector.extract_strided_slice %38 {offsets = [0, 128], sizes = [256, 128], strides = [1, 1]} : vector<256x256xf32> to vector<256x128xf32>
    %c0_77 = arith.constant 0 : index
    %c0_78 = arith.constant 0 : index
    %42 = vector.load %arg7[%c0_77, %c0_78] : memref<1x128xf32, #tpu.memory_space<vmem>>, vector<1x128xf32>
    %43 = vector.broadcast %42 : vector<1x128xf32> to vector<256x128xf32>
    %44 = arith.addf %41, %43 : vector<256x128xf32>
    %c0_79 = arith.constant 0 : index
    %c0_80 = arith.constant 0 : index
    %45 = vector.load %arg15[%c0_79, %c0_80] : memref<256x128xf32, #tpu.memory_space<vmem>>, vector<256x128xf32>
    tpu.vector_store %arg15[%c0_79, %c0_80], %44 {strides = array<i32>} : memref<256x128xf32, #tpu.memory_space<vmem>>, vector<256x128xf32>,
    %c0_81 = arith.constant 0 : index
    %c1_82 = arith.constant 1 : index
    %c0_83 = arith.constant 0 : index
    %c0_84 = arith.constant 0 : index
    %46 = vector.load %arg11[%c0_81, %c1_82, %c0_83, %c0_84] : memref<1x18x16x128xbf16, #tpu.memory_space<vmem>>, vector<1x16x16x128xbf16>
    %47 = vector.shape_cast %46 : vector<1x16x16x128xbf16> to vector<256x128xbf16>
    %c640 = arith.constant 640 : index
    %c0_85 = arith.constant 0 : index
    %48 = vector.load %arg2[%c640, %c0_85] : memref<1152x128xbf16, #tpu.memory_space<vmem>>, vector<128x128xbf16>
    %cst_86 = arith.constant dense<0.000000e+00> : vector<256x128xf32>
    %49 = tpu.matmul %47, %48, %cst_86 {dimension_numbers = #tpu.dot_dimension_numbers<[1], [0], [0], [1], [0, 0, 1, 1], [], []>} : vector<256x128xbf16>, vector<128x128xbf16>, vector<256x128xf32> -> vector<256x128xf32>
    %50 = arith.addf %40, %49 : vector<256x128xf32>
    %c0_87 = arith.constant 0 : index
    %c2 = arith.constant 2 : index
    %c0_88 = arith.constant 0 : index
    %c0_89 = arith.constant 0 : index
    %51 = vector.load %arg9[%c0_87, %c2, %c0_88, %c0_89] : memref<1x18x16x128xbf16, #tpu.memory_space<vmem>>, vector<1x16x16x128xbf16>
    %52 = vector.shape_cast %51 : vector<1x16x16x128xbf16> to vector<256x128xbf16>
    %c768 = arith.constant 768 : index
    %c0_90 = arith.constant 0 : index
    %53 = vector.load %arg2[%c768, %c0_90] : memref<1152x128xbf16, #tpu.memory_space<vmem>>, vector<128x128xbf16>
    %cst_91 = arith.constant dense<0.000000e+00> : vector<256x128xf32>
    %54 = tpu.matmul %52, %53, %cst_91 {dimension_numbers = #tpu.dot_dimension_numbers<[1], [0], [0], [1], [0, 0, 1, 1], [], []>} : vector<256x128xbf16>, vector<128x128xbf16>, vector<256x128xf32> -> vector<256x128xf32>
    %55 = arith.addf %50, %54 : vector<256x128xf32>
    %c0_92 = arith.constant 0 : index
    %c2_93 = arith.constant 2 : index
    %c0_94 = arith.constant 0 : index
    %c0_95 = arith.constant 0 : index
    %56 = vector.load %arg10[%c0_92, %c2_93, %c0_94, %c0_95] : memref<1x18x16x128xbf16, #tpu.memory_space<vmem>>, vector<1x16x16x128xbf16>
    %57 = vector.shape_cast %56 : vector<1x16x16x128xbf16> to vector<256x128xbf16>
    %c896 = arith.constant 896 : index
    %c0_96 = arith.constant 0 : index
    %58 = vector.load %arg2[%c896, %c0_96] : memref<1152x128xbf16, #tpu.memory_space<vmem>>, vector<128x128xbf16>
    %cst_97 = arith.constant dense<0.000000e+00> : vector<256x128xf32>
    %59 = tpu.matmul %57, %58, %cst_97 {dimension_numbers = #tpu.dot_dimension_numbers<[1], [0], [0], [1], [0, 0, 1, 1], [], []>} : vector<256x128xbf16>, vector<128x128xbf16>, vector<256x128xf32> -> vector<256x128xf32>
    %60 = arith.addf %55, %59 : vector<256x128xf32>
    %c0_98 = arith.constant 0 : index
    %c2_99 = arith.constant 2 : index
    %c0_100 = arith.constant 0 : index
    %c0_101 = arith.constant 0 : index
    %61 = vector.load %arg11[%c0_98, %c2_99, %c0_100, %c0_101] : memref<1x18x16x128xbf16, #tpu.memory_space<vmem>>, vector<1x16x16x128xbf16>
    %62 = vector.shape_cast %61 : vector<1x16x16x128xbf16> to vector<256x128xbf16>
    %c1024 = arith.constant 1024 : index
    %c0_102 = arith.constant 0 : index
    %63 = vector.load %arg2[%c1024, %c0_102] : memref<1152x128xbf16, #tpu.memory_space<vmem>>, vector<128x128xbf16>
    %cst_103 = arith.constant dense<0.000000e+00> : vector<256x128xf32>
    %64 = tpu.matmul %62, %63, %cst_103 {dimension_numbers = #tpu.dot_dimension_numbers<[1], [0], [0], [1], [0, 0, 1, 1], [], []>} : vector<256x128xbf16>, vector<128x128xbf16>, vector<256x128xf32> -> vector<256x128xf32>
    %65 = arith.addf %60, %64 : vector<256x128xf32>
    %c0_104 = arith.constant 0 : index
    %c0_105 = arith.constant 0 : index
    %66 = vector.load %arg4[%c0_104, %c0_105] : memref<1x128xf32, #tpu.memory_space<vmem>>, vector<1x128xf32>
    %67 = vector.broadcast %66 : vector<1x128xf32> to vector<256x128xf32>
    %68 = arith.addf %65, %67 : vector<256x128xf32>
    %cst_106 = arith.constant 0.000000e+00 : f32
    %69 = vector.broadcast %cst_106 : f32 to vector<256x128xf32>
    %70 = arith.maximumf %68, %69 : vector<256x128xf32>
    %71 = arith.truncf %70 : vector<256x128xf32> to vector<256x128xbf16>
    %72 = vector.shape_cast %71 : vector<256x128xbf16> to vector<1x16x16x128xbf16>
    %cst_107 = arith.constant 0.000000e+00 : bf16
    %73 = vector.broadcast %cst_107 : bf16 to vector<1x1x16x128xbf16>
    %cst_108 = arith.constant 0.000000e+00 : bf16
    %74 = vector.broadcast %cst_108 : bf16 to vector<1x18x1x128xbf16>
    %c0_109 = arith.constant 0 : index
    %c0_110 = arith.constant 0 : index
    %c0_111 = arith.constant 0 : index
    %c0_112 = arith.constant 0 : index
    %75 = vector.load %arg12[%c0_109, %c0_110, %c0_111, %c0_112] : memref<1x18x16x128xbf16, #tpu.memory_space<vmem>>, vector<1x1x16x128xbf16>
    tpu.vector_store %arg12[%c0_109, %c0_110, %c0_111, %c0_112], %73 {strides = array<i32>} : memref<1x18x16x128xbf16, #tpu.memory_space<vmem>>, vector<1x1x16x128xbf16>,
    %c0_113 = arith.constant 0 : index
    %c17_114 = arith.constant 17 : index
    %c0_115 = arith.constant 0 : index
    %c0_116 = arith.constant 0 : index
    %76 = vector.load %arg12[%c0_113, %c17_114, %c0_115, %c0_116] : memref<1x18x16x128xbf16, #tpu.memory_space<vmem>>, vector<1x1x16x128xbf16>
    tpu.vector_store %arg12[%c0_113, %c17_114, %c0_115, %c0_116], %73 {strides = array<i32>} : memref<1x18x16x128xbf16, #tpu.memory_space<vmem>>, vector<1x1x16x128xbf16>,
    %c0_117 = arith.constant 0 : index
    %c0_118 = arith.constant 0 : index
    %c0_119 = arith.constant 0 : index
    %c0_120 = arith.constant 0 : index
    %77 = vector.load %arg13[%c0_117, %c0_118, %c0_119, %c0_120] : memref<1x18x16x128xbf16, #tpu.memory_space<vmem>>, vector<1x1x16x128xbf16>
    tpu.vector_store %arg13[%c0_117, %c0_118, %c0_119, %c0_120], %73 {strides = array<i32>} : memref<1x18x16x128xbf16, #tpu.memory_space<vmem>>, vector<1x1x16x128xbf16>,
    %c0_121 = arith.constant 0 : index
    %c17_122 = arith.constant 17 : index
    %c0_123 = arith.constant 0 : index
    %c0_124 = arith.constant 0 : index
    %78 = vector.load %arg13[%c0_121, %c17_122, %c0_123, %c0_124] : memref<1x18x16x128xbf16, #tpu.memory_space<vmem>>, vector<1x1x16x128xbf16>
    tpu.vector_store %arg13[%c0_121, %c17_122, %c0_123, %c0_124], %73 {strides = array<i32>} : memref<1x18x16x128xbf16, #tpu.memory_space<vmem>>, vector<1x1x16x128xbf16>,
    %c0_125 = arith.constant 0 : index
    %c0_126 = arith.constant 0 : index
    %c0_127 = arith.constant 0 : index
    %c0_128 = arith.constant 0 : index
    %79 = vector.load %arg14[%c0_125, %c0_126, %c0_127, %c0_128] : memref<1x18x16x128xbf16, #tpu.memory_space<vmem>>, vector<1x1x16x128xbf16>
    tpu.vector_store %arg14[%c0_125, %c0_126, %c0_127, %c0_128], %73 {strides = array<i32>} : memref<1x18x16x128xbf16, #tpu.memory_space<vmem>>, vector<1x1x16x128xbf16>,
    %c0_129 = arith.constant 0 : index
    %c17_130 = arith.constant 17 : index
    %c0_131 = arith.constant 0 : index
    %c0_132 = arith.constant 0 : index
    %80 = vector.load %arg14[%c0_129, %c17_130, %c0_131, %c0_132] : memref<1x18x16x128xbf16, #tpu.memory_space<vmem>>, vector<1x1x16x128xbf16>
    tpu.vector_store %arg14[%c0_129, %c17_130, %c0_131, %c0_132], %73 {strides = array<i32>} : memref<1x18x16x128xbf16, #tpu.memory_space<vmem>>, vector<1x1x16x128xbf16>,
    %c0_133 = arith.constant 0 : index
    %c0_134 = arith.constant 0 : index
    %c0_135 = arith.constant 0 : index
    %c0_136 = arith.constant 0 : index
    %81 = vector.load %arg12[%c0_133, %c0_134, %c0_135, %c0_136] : memref<1x18x16x128xbf16, #tpu.memory_space<vmem>>, vector<1x18x1x128xbf16>
    tpu.vector_store %arg12[%c0_133, %c0_134, %c0_135, %c0_136], %74 {strides = array<i32>} : memref<1x18x16x128xbf16, #tpu.memory_space<vmem>>, vector<1x18x1x128xbf16>,
    %c0_137 = arith.constant 0 : index
    %c0_138 = arith.constant 0 : index
    %c15_139 = arith.constant 15 : index
    %c0_140 = arith.constant 0 : index
    %82 = vector.load %arg14[%c0_137, %c0_138, %c15_139, %c0_140] : memref<1x18x16x128xbf16, #tpu.memory_space<vmem>>, vector<1x18x1x128xbf16>
    tpu.vector_store %arg14[%c0_137, %c0_138, %c15_139, %c0_140], %74 {strides = array<i32>} : memref<1x18x16x128xbf16, #tpu.memory_space<vmem>>, vector<1x18x1x128xbf16>,
    %c0_141 = arith.constant 0 : index
    %c1_142 = arith.constant 1 : index
    %c0_143 = arith.constant 0 : index
    %c0_144 = arith.constant 0 : index
    %83 = vector.load %arg13[%c0_141, %c1_142, %c0_143, %c0_144] : memref<1x18x16x128xbf16, #tpu.memory_space<vmem>>, vector<1x16x16x128xbf16>
    tpu.vector_store %arg13[%c0_141, %c1_142, %c0_143, %c0_144], %72 {strides = array<i32>} : memref<1x18x16x128xbf16, #tpu.memory_space<vmem>>, vector<1x16x16x128xbf16>,
    %84 = vector.extract_strided_slice %72 {offsets = [0, 0, 0, 0], sizes = [1, 16, 15, 128], strides = [1, 1, 1, 1]} : vector<1x16x16x128xbf16> to vector<1x16x15x128xbf16>
    %c0_145 = arith.constant 0 : index
    %c1_146 = arith.constant 1 : index
    %c1_147 = arith.constant 1 : index
    %c0_148 = arith.constant 0 : index
    %85 = vector.load %arg12[%c0_145, %c1_146, %c1_147, %c0_148] : memref<1x18x16x128xbf16, #tpu.memory_space<vmem>>, vector<1x16x15x128xbf16>
    tpu.vector_store %arg12[%c0_145, %c1_146, %c1_147, %c0_148], %84 {strides = array<i32>} : memref<1x18x16x128xbf16, #tpu.memory_space<vmem>>, vector<1x16x15x128xbf16>,
    %86 = vector.extract_strided_slice %72 {offsets = [0, 0, 1, 0], sizes = [1, 16, 15, 128], strides = [1, 1, 1, 1]} : vector<1x16x16x128xbf16> to vector<1x16x15x128xbf16>
    %c0_149 = arith.constant 0 : index
    %c1_150 = arith.constant 1 : index
    %c0_151 = arith.constant 0 : index
    %c0_152 = arith.constant 0 : index
    %87 = vector.load %arg14[%c0_149, %c1_150, %c0_151, %c0_152] : memref<1x18x16x128xbf16, #tpu.memory_space<vmem>>, vector<1x16x15x128xbf16>
    tpu.vector_store %arg14[%c0_149, %c1_150, %c0_151, %c0_152], %86 {strides = array<i32>} : memref<1x18x16x128xbf16, #tpu.memory_space<vmem>>, vector<1x16x15x128xbf16>,
    %c0_153 = arith.constant 0 : index
    %c0_154 = arith.constant 0 : index
    %c0_155 = arith.constant 0 : index
    %c0_156 = arith.constant 0 : index
    %88 = vector.load %arg12[%c0_153, %c0_154, %c0_155, %c0_156] : memref<1x18x16x128xbf16, #tpu.memory_space<vmem>>, vector<1x16x16x128xbf16>
    %89 = vector.shape_cast %88 : vector<1x16x16x128xbf16> to vector<256x128xbf16>
    %c0_157 = arith.constant 0 : index
    %c0_158 = arith.constant 0 : index
    %90 = vector.load %arg5[%c0_157, %c0_158] : memref<1152x128xbf16, #tpu.memory_space<vmem>>, vector<128x128xbf16>
    %cst_159 = arith.constant dense<0.000000e+00> : vector<256x128xf32>
    %91 = tpu.matmul %89, %90, %cst_159 {dimension_numbers = #tpu.dot_dimension_numbers<[1], [0], [0], [1], [0, 0, 1, 1], [], []>} : vector<256x128xbf16>, vector<128x128xbf16>, vector<256x128xf32> -> vector<256x128xf32>
    %c0_160 = arith.constant 0 : index
    %c0_161 = arith.constant 0 : index
    %c0_162 = arith.constant 0 : index
    %c0_163 = arith.constant 0 : index
    %92 = vector.load %arg13[%c0_160, %c0_161, %c0_162, %c0_163] : memref<1x18x16x128xbf16, #tpu.memory_space<vmem>>, vector<1x16x16x128xbf16>
    %93 = vector.shape_cast %92 : vector<1x16x16x128xbf16> to vector<256x128xbf16>
    %c128_164 = arith.constant 128 : index
    %c0_165 = arith.constant 0 : index
    %94 = vector.load %arg5[%c128_164, %c0_165] : memref<1152x128xbf16, #tpu.memory_space<vmem>>, vector<128x128xbf16>
    %cst_166 = arith.constant dense<0.000000e+00> : vector<256x128xf32>
    %95 = tpu.matmul %93, %94, %cst_166 {dimension_numbers = #tpu.dot_dimension_numbers<[1], [0], [0], [1], [0, 0, 1, 1], [], []>} : vector<256x128xbf16>, vector<128x128xbf16>, vector<256x128xf32> -> vector<256x128xf32>
    %96 = arith.addf %91, %95 : vector<256x128xf32>
    %c0_167 = arith.constant 0 : index
    %c0_168 = arith.constant 0 : index
    %c0_169 = arith.constant 0 : index
    %c0_170 = arith.constant 0 : index
    %97 = vector.load %arg14[%c0_167, %c0_168, %c0_169, %c0_170] : memref<1x18x16x128xbf16, #tpu.memory_space<vmem>>, vector<1x16x16x128xbf16>
    %98 = vector.shape_cast %97 : vector<1x16x16x128xbf16> to vector<256x128xbf16>
    %c256_171 = arith.constant 256 : index
    %c0_172 = arith.constant 0 : index
    %99 = vector.load %arg5[%c256_171, %c0_172] : memref<1152x128xbf16, #tpu.memory_space<vmem>>, vector<128x128xbf16>
    %cst_173 = arith.constant dense<0.000000e+00> : vector<256x128xf32>
    %100 = tpu.matmul %98, %99, %cst_173 {dimension_numbers = #tpu.dot_dimension_numbers<[1], [0], [0], [1], [0, 0, 1, 1], [], []>} : vector<256x128xbf16>, vector<128x128xbf16>, vector<256x128xf32> -> vector<256x128xf32>
    %101 = arith.addf %96, %100 : vector<256x128xf32>
    %c0_174 = arith.constant 0 : index
    %c1_175 = arith.constant 1 : index
    %c0_176 = arith.constant 0 : index
    %c0_177 = arith.constant 0 : index
    %102 = vector.load %arg12[%c0_174, %c1_175, %c0_176, %c0_177] : memref<1x18x16x128xbf16, #tpu.memory_space<vmem>>, vector<1x16x16x128xbf16>
    %103 = vector.shape_cast %102 : vector<1x16x16x128xbf16> to vector<256x128xbf16>
    %c384_178 = arith.constant 384 : index
    %c0_179 = arith.constant 0 : index
    %104 = vector.load %arg5[%c384_178, %c0_179] : memref<1152x128xbf16, #tpu.memory_space<vmem>>, vector<128x128xbf16>
    %cst_180 = arith.constant dense<0.000000e+00> : vector<256x128xf32>
    %105 = tpu.matmul %103, %104, %cst_180 {dimension_numbers = #tpu.dot_dimension_numbers<[1], [0], [0], [1], [0, 0, 1, 1], [], []>} : vector<256x128xbf16>, vector<128x128xbf16>, vector<256x128xf32> -> vector<256x128xf32>
    %106 = arith.addf %101, %105 : vector<256x128xf32>
    %c0_181 = arith.constant 0 : index
    %c1_182 = arith.constant 1 : index
    %c0_183 = arith.constant 0 : index
    %c0_184 = arith.constant 0 : index
    %107 = vector.load %arg13[%c0_181, %c1_182, %c0_183, %c0_184] : memref<1x18x16x128xbf16, #tpu.memory_space<vmem>>, vector<1x16x16x128xbf16>
    %108 = vector.shape_cast %107 : vector<1x16x16x128xbf16> to vector<256x128xbf16>
    %c512 = arith.constant 512 : index
    %c0_185 = arith.constant 0 : index
    %109 = vector.load %arg5[%c512, %c0_185] : memref<1152x128xbf16, #tpu.memory_space<vmem>>, vector<128x128xbf16>
    %cst_186 = arith.constant dense<0.000000e+00> : vector<256x128xf32>
    %110 = tpu.matmul %108, %109, %cst_186 {dimension_numbers = #tpu.dot_dimension_numbers<[1], [0], [0], [1], [0, 0, 1, 1], [], []>} : vector<256x128xbf16>, vector<128x128xbf16>, vector<256x128xf32> -> vector<256x128xf32>
    %111 = arith.addf %106, %110 : vector<256x128xf32>
    %c0_187 = arith.constant 0 : index
    %c1_188 = arith.constant 1 : index
    %c0_189 = arith.constant 0 : index
    %c0_190 = arith.constant 0 : index
    %112 = vector.load %arg14[%c0_187, %c1_188, %c0_189, %c0_190] : memref<1x18x16x128xbf16, #tpu.memory_space<vmem>>, vector<1x16x16x128xbf16>
    %113 = vector.shape_cast %112 : vector<1x16x16x128xbf16> to vector<256x128xbf16>
    %c640_191 = arith.constant 640 : index
    %c0_192 = arith.constant 0 : index
    %114 = vector.load %arg5[%c640_191, %c0_192] : memref<1152x128xbf16, #tpu.memory_space<vmem>>, vector<128x128xbf16>
    %cst_193 = arith.constant dense<0.000000e+00> : vector<256x128xf32>
    %115 = tpu.matmul %113, %114, %cst_193 {dimension_numbers = #tpu.dot_dimension_numbers<[1], [0], [0], [1], [0, 0, 1, 1], [], []>} : vector<256x128xbf16>, vector<128x128xbf16>, vector<256x128xf32> -> vector<256x128xf32>
    %116 = arith.addf %111, %115 : vector<256x128xf32>
    %c0_194 = arith.constant 0 : index
    %c2_195 = arith.constant 2 : index
    %c0_196 = arith.constant 0 : index
    %c0_197 = arith.constant 0 : index
    %117 = vector.load %arg12[%c0_194, %c2_195, %c0_196, %c0_197] : memref<1x18x16x128xbf16, #tpu.memory_space<vmem>>, vector<1x16x16x128xbf16>
    %118 = vector.shape_cast %117 : vector<1x16x16x128xbf16> to vector<256x128xbf16>
    %c768_198 = arith.constant 768 : index
    %c0_199 = arith.constant 0 : index
    %119 = vector.load %arg5[%c768_198, %c0_199] : memref<1152x128xbf16, #tpu.memory_space<vmem>>, vector<128x128xbf16>
    %cst_200 = arith.constant dense<0.000000e+00> : vector<256x128xf32>
    %120 = tpu.matmul %118, %119, %cst_200 {dimension_numbers = #tpu.dot_dimension_numbers<[1], [0], [0], [1], [0, 0, 1, 1], [], []>} : vector<256x128xbf16>, vector<128x128xbf16>, vector<256x128xf32> -> vector<256x128xf32>
    %121 = arith.addf %116, %120 : vector<256x128xf32>
    %c0_201 = arith.constant 0 : index
    %c2_202 = arith.constant 2 : index
    %c0_203 = arith.constant 0 : index
    %c0_204 = arith.constant 0 : index
    %122 = vector.load %arg13[%c0_201, %c2_202, %c0_203, %c0_204] : memref<1x18x16x128xbf16, #tpu.memory_space<vmem>>, vector<1x16x16x128xbf16>
    %123 = vector.shape_cast %122 : vector<1x16x16x128xbf16> to vector<256x128xbf16>
    %c896_205 = arith.constant 896 : index
    %c0_206 = arith.constant 0 : index
    %124 = vector.load %arg5[%c896_205, %c0_206] : memref<1152x128xbf16, #tpu.memory_space<vmem>>, vector<128x128xbf16>
    %cst_207 = arith.constant dense<0.000000e+00> : vector<256x128xf32>
    %125 = tpu.matmul %123, %124, %cst_207 {dimension_numbers = #tpu.dot_dimension_numbers<[1], [0], [0], [1], [0, 0, 1, 1], [], []>} : vector<256x128xbf16>, vector<128x128xbf16>, vector<256x128xf32> -> vector<256x128xf32>
    %126 = arith.addf %121, %125 : vector<256x128xf32>
    %c0_208 = arith.constant 0 : index
    %c2_209 = arith.constant 2 : index
    %c0_210 = arith.constant 0 : index
    %c0_211 = arith.constant 0 : index
    %127 = vector.load %arg14[%c0_208, %c2_209, %c0_210, %c0_211] : memref<1x18x16x128xbf16, #tpu.memory_space<vmem>>, vector<1x16x16x128xbf16>
    %128 = vector.shape_cast %127 : vector<1x16x16x128xbf16> to vector<256x128xbf16>
    %c1024_212 = arith.constant 1024 : index
    %c0_213 = arith.constant 0 : index
    %129 = vector.load %arg5[%c1024_212, %c0_213] : memref<1152x128xbf16, #tpu.memory_space<vmem>>, vector<128x128xbf16>
    %cst_214 = arith.constant dense<0.000000e+00> : vector<256x128xf32>
    %130 = tpu.matmul %128, %129, %cst_214 {dimension_numbers = #tpu.dot_dimension_numbers<[1], [0], [0], [1], [0, 0, 1, 1], [], []>} : vector<256x128xbf16>, vector<128x128xbf16>, vector<256x128xf32> -> vector<256x128xf32>
    %131 = arith.addf %126, %130 : vector<256x128xf32>
    %c0_215 = arith.constant 0 : index
    %c0_216 = arith.constant 0 : index
    %132 = vector.load %arg15[%c0_215, %c0_216] : memref<256x128xf32, #tpu.memory_space<vmem>>, vector<256x128xf32>
    %c0_217 = arith.constant 0 : index
    %c0_218 = arith.constant 0 : index
    %133 = vector.load %arg6[%c0_217, %c0_218] : memref<1x128xf32, #tpu.memory_space<vmem>>, vector<1x128xf32>
    %134 = vector.broadcast %133 : vector<1x128xf32> to vector<256x128xf32>
    %135 = arith.addf %131, %134 : vector<256x128xf32>
    %136 = arith.addf %135, %132 : vector<256x128xf32>
    %cst_219 = arith.constant 0.000000e+00 : f32
    %137 = vector.broadcast %cst_219 : f32 to vector<256x128xf32>
    %138 = arith.maximumf %136, %137 : vector<256x128xf32>
    %139 = vector.shape_cast %138 : vector<256x128xf32> to vector<1x16x16x128xf32>
    %c0_220 = arith.constant 0 : index
    %c0_221 = arith.constant 0 : index
    %c0_222 = arith.constant 0 : index
    %c0_223 = arith.constant 0 : index
    %140 = vector.load %arg8[%c0_220, %c0_221, %c0_222, %c0_223] : memref<1x16x16x128xf32, #tpu.memory_space<vmem>>, vector<1x16x16x128xf32>
    tpu.vector_store %arg8[%c0_220, %c0_221, %c0_222, %c0_223], %139 {strides = array<i32>} : memref<1x16x16x128xf32, #tpu.memory_space<vmem>>, vector<1x16x16x128xf32>,
    return
  }
  func.func @transform_0(%arg0: i32) -> (i32, i32, i32, i32) {
    %c0_i32 = arith.constant 0 : i32
    %c0_i32_0 = arith.constant 0 : i32
    %c0_i32_1 = arith.constant 0 : i32
    %c0_i32_2 = arith.constant 0 : i32
    return %arg0, %c0_i32, %c0_i32_0, %c0_i32_1 : i32, i32, i32, i32
  }
  func.func @transform_1(%arg0: i32) -> (i32, i32) {
    %c0_i32 = arith.constant 0 : i32
    %c0_i32_0 = arith.constant 0 : i32
    %c0_i32_1 = arith.constant 0 : i32
    return %c0_i32, %c0_i32_0 : i32, i32
  }
  func.func @transform_2(%arg0: i32) -> (i32, i32) {
    %c0_i32 = arith.constant 0 : i32
    %c0_i32_0 = arith.constant 0 : i32
    %c0_i32_1 = arith.constant 0 : i32
    return %c0_i32, %c0_i32_0 : i32, i32
  }
  func.func @transform_3(%arg0: i32) -> (i32, i32) {
    %c0_i32 = arith.constant 0 : i32
    %c0_i32_0 = arith.constant 0 : i32
    %c0_i32_1 = arith.constant 0 : i32
    return %c0_i32, %c0_i32_0 : i32, i32
  }
  func.func @transform_4(%arg0: i32) -> (i32, i32) {
    %c0_i32 = arith.constant 0 : i32
    %c0_i32_0 = arith.constant 0 : i32
    %c0_i32_1 = arith.constant 0 : i32
    return %c0_i32, %c0_i32_0 : i32, i32
  }
  func.func @transform_5(%arg0: i32) -> (i32, i32) {
    %c0_i32 = arith.constant 0 : i32
    %c0_i32_0 = arith.constant 0 : i32
    %c0_i32_1 = arith.constant 0 : i32
    return %c0_i32, %c0_i32_0 : i32, i32
  }
  func.func @transform_6(%arg0: i32) -> (i32, i32) {
    %c0_i32 = arith.constant 0 : i32
    %c0_i32_0 = arith.constant 0 : i32
    %c0_i32_1 = arith.constant 0 : i32
    return %c0_i32, %c0_i32_0 : i32, i32
  }
  func.func @transform_7(%arg0: i32) -> (i32, i32, i32, i32) {
    %c0_i32 = arith.constant 0 : i32
    %c0_i32_0 = arith.constant 0 : i32
    %c0_i32_1 = arith.constant 0 : i32
    %c0_i32_2 = arith.constant 0 : i32
    return %arg0, %c0_i32, %c0_i32_0, %c0_i32_1 : i32, i32, i32, i32
  }
}

</mosaic_0001>

<bundles_post_ra>
// kernel: tpu_custom_call.1
= control target key start
LH: loop header
LB: loop body
LE: loop exit
PB: predicated region body
PF: predicated region fallthrough
CT: control target
= control target key end

     0   :  { %s10823_s0 = inlined_call_operand.hbm [shape: bf16[2,16,16,128], index: 0, kind: input, shape index: {}]   ;;  %s10824_s1 = inlined_call_operand.hbm [shape: bf16[1152,128], index: 1, kind: input, shape index: {}]   ;;  %s10825_s2 = inlined_call_operand.hbm [shape: bf16[128,256], index: 2, kind: input, shape index: {}]   ;;  %s10826_s3 = inlined_call_operand.vmem [shape: f32[1,128], index: 3, kind: input, shape index: {}]   ;;  %s10827_s4 = inlined_call_operand.hbm [shape: bf16[1152,128], index: 4, kind: input, shape index: {}]   ;;  %s10828_s5 = inlined_call_operand.vmem [shape: f32[1,128], index: 5, kind: input, shape index: {}]   ;;  %s10829_s6 = inlined_call_operand.vmem [shape: f32[1,128], index: 6, kind: input, shape index: {}]   ;;  %s10830_s7 = inlined_call_operand.hbm [shape: f32[2,16,16,128], index: 7, kind: output, shape index: {}]  }
   0x1   :  { %10856 = sst [smem:[#allocation62_spill]] %s10824_s1 }
   0x2   :  { %12 = vsyncpa [#allocation10], 0 }
   0x3   :  { %14 = vsyncpa [#allocation10 + $0x1], 0 }
   0x4   :  { %15 = vsyncpa [#allocation13], 0 }
   0x5   :  { %16 = vsyncpa [#allocation16], 0 }
   0x6   :  { %17 = vsyncpa [#allocation11], 0 }
   0x7   :  { %19 = vsyncpa [#allocation11 + $0x1], 0  ;;  %s8920_s24 = smov 0   ;;  %s8922_s25 = smov 0  }
   0x8   :  { %s8924_s26 = smov 0   ;;  %s8926_s27 = smov 0  }
   0x9 LB: > { %s8941_s28 = sadd.s32 4294967295, %s8866_s27   ;;  %s6594_s29 = sadd.s32 4294967294, %s8866_s27   ;;  %s8866_s27 = sphi %s8926_s27, %s10972_s27   ;;  %s8862_s26 = sphi %s8924_s26, %s10971_s26   ;;  %s8858_s25 = sphi %s8922_s25, %s10970_s25   ;;  %s8854_s24 = sphi %s8920_s24, %s10969_s24  }
   0xa   : > { %p45_p0 = scmp.ne.s32.totalorder %s8858_s25, %s8854_s24  ;;  %p10831_p1 = scmp.eq.s32.totalorder %s8941_s28, 0 }
   0xb   : > { %p201_p3 = scmp.eq.s32.totalorder %s6594_s29, 1  ;;  %p6595_p5 = scmp.ge.s32.totalorder %s8866_s27, 1 }
   0xc   : > { %p8950_p4 = por %p10831_p1, %p45_p0  ;;  %p208_p7 = scmp.lt.s32.totalorder %s8866_s27, 3 }
   0xd   : > { %p8955_p6 = por %p201_p3, %p45_p0  ;;  %s8868_s10 = smov [#allocation12]  }
   0xe   : > { %s10857_s30 = scalar_select %p8950_p4, 1, 0 }
   0xf   : > { %s10858_s8 = scalar_select %p8955_p6, 1, 0 }
  0x10   : > { %p8960_p8 = pnand %p6595_p5, %p208_p7  ;;  %s220_s11 = sshll.u32 %s8868_s10, 4  ;;  %s8964_s11 = int_to_ptr.vmem [resolvable:$true] %s220_s11 }
  0x11   : > { %10859 = sst [smem:[#allocation22_spill]] %s10858_s8  ;;  %s8869_s13 = smov [#allocation14]  }
  0x12   : > { %s10860_s9 = scalar_select %p8960_p8, 1, 0 }
  0x13   : > { %p8395_p9 = pneg %p8960_p8  ;;  %s233_s14 = sshll.u32 %s8869_s13, 4  ;;  %s8975_s14 = int_to_ptr.vmem [resolvable:$true] %s233_s14 }
  0x14   : > { %s10862_s1 = sld [smem:[#allocation62_spill]] }
  0x15   : > { %p8971_p11 = pnand %p8395_p9, %p10831_p1 }
  0x17   : > { %p8985_p13 = pneg %p8971_p11 }
  0x1a   : > { %s8678_s17 = scalar_lea.hbm %s10862_s1, 9216 }
  0x1b   : > { %p8679_p12 = scmp.ne.s32.totalorder %s10862_s1, %s8678_s17  ;;  %p8685_p5 = scmp.lt.u32.totalorder %s8678_s17, %s10862_s1 }
  0x1d   : > { %p8681_p0 = pnand %p8985_p13, %p8679_p12 }
  0x1f   : > { %p8682_p3 = pneg %p8681_p0 }
  0x21   : > { %p8687_p7 = pnand %p8685_p5, %p8682_p3 }
  0x23   : > { %8690 = shalt.err (!%p8687_p7)
}
  0x24   : > { %s8691_s23 = scalar_lea.vmem %s8964_s11, 9216  ;;  %p8699_p2 = scmp.lt.s32.totalorder %s8964_s11, %s8964_s11 }
  0x25   : > { %p8692_p9 = scmp.ne.s32.totalorder %s8964_s11, %s8691_s23  ;;  %p8700_p6 = scmp.lt.s32.totalorder %s8691_s23, %s8691_s23 }
  0x27   : > { %p8694_p10 = pnand %p8692_p9, %p8985_p13  ;;  %p8701_p12 = por %p8700_p6, %p8699_p2 }
  0x29   : > { %p8695_p1 = pneg %p8694_p10 }
  0x2b   : > { %p8702_p0 = pnand %p8701_p12, %p8695_p1 }
  0x2d   : > { %8705 = shalt.err (!%p8702_p0)
}
  0x2e   : > { %s10832_s29 = smov 64   ;;  %s10834_s10 = smov 4  }
  0x2f   : > { %8398 = dma.hbm_to_vmem [thread:$0]  (!%p8971_p11), %s10862_s1, 9216, %s8964_s11, [#allocation13], %s10832_s29, %s10832_s29, %s10834_s10  }
  0x30   : > { %s8706_s18 = scalar_lea.hbm %s10825_s2, 2048 }
  0x31   : > { %p8707_p1 = scmp.ne.s32.totalorder %s10825_s2, %s8706_s18  ;;  %p8713_p10 = scmp.lt.u32.totalorder %s8706_s18, %s10825_s2 }
  0x33   : > { %p8709_p2 = pnand %p8707_p1, %p8985_p13 }
  0x35   : > { %p8710_p6 = pneg %p8709_p2 }
  0x37   : > { %p8715_p3 = pnand %p8713_p10, %p8710_p6 }
  0x39   : > { %8718 = shalt.err (!%p8715_p3)
}
  0x3a   : > { %s8719_s11 = scalar_lea.vmem %s8975_s14, 2048  ;;  %p8727_p12 = scmp.lt.s32.totalorder %s8975_s14, %s8975_s14 }
  0x3b   : > { %p8720_p5 = scmp.ne.s32.totalorder %s8975_s14, %s8719_s11  ;;  %p8728_p0 = scmp.lt.s32.totalorder %s8719_s11, %s8719_s11 }
  0x3d   : > { %p8722_p7 = pnand %p8720_p5, %p8985_p13  ;;  %p8729_p1 = por %p8728_p0, %p8727_p12 }
  0x3f   : > { %p8723_p9 = pneg %p8722_p7 }
  0x41   : > { %p8730_p2 = pnand %p8729_p1, %p8723_p9 }
  0x43   : > { %8733 = shalt.err (!%p8730_p2)
}
  0x44   : > { %s8872_s13 = smov 128   ;;  %s8873_s15 = smov 8  }
  0x45   : > { %8401 = dma.hbm_to_vmem [thread:$0]  (!%p8971_p11), %s10825_s2, 2048, %s8975_s14, [#allocation13], %s8872_s13, %s8872_s13, %s8873_s15  }
  0x46   : > { %s8874_s18 = smov [#allocation15]   ;;  %s9033_s21 = sadd.s32 1, %s8866_s27  }
  0x47   : > { %s249_s19 = sshll.u32 %s8874_s18, 4  ;;  %s8734_s11 = scalar_lea.hbm %s10827_s4, 9216  ;;  %s250_s19 = int_to_ptr.vmem [resolvable:$true] %s249_s19 }
  0x48   : > { %p8735_p6 = scmp.ne.s32.totalorder %s10827_s4, %s8734_s11  ;;  %p8741_p5 = scmp.lt.u32.totalorder %s8734_s11, %s10827_s4 }
  0x4a   : > { %p8737_p10 = pnand %p8735_p6, %p8985_p13 }
  0x4c   : > { %p8738_p3 = pneg %p8737_p10 }
  0x4e   : > { %p8743_p7 = pnand %p8741_p5, %p8738_p3 }
  0x50   : > { %8746 = shalt.err (!%p8743_p7)
}
  0x51   : > { %s8747_s14 = scalar_lea.vmem %s250_s19, 9216  ;;  %p8755_p1 = scmp.lt.s32.totalorder %s250_s19, %s250_s19 }
  0x52   : > { %p8748_p9 = scmp.ne.s32.totalorder %s250_s19, %s8747_s14  ;;  %p8756_p2 = scmp.lt.s32.totalorder %s8747_s14, %s8747_s14 }
  0x54   : > { %p8750_p12 = pnand %p8748_p9, %p8985_p13  ;;  %p8757_p4 = por %p8756_p2, %p8755_p1 }
  0x56   : > { %p8751_p0 = pneg %p8750_p12 }
  0x58   : > { %p8758_p8 = pnand %p8757_p4, %p8751_p0 }
  0x5a   : > { %8761 = shalt.err (!%p8758_p8)
}
  0x5b   : > { %s10864_s29 = smov 4   ;;  %s10865_s10 = smov 64  }
  0x5c   : > { %8404 = dma.hbm_to_vmem [thread:$0]  (!%p8971_p11), %s10827_s4, 9216, %s250_s19, [#allocation16], %s10865_s10, %s10865_s10, %s10864_s29  }
  0x5d   : > { %s29_s20 = ssub.s32 %s8866_s27, %s9033_s21  ;;  %s32_s12 = sadd.s32 1, %s8862_s26 }
  0x5e   : > { %p30_p4 = scmp.eq.s32.totalorder %s29_s20, 0  ;;  %p39_p8 = scmp.ne.s32.totalorder %s8862_s26, %s8858_s25 }
  0x5f   : > { %p40_p13 = scmp.eq.s32.totalorder %s8866_s27, 0  ;;  %p8416_p6 = scmp.lt.s32.totalorder %s8866_s27, 2 }
  0x60   : > { %s9064_s13 = scalar_select %p30_p4, %s8862_s26, %s32_s12  }
  0x61   : > { %p41_p10 = por %p40_p13, %p39_p8  ;;  %p10866_p3 = scmp.eq.s32.totalorder %s8941_s28, 1 }
  0x62   : > { %s269_s16 = sand.u32 1, %s8862_s26   ;;  %s6785_s17 = sshll.u32 %s8866_s27, 11 }
  0x63   : > { %p9068_p5 = por %p10866_p3, %p39_p8  ;;  %s6600_s18 = sshll.u32 %s269_s16, 7 }
  0x64   : > { %s9077_s19 = scalar_lea.hbm %s10823_s0, %s6785_s17  ;;  %s273_s11 = scalar_lea.vmem [#allocation9], %s6600_s18 }
  0x65   : > { %s280_s14 = sshll.u32 %s273_s11, 4  ;;  %p9079_p11 = pnand %p8416_p6, %p41_p10  ;;  %s9083_s14 = int_to_ptr.vmem [resolvable:$true] %s280_s14 }
  0x66   : > { %s9085_s8 = scalar_lea.sflag [#allocation10], %s269_s16  ;;  %s8762_s20 = scalar_lea.hbm %s9077_s19, 2048 }
  0x67   : > { %p8763_p7 = scmp.ne.s32.totalorder %s9077_s19, %s8762_s20  ;;  %p8764_p9 = pneg %p9079_p11 }
  0x68   : > { %s8767_s18 = scalar_lea.hbm %s10823_s0, 4096  ;;  %p8768_p1 = scmp.lt.u32.totalorder %s9077_s19, %s10823_s0 }
  0x69   : > { %p8765_p12 = pnand %p8764_p9, %p8763_p7  ;;  %p8769_p2 = scmp.lt.u32.totalorder %s8767_s18, %s8762_s20 }
  0x6a   : > { %p8771_p8 = scmp.lt.u32.totalorder %s8762_s20, %s9077_s19 }
  0x6b   : > { %p8766_p0 = pneg %p8765_p12  ;;  %p8770_p4 = por %p8769_p2, %p8768_p1 }
  0x6d   : > { %p8772_p13 = por %p8771_p8, %p8770_p4 }
  0x6f   : > { %p8773_p6 = pnand %p8772_p13, %p8766_p0 }
  0x71   : > { %8776 = shalt.err (!%p8773_p6)
}
  0x72   : > { %s8777_s16 = scalar_lea.vmem %s9083_s14, 2048  ;;  %s8875_s11 = smov [#allocation9]  }
  0x73   : > { %p8778_p10 = scmp.ne.s32.totalorder %s9083_s14, %s8777_s16  ;;  %s8782_s12 = sshll.u32 %s8875_s11, 4  ;;  %s8783_s12 = int_to_ptr.vmem [resolvable:$false] %s8782_s12 }
  0x74   : > { %s8784_s17 = scalar_lea.vmem %s8783_s12, 4096  ;;  %p8785_p12 = scmp.lt.s32.totalorder %s9083_s14, %s8783_s12 }
  0x75   : > { %p8780_p3 = pnand %p8778_p10, %p8764_p9  ;;  %p8786_p1 = scmp.lt.s32.totalorder %s8784_s17, %s8777_s16 }
  0x77   : > { %p8781_p7 = pneg %p8780_p3  ;;  %p8787_p2 = por %p8786_p1, %p8785_p12 }
  0x79   : > { %p8788_p4 = pnand %p8787_p2, %p8781_p7 }
  0x7b   : > { %8791 = shalt.err (!%p8788_p4)
}
  0x7c   : > { %8408 = dma.hbm_to_vmem [thread:$0]  (!%p9079_p11), %s9077_s19, 2048, %s9083_s14, %s9085_s8, %s10865_s10, %s10865_s10, %s10864_s29  }
  0x7d   : > { %p10869_p9 = scmp.ne.s32.totalorder %s10860_s9, 0 }
  0x7f   : > { %292 = sbr.rel (%p10869_p9) target bundleno = 1750 (0x6d6), region = 48 }
  0x86   : > { %s9119_s20 = sand.u32 1, %s8858_s25   ;;  %p10870_p0 = scmp.ne.s32.totalorder %s10857_s30, 0 }
  0x87   : > { %s6604_s18 = sshll.u32 %s9119_s20, 7  ;;  %s295_s22 = scalar_lea.sflag [#allocation10], %s9119_s20 }
  0x88   : > { %s9123_s23 = scalar_lea.vmem [#allocation9], %s6604_s18 }
  0x89   : > { %8837 = dma.done.wait (%p10870_p0), %s295_s22, 2048  }
  0x8a   : > { %8839 = vsyncadd (%p10870_p0), %s295_s22, 4294965248  ;;  %p10871_p11 = scmp.eq.s32.totalorder %s8941_s28, 0 }
  0x8c   : > { %8841 = dma.done.wait (%p10871_p11), [#allocation13], 11264   ;;  %p10872_p8 = pmov %p10871_p11 }
  0x8e   : > { %8843 = vsyncadd (%p10872_p8), [#allocation13], 4294956032  ;;  %p10873_p13 = pmov %p10872_p8 }
  0x8f   : > { %p10874_p6 = pmov %p10872_p8 }
  0x90   : > { %8845 = dma.done.wait (%p10873_p13), [#allocation16], 9216  }
  0x91   : > { %8847 = vsyncadd (%p10874_p6), [#allocation16], 4294958080  ;;  %v8876_v0 = vmov 0   ;;  %vm384_vm0 = vsmask.f32 256  ;;  %v8463_v1 = vld [vmem:[#allocation12 + $0x40] sm:$0xff]  }
  0x92   : > { %7211 = vmatprep.mubr.bf16.mxu1 %v8876_v0  ;;  %374 = vst [vmem:[#allocation2] sm:$0xff] %v8876_v0  ;;  %376 = vst [vmem:[#allocation2 + $0x88] sm:$0xff] %v8876_v0  ;;  %v8464_v2 = vld [vmem:[#allocation12 + $0x48] sm:$0xff]   ;;  %7195 = vmatprep.subr.bf16.mxu1 %v8463_v1  ;;  %vm383_vm1 = vcmask 1040384   ;;  %vm440_vm2 = vcmask 1047559   ;;  %v8465_v3 = vld [vmem:[#allocation12 + $0x50] sm:$0xff]  }
  0x93   : > { %380 = vst [vmem:[#allocation4] sm:$0xff] %v8876_v0  ;;  %382 = vst [vmem:[#allocation4 + $0x88] sm:$0xff] %v8876_v0  ;;  %7196 = vmatpush3.bf16.msra.mxu1 %v8463_v1  ;;  %vm441_vm3 = vsmask.f32 7966  ;;  %v10875_v4 = vmov 0  ;;  %v10878_v5 = vmov 0 }
  0x94   : > { %3507 = vst [vmem:[#allocation5] sm:$0xff] %v8876_v0  ;;  %3509 = vst [vmem:[#allocation5 + $0x88] sm:$0xff] %v8876_v0  ;;  %7197 = vmatprep.subr.bf16.mxu1 %v8464_v2  ;;  %vm740_vm5 = vsmask.f32 7938  ;;  %vm839_vm7 = vsmask.f32 7424 }
  0x95   : > { %3513 = vst [vmem:[#allocation7] sm:$0xff] %v8876_v0  ;;  %3515 = vst [vmem:[#allocation7 + $0x88] sm:$0xff] %v8876_v0  ;;  %v8466_v6 = vld [vmem:[#allocation12 + $0x58] sm:$0xff]   ;;  %vm739_vm8 = vcmask 1047552   ;;  %v389_v7 = vld [vmem:[#allocation2 + $0x8] sm:$0x1] }
  0x96   : > { %vm9137_vm4 = vmand %vm383_vm1, %vm384_vm0  ;;  %v446_v9 = vld [vmem:[#allocation4 + $0x8] sm:$0x80]  ;;  %v9148_v10 = vld [vmem:[%s9123_s23] sm:$0xff]   ;;  %v10881_v28 = vmov 0  ;;  %v10884_v33 = vmov 0  ;;  %s6608_s1 = sshll.u32 %s9119_s20, 8 }
  0x97   : > { %v10876_v4 = vsel %vm9137_vm4, 4294967295, %v10875_v4  ;;  %vm9141_vm6 = vmand %vm440_vm2, %vm441_vm3  ;;  %7198 = vmatpush3.bf16.msra.mxu1 %v8464_v2  ;;  %v390_v8 = vsel %vm9137_vm4, 0, %v389_v7  ;;  %v8467_v11 = vld [vmem:[#allocation12 + $0x60] sm:$0xff]   ;;  %v611_v13 = vshrl.u32 %v9148_v10, 16  ;;  %v614_v14 = vshll.u32 %v9148_v10, 16  ;;  %v9157_v18 = vld [vmem:[%s9123_s23 + $0x8] sm:$0xff]  }
  0x98   : > { %10877 = vst [vmem:[#allocation23_spill] sm:$0xff] %v10876_v4  ;;  %v10879_v5 = vsel %vm9141_vm6, 4294967295, %v10878_v5  ;;  %7199 = vmatprep.subr.bf16.mxu1 %v8465_v3  ;;  %391 = vst [vmem:[#allocation2 + $0x8] sm:$0x1] %v390_v8  ;;  %v447_v12 = vsel %vm9141_vm6, 0, %v446_v9  ;;  %v9162_v22 = vld [vmem:[%s9123_s23 + $0x10] sm:$0xff]   ;;  %7499 = vmatprep.mubr.bf16.mxu0 %v9157_v18 }
  0x99   : > { %10880 = vst [vmem:[#allocation24_spill] sm:$0xff] %v10879_v5  ;;  %448 = vst [vmem:[#allocation4 + $0x8] sm:$0x80] %v447_v12  ;;  %v392_v15 = vld [vmem:[#allocation2 + $0x10] sm:$0x1]  ;;  %v613_v19 = vrot.slane %v611_v13, 7 }
  0x9a   : > { %v393_v16 = vsel %vm9137_vm4, 0, %v392_v15  ;;  %v449_v17 = vld [vmem:[#allocation4 + $0x10] sm:$0x80]  ;;  %v790_v20 = vrot.slane %v614_v14, 1  ;;  %v618_v23 = vshrl.u32 %v9157_v18, 16  ;;  %v621_v24 = vshll.u32 %v9157_v18, 16  ;;  %vm9169_vm9 = vmand %vm739_vm8, %vm740_vm5 }
  0x9b   : > { %7200 = vmatpush3.bf16.msra.mxu1 %v8465_v3  ;;  %394 = vst [vmem:[#allocation2 + $0x10] sm:$0x1] %v393_v16  ;;  %v450_v21 = vsel %vm9141_vm6, 0, %v449_v17  ;;  %v395_v25 = vld [vmem:[#allocation2 + $0x18] sm:$0x1]  ;;  %v616_v27 = vor.u32 %v614_v14, %v613_v19  ;;  %v10882_v28 = vsel %vm9169_vm9, 4294967295, %v10881_v28  ;;  %vm9179_vm10 = vmand %vm739_vm8, %vm839_vm7 }
  0x9c   : > { %7201 = vmatprep.subr.bf16.mxu1 %v8466_v6  ;;  %451 = vst [vmem:[#allocation4 + $0x10] sm:$0x80] %v450_v21  ;;  %v452_v26 = vld [vmem:[#allocation4 + $0x18] sm:$0x80]  ;;  %10883 = vst [vmem:[#allocation25_spill] sm:$0xff] %v10882_v28  ;;  %v791_v29 = vor.u32 %v790_v20, %v611_v13  ;;  %v396_v30 = vsel %vm9137_vm4, 0, %v395_v25 }
  0x9d   : > { %v453_v31 = vsel %vm9141_vm6, 0, %v452_v26  ;;  %v8468_v32 = vld [vmem:[#allocation12 + $0x68] sm:$0xff]   ;;  %v10885_v33 = vsel %vm9179_vm10, 4294967295, %v10884_v33  ;;  %v620_v34 = vrot.slane %v618_v23, 7  ;;  %v792_v35 = vrot.slane %v621_v24, 1  ;;  %v9186_v38 = vld [vmem:[%s9123_s23 + $0x18] sm:$0xff]  }
  0x9e   : > { %10886 = vst [vmem:[#allocation26_spill] sm:$0xff] %v10885_v33  ;;  %397 = vst [vmem:[#allocation2 + $0x18] sm:$0x1] %v396_v30  ;;  %v625_v36 = vshrl.u32 %v9162_v22, 16  ;;  %v628_v37 = vshll.u32 %v9162_v22, 16  ;;  %v9200_v51 = vld [vmem:[%s9123_s23 + $0x20] sm:$0xff]  }
  0x9f   : > { %7202 = vmatpush3.bf16.msra.mxu1 %v8466_v6  ;;  %454 = vst [vmem:[#allocation4 + $0x18] sm:$0x80] %v453_v31  ;;  %v742_v39 = vld [vmem:[#allocation2 + $0x8] sm:$0xff]  ;;  %v623_v42 = vor.u32 %v621_v24, %v620_v34  ;;  %v793_v43 = vor.u32 %v792_v35, %v618_v23  ;;  %v398_v45 = vld [vmem:[#allocation2 + $0x20] sm:$0x1]  ;;  %v8469_v52 = vld [vmem:[#allocation12 + $0x70] sm:$0xff]  }
  0xa0   : > { %7203 = vmatprep.subr.bf16.mxu1 %v8467_v11  ;;  %v9190_v40 = vsel %vm9169_vm9, %v616_v27, %v742_v39  ;;  %v841_v41 = vld [vmem:[#allocation4 + $0x8] sm:$0xff]  ;;  %v627_v44 = vrot.slane %v625_v36, 7  ;;  %v455_v46 = vld [vmem:[#allocation4 + $0x20] sm:$0x80]  ;;  %v794_v48 = vrot.slane %v628_v37, 1  ;;  %v399_v49 = vsel %vm9137_vm4, 0, %v398_v45 }
  0xa1   : > { %744 = vst [vmem:[#allocation2 + $0x8] sm:$0xff] %v9190_v40  ;;  %v842_v47 = vsel %vm9179_vm10, %v791_v29, %v841_v41  ;;  %v456_v50 = vsel %vm9141_vm6, 0, %v455_v46  ;;  %400 = vst [vmem:[#allocation2 + $0x20] sm:$0x1] %v399_v49  ;;  %v632_v55 = vshrl.u32 %v9186_v38, 16  ;;  %v635_v56 = vshll.u32 %v9186_v38, 16 }
  0xa2   : > { %843 = vst [vmem:[#allocation4 + $0x8] sm:$0xff] %v842_v47  ;;  %v745_v53 = vld [vmem:[#allocation2 + $0x10] sm:$0xff]  ;;  %v630_v54 = vor.u32 %v628_v37, %v627_v44  ;;  %457 = vst [vmem:[#allocation4 + $0x20] sm:$0x80] %v456_v50  ;;  %v795_v59 = vor.u32 %v794_v48, %v625_v36  ;;  %v401_v60 = vld [vmem:[#allocation2 + $0x28] sm:$0x1] }
  0xa3   : > { %7204 = vmatpush3.bf16.msra.mxu1 %v8467_v11  ;;  %v9206_v57 = vsel %vm9169_vm9, %v623_v42, %v745_v53  ;;  %v844_v58 = vld [vmem:[#allocation4 + $0x10] sm:$0xff]  ;;  %v458_v61 = vld [vmem:[#allocation4 + $0x28] sm:$0x80]  ;;  %v639_v62 = vshrl.u32 %v9200_v51, 16  ;;  %v634_v1 = vrot.slane %v632_v55, 7  ;;  %v796_v2 = vrot.slane %v635_v56, 1 }
  0xa4   : > { %7205 = vmatprep.subr.bf16.mxu1 %v8468_v32  ;;  %v8470_v63 = vld [vmem:[#allocation12 + $0x78] sm:$0xff]   ;;  %v845_v0 = vsel %vm9179_vm10, %v793_v43, %v844_v58  ;;  %747 = vst [vmem:[#allocation2 + $0x10] sm:$0xff] %v9206_v57  ;;  %v402_v3 = vsel %vm9137_vm4, 0, %v401_v60  ;;  %v9215_v6 = vld [vmem:[%s9123_s23 + $0x28] sm:$0xff]   ;;  %v459_v9 = vsel %vm9141_vm6, 0, %v458_v61  ;;  %v642_v12 = vshll.u32 %v9200_v51, 16 }
  0xa5   : > { %846 = vst [vmem:[#allocation4 + $0x10] sm:$0xff] %v845_v0  ;;  %v748_v7 = vld [vmem:[#allocation2 + $0x18] sm:$0xff]  ;;  %403 = vst [vmem:[#allocation2 + $0x28] sm:$0x1] %v402_v3  ;;  %v641_v11 = vrot.slane %v639_v62, 7  ;;  %v9221_v13 = vld [vmem:[%s9123_s23 + $0x30] sm:$0xff]   ;;  %v637_v16 = vor.u32 %v635_v56, %v634_v1  ;;  %v797_v17 = vor.u32 %v796_v2, %v632_v55 }
  0xa6   : > { %v847_v8 = vld [vmem:[#allocation4 + $0x18] sm:$0xff]  ;;  %v9225_v14 = vsel %vm9169_vm9, %v630_v54, %v748_v7  ;;  %460 = vst [vmem:[#allocation4 + $0x28] sm:$0x80] %v459_v9  ;;  %v798_v19 = vrot.slane %v642_v12, 1  ;;  %v404_v20 = vld [vmem:[#allocation2 + $0x30] sm:$0x1] }
  0xa7   : > { %7206 = vmatpush3.bf16.msra.mxu1 %v8468_v32  ;;  %v848_v15 = vsel %vm9179_vm10, %v795_v59, %v847_v8  ;;  %750 = vst [vmem:[#allocation2 + $0x18] sm:$0xff] %v9225_v14  ;;  %v461_v21 = vld [vmem:[#allocation4 + $0x30] sm:$0x80]  ;;  %v646_v23 = vshrl.u32 %v9215_v6, 16  ;;  %v405_v25 = vsel %vm9137_vm4, 0, %v404_v20  ;;  %v649_v27 = vshll.u32 %v9215_v6, 16 }
  0xa8   : > { %7207 = vmatprep.subr.bf16.mxu1 %v8469_v52  ;;  %849 = vst [vmem:[#allocation4 + $0x18] sm:$0xff] %v848_v15  ;;  %v8472_v24 = vld [vmem:[#allocation12] sm:$0xff]   ;;  %v462_v26 = vsel %vm9141_vm6, 0, %v461_v21  ;;  %v653_v29 = vshrl.u32 %v9221_v13, 16  ;;  %v644_v32 = vor.u32 %v642_v12, %v641_v11  ;;  %v799_v34 = vor.u32 %v798_v19, %v639_v62  ;;  %406 = vst [vmem:[#allocation2 + $0x30] sm:$0x1] %v405_v25 }
  0xa9   : > { %v751_v30 = vld [vmem:[#allocation2 + $0x20] sm:$0xff]  ;;  %v850_v31 = vld [vmem:[#allocation4 + $0x20] sm:$0xff]  ;;  %463 = vst [vmem:[#allocation4 + $0x30] sm:$0x80] %v462_v26  ;;  %v648_v35 = vrot.slane %v646_v23, 7  ;;  %v800_v39 = vrot.slane %v649_v27, 1 }
  0xaa   : > { %v9239_v36 = vsel %vm9169_vm9, %v637_v16, %v751_v30  ;;  %v851_v37 = vsel %vm9179_vm10, %v797_v17, %v850_v31  ;;  %v407_v41 = vld [vmem:[#allocation2 + $0x38] sm:$0x1]  ;;  %v464_v42 = vld [vmem:[#allocation4 + $0x38] sm:$0x80]  ;;  %v656_v43 = vshll.u32 %v9221_v13, 16  ;;  %v655_v46 = vrot.slane %v653_v29, 7 }
  0xab   : > { %7208 = vmatpush3.bf16.msra.mxu1 %v8469_v52  ;;  %753 = vst [vmem:[#allocation2 + $0x20] sm:$0xff] %v9239_v36  ;;  %852 = vst [vmem:[#allocation4 + $0x20] sm:$0xff] %v851_v37  ;;  %v408_v44 = vsel %vm9137_vm4, 0, %v407_v41  ;;  %v465_v45 = vsel %vm9141_vm6, 0, %v464_v42  ;;  %v8475_v47 = vld [vmem:[#allocation12 + $0x8] sm:$0xff]   ;;  %v651_v53 = vor.u32 %v649_v27, %v648_v35  ;;  %v801_v54 = vor.u32 %v800_v39, %v646_v23  ;;  %v9259_v60 = vld [vmem:[%s9123_s23 + $0x38] sm:$0xff]  }
  0xac   : > { %7209 = vmatprep.subr.bf16.mxu1 %v8470_v63  ;;  %v754_v48 = vld [vmem:[#allocation2 + $0x28] sm:$0xff]  ;;  %409 = vst [vmem:[#allocation2 + $0x38] sm:$0x1] %v408_v44  ;;  %466 = vst [vmem:[#allocation4 + $0x38] sm:$0x80] %v465_v45  ;;  %v802_v49 = vrot.slane %v656_v43, 1  ;;  %v658_v61 = vor.u32 %v656_v43, %v655_v46 }
  0xad   : > { %v9251_v50 = vsel %vm9169_vm9, %v644_v32, %v754_v48  ;;  %v853_v52 = vld [vmem:[#allocation4 + $0x28] sm:$0xff]  ;;  %v410_v55 = vld [vmem:[#allocation2 + $0x40] sm:$0x1]  ;;  %v467_v59 = vld [vmem:[#allocation4 + $0x40] sm:$0x80]  ;;  %v660_v8 = vshrl.u32 %v9259_v60, 16 }
  0xae   : > { %v854_v56 = vsel %vm9179_vm10, %v799_v34, %v853_v52  ;;  %756 = vst [vmem:[#allocation2 + $0x28] sm:$0xff] %v9251_v50  ;;  %v411_v58 = vsel %vm9137_vm4, 0, %v410_v55  ;;  %v468_v62 = vsel %vm9141_vm6, 0, %v467_v59  ;;  %v9264_v0 = vld [vmem:[%s9123_s23 + $0x40] sm:$0xff]   ;;  %v8478_v1 = vld [vmem:[#allocation12 + $0x10] sm:$0xff]   ;;  %v803_v7 = vor.u32 %v802_v49, %v653_v29  ;;  %v9284_v21 = vld [vmem:[%s9123_s23 + $0x48] sm:$0xff]  }
  0xaf   : > { %7210 = vmatpush3.bf16.msra.mxu1 %v8470_v63  ;;  %855 = vst [vmem:[#allocation4 + $0x28] sm:$0xff] %v854_v56  ;;  %412 = vst [vmem:[#allocation2 + $0x40] sm:$0x1] %v411_v58  ;;  %v413_v63 = vld [vmem:[#allocation2 + $0x48] sm:$0x1]  ;;  %v757_v2 = vld [vmem:[#allocation2 + $0x30] sm:$0xff] }
  0xb0   : > { %7243 = vmatprep.subr.bf16.mxu1 %v8472_v24  ;;  %v856_v3 = vld [vmem:[#allocation4 + $0x30] sm:$0xff]  ;;  %469 = vst [vmem:[#allocation4 + $0x40] sm:$0x80] %v468_v62  ;;  %v663_v9 = vshll.u32 %v9259_v60, 16  ;;  %v414_v11 = vsel %vm9137_vm4, 0, %v413_v63  ;;  %v9274_v12 = vsel %vm9169_vm9, %v651_v53, %v757_v2  ;;  %v667_v16 = vshrl.u32 %v9264_v0, 16 }
  0xb1   : > { %415 = vst [vmem:[#allocation2 + $0x48] sm:$0x1] %v414_v11  ;;  %v470_v15 = vld [vmem:[#allocation4 + $0x48] sm:$0x80]  ;;  %v670_v17 = vshll.u32 %v9264_v0, 16  ;;  %759 = vst [vmem:[#allocation2 + $0x30] sm:$0xff] %v9274_v12 }
  0xb2   : > { %7212 = vmatmul.mubr.bf16.vlgmr.msra.gmra.mrb[0].mxu1 %v9148_v10  ;;  %v857_v10 = vsel %vm9179_vm10, %v801_v54, %v856_v3  ;;  %v662_v19 = vrot.slane %v660_v8, 7  ;;  %v804_v20 = vrot.slane %v663_v9, 1  ;;  %v669_v25 = vrot.slane %v667_v16, 7  ;;  %v8481_v30 = vld [vmem:[#allocation12 + $0x18] sm:$0xff]   ;;  %v416_v34 = vld [vmem:[#allocation2 + $0x50] sm:$0x1] }
  0xb3   : > { %7244 = vmatpush3.bf16.msra.mxu1 %v8472_v24  ;;  %7215 = vmatprep.mubr.bf16.mxu1 %v9157_v18  ;;  %858 = vst [vmem:[#allocation4 + $0x30] sm:$0xff] %v857_v10  ;;  %v471_v18 = vsel %vm9141_vm6, 0, %v470_v15  ;;  %v760_v23 = vld [vmem:[#allocation2 + $0x38] sm:$0xff]  ;;  %v859_v24 = vld [vmem:[#allocation4 + $0x38] sm:$0xff]  ;;  %v806_v26 = vrot.slane %v670_v17, 1  ;;  %v417_v39 = vsel %vm9137_vm4, 0, %v416_v34 }
  0xb4   : > { %7245 = vmatprep.subr.bf16.mxu1 %v8475_v47  ;;  %472 = vst [vmem:[#allocation4 + $0x48] sm:$0x80] %v471_v18  ;;  %v9288_v27 = vsel %vm9169_vm9, %v658_v61, %v760_v23  ;;  %v860_v29 = vsel %vm9179_vm10, %v803_v7, %v859_v24  ;;  %v665_v31 = vor.u32 %v663_v9, %v662_v19  ;;  %v473_v35 = vld [vmem:[#allocation4 + $0x50] sm:$0x80]  ;;  %418 = vst [vmem:[#allocation2 + $0x50] sm:$0x1] %v417_v39 }
  0xb5   : > { %v805_v32 = vor.u32 %v804_v20, %v660_v8  ;;  %762 = vst [vmem:[#allocation2 + $0x38] sm:$0xff] %v9288_v27  ;;  %861 = vst [vmem:[#allocation4 + $0x38] sm:$0xff] %v860_v29  ;;  %v672_v37 = vor.u32 %v670_v17, %v669_v25  ;;  %v474_v41 = vsel %vm9141_vm6, 0, %v473_v35  ;;  %v674_v43 = vshrl.u32 %v9284_v21, 16  ;;  %v419_v45 = vld [vmem:[#allocation2 + $0x58] sm:$0x1] }
  0xb6   : > { %v763_v42 = vld [vmem:[#allocation2 + $0x40] sm:$0xff]  ;;  %475 = vst [vmem:[#allocation4 + $0x50] sm:$0x80] %v474_v41  ;;  %v677_v44 = vshll.u32 %v9284_v21, 16  ;;  %v9300_v46 = vld [vmem:[%s9123_s23 + $0x50] sm:$0xff]   ;;  %v807_v49 = vor.u32 %v806_v26, %v667_v16  ;;  %v420_v52 = vsel %vm9137_vm4, 0, %v419_v45 }
  0xb7   : > { %7246 = vmatpush3.bf16.msra.mxu1 %v8475_v47  ;;  %v9304_v47 = vsel %vm9169_vm9, %v665_v31, %v763_v42  ;;  %v862_v48 = vld [vmem:[#allocation4 + $0x40] sm:$0xff]  ;;  %v476_v53 = vld [vmem:[#allocation4 + $0x58] sm:$0x80]  ;;  %v676_v56 = vrot.slane %v674_v43, 7  ;;  %421 = vst [vmem:[#allocation2 + $0x58] sm:$0x1] %v420_v52 }
  0xb8   : > { %7247 = vmatprep.subr.bf16.mxu1 %v8478_v1  ;;  %v9311_v54 = vsel %vm9179_vm10, %v805_v32, %v862_v48  ;;  %765 = vst [vmem:[#allocation2 + $0x40] sm:$0xff] %v9304_v47  ;;  %v766_v55 = vld [vmem:[#allocation2 + $0x48] sm:$0xff]  ;;  %v808_v58 = vrot.slane %v677_v44, 1  ;;  %v477_v59 = vsel %vm9141_vm6, 0, %v476_v53  ;;  %v8484_v61 = vld [vmem:[#allocation12 + $0x20] sm:$0xff]   ;;  %v681_v62 = vshrl.u32 %v9300_v46, 16 }
  0xb9   : > { %864 = vst [vmem:[#allocation4 + $0x40] sm:$0xff] %v9311_v54  ;;  %478 = vst [vmem:[#allocation4 + $0x58] sm:$0x80] %v477_v59  ;;  %v684_v63 = vshll.u32 %v9300_v46, 16  ;;  %v9325_v2 = vld [vmem:[%s9123_s23 + $0x58] sm:$0xff]   ;;  %v9335_v16 = vld [vmem:[%s9123_s23 + $0x60] sm:$0xff]  }
  0xba   : > { %7216 = vmatmul.mubr.bf16.gmra.mrb[4].mxu1 %v9162_v22  ;;  %v9320_v22 = vsel %vm9169_vm9, %v672_v37, %v766_v55  ;;  %v422_v7 = vld [vmem:[#allocation2 + $0x60] sm:$0x1]  ;;  %v683_v9 = vrot.slane %v681_v62, 7  ;;  %v479_v15 = vld [vmem:[#allocation4 + $0x60] sm:$0x80]  ;;  %v8487_v17 = vld [vmem:[#allocation12 + $0x28] sm:$0xff]  }
  0xbb   : > { %7219 = vmatprep.mubr.bf16.mxu1 %v9186_v38  ;;  %7248 = vmatpush3.bf16.msra.mxu1 %v8478_v1  ;;  %v865_v3 = vld [vmem:[#allocation4 + $0x48] sm:$0xff]  ;;  %768 = vst [vmem:[#allocation2 + $0x48] sm:$0xff] %v9320_v22  ;;  %v679_v38 = vor.u32 %v677_v44, %v676_v56  ;;  %v809_v1 = vor.u32 %v808_v58, %v674_v43  ;;  %v810_v11 = vrot.slane %v684_v63, 1  ;;  %v423_v10 = vsel %vm9137_vm4, 0, %v422_v7  ;;  %v769_v23 = vld [vmem:[#allocation2 + $0x50] sm:$0xff]  ;;  %v9359_v48 = vld [vmem:[%s9123_s23 + $0x68] sm:$0xff]  }
  0xbc   : > { %7249 = vmatprep.subr.bf16.mxu1 %v8481_v30  ;;  %v9330_v8 = vsel %vm9179_vm10, %v807_v49, %v865_v3  ;;  %424 = vst [vmem:[#allocation2 + $0x60] sm:$0x1] %v423_v10  ;;  %v480_v19 = vsel %vm9141_vm6, 0, %v479_v15  ;;  %v688_v20 = vshrl.u32 %v9325_v2, 16  ;;  %v691_v18 = vshll.u32 %v9325_v2, 16  ;;  %v8490_v55 = vld [vmem:[#allocation12 + $0x30] sm:$0xff]  }
  0xbd   : > { %867 = vst [vmem:[#allocation4 + $0x48] sm:$0xff] %v9330_v8  ;;  %v868_v24 = vld [vmem:[#allocation4 + $0x50] sm:$0xff]  ;;  %v686_v25 = vor.u32 %v684_v63, %v683_v9  ;;  %v811_v26 = vor.u32 %v810_v11, %v681_v62  ;;  %481 = vst [vmem:[#allocation4 + $0x60] sm:$0x80] %v480_v19  ;;  %v695_v29 = vshrl.u32 %v9335_v16, 16  ;;  %v698_v31 = vshll.u32 %v9335_v16, 16 }
  0xbe   : > { %v9346_v32 = vsel %vm9169_vm9, %v679_v38, %v769_v23  ;;  %v9350_v34 = vsel %vm9179_vm10, %v809_v1, %v868_v24  ;;  %v812_v35 = vrot.slane %v691_v18, 1  ;;  %v425_v37 = vld [vmem:[#allocation2 + $0x68] sm:$0x1]  ;;  %v482_v39 = vld [vmem:[#allocation4 + $0x68] sm:$0x80]  ;;  %v702_v63 = vshrl.u32 %v9359_v48, 16 }
  0xbf   : > { %7250 = vmatpush3.bf16.msra.mxu1 %v8481_v30  ;;  %v690_v30 = vrot.slane %v688_v20, 7  ;;  %771 = vst [vmem:[#allocation2 + $0x50] sm:$0xff] %v9346_v32  ;;  %870 = vst [vmem:[#allocation4 + $0x50] sm:$0xff] %v9350_v34  ;;  %v772_v41 = vld [vmem:[#allocation2 + $0x58] sm:$0xff]  ;;  %v426_v42 = vsel %vm9137_vm4, 0, %v425_v37  ;;  %v483_v43 = vsel %vm9141_vm6, 0, %v482_v39 }
  0xc0   : > { %7251 = vmatprep.subr.bf16.mxu1 %v8484_v61  ;;  %v697_v44 = vrot.slane %v695_v29, 7  ;;  %v814_v45 = vrot.slane %v698_v31, 1  ;;  %v9364_v49 = vsel %vm9169_vm9, %v686_v25, %v772_v41  ;;  %v871_v52 = vld [vmem:[#allocation4 + $0x58] sm:$0xff]  ;;  %427 = vst [vmem:[#allocation2 + $0x68] sm:$0x1] %v426_v42  ;;  %v704_v10 = vrot.slane %v702_v63, 7 }
  0xc1   : > { %v693_v53 = vor.u32 %v691_v18, %v690_v30  ;;  %484 = vst [vmem:[#allocation4 + $0x68] sm:$0x80] %v483_v43  ;;  %v9369_v56 = vsel %vm9179_vm10, %v811_v26, %v871_v52  ;;  %774 = vst [vmem:[#allocation2 + $0x58] sm:$0xff] %v9364_v49  ;;  %v428_v58 = vld [vmem:[#allocation2 + $0x70] sm:$0x1]  ;;  %v8494_v52 = vld [vmem:[#allocation12 + $0x80] sm:$0xff]  }
  0xc2   : > { %7220 = vmatmul.mubr.bf16.gmra.mrb[8].mxu1 %v9200_v51  ;;  %v813_v51 = vor.u32 %v812_v35, %v688_v20  ;;  %873 = vst [vmem:[#allocation4 + $0x58] sm:$0xff] %v9369_v56  ;;  %v429_v59 = vsel %vm9137_vm4, 0, %v428_v58  ;;  %v485_v62 = vld [vmem:[#allocation4 + $0x70] sm:$0x80]  ;;  %v700_v38 = vor.u32 %v698_v31, %v697_v44  ;;  %v815_v1 = vor.u32 %v814_v45, %v695_v29  ;;  %v431_v19 = vld [vmem:[#allocation2 + $0x78] sm:$0x1] }
  0xc3   : > { %7223 = vmatprep.mubr.bf16.mxu1 %v9215_v6  ;;  %7252 = vmatpush3.bf16.msra.mxu1 %v8484_v61  ;;  %v705_v6 = vshll.u32 %v9359_v48, 16  ;;  %v9378_v61 = vld [vmem:[%s9123_s23 + $0x70] sm:$0xff]   ;;  %v775_v3 = vld [vmem:[#allocation2 + $0x60] sm:$0xff]  ;;  %430 = vst [vmem:[#allocation2 + $0x70] sm:$0x1] %v429_v59  ;;  %v486_v7 = vsel %vm9141_vm6, 0, %v485_v62 }
  0xc4   : > { %7253 = vmatprep.subr.bf16.mxu1 %v8487_v17  ;;  %v9384_v9 = vsel %vm9169_vm9, %v693_v53, %v775_v3  ;;  %v874_v11 = vld [vmem:[#allocation4 + $0x60] sm:$0xff]  ;;  %487 = vst [vmem:[#allocation4 + $0x70] sm:$0x80] %v486_v7  ;;  %v709_v20 = vshrl.u32 %v9378_v61, 16  ;;  %v432_v23 = vsel %vm9137_vm4, 0, %v431_v19  ;;  %v712_v25 = vshll.u32 %v9378_v61, 16 }
  0xc5   : > { %v816_v15 = vrot.slane %v705_v6, 1  ;;  %v9389_v18 = vsel %vm9179_vm10, %v813_v51, %v874_v11  ;;  %777 = vst [vmem:[#allocation2 + $0x60] sm:$0xff] %v9384_v9  ;;  %v488_v24 = vld [vmem:[#allocation4 + $0x78] sm:$0x80]  ;;  %433 = vst [vmem:[#allocation2 + $0x78] sm:$0x1] %v432_v23  ;;  %v707_v35 = vor.u32 %v705_v6, %v704_v10 }
  0xc6   : > { %876 = vst [vmem:[#allocation4 + $0x60] sm:$0xff] %v9389_v18  ;;  %v489_v26 = vsel %vm9141_vm6, 0, %v488_v24  ;;  %v8493_v29 = vld [vmem:[#allocation12 + $0x38] sm:$0xff]   ;;  %v818_v37 = vrot.slane %v712_v25, 1  ;;  %v386_v39 = vld [vmem:[#allocation2] sm:$0x1] }
  0xc7   : > { %7254 = vmatpush3.bf16.msra.mxu1 %v8487_v17  ;;  %v711_v17 = vrot.slane %v709_v20, 7  ;;  %v778_v31 = vld [vmem:[#allocation2 + $0x68] sm:$0xff]  ;;  %490 = vst [vmem:[#allocation4 + $0x78] sm:$0x80] %v489_v26  ;;  %v817_v43 = vor.u32 %v816_v15, %v702_v63  ;;  %v387_v44 = vsel %vm9137_vm4, 0, %v386_v39  ;;  %v8639_v10 = vld [vmem:[#allocation4 + $0x8] sm:$0xff] }
  0xc8   : > { %7255 = vmatprep.subr.bf16.mxu1 %v8490_v55  ;;  %v877_v30 = vld [vmem:[#allocation4 + $0x68] sm:$0xff]  ;;  %v9401_v41 = vsel %vm9169_vm9, %v700_v38, %v778_v31  ;;  %388 = vst [vmem:[#allocation2] sm:$0x1] %v387_v44  ;;  %v819_v58 = vor.u32 %v818_v37, %v709_v20  ;;  %v443_v6 = vld [vmem:[#allocation4] sm:$0x80]  ;;  %v8503_v11 = vld [vmem:[#allocation12 + $0xc8] sm:$0xff]  }
  0xc9   : > { %v9405_v42 = vsel %vm9179_vm10, %v815_v1, %v877_v30  ;;  %780 = vst [vmem:[#allocation2 + $0x68] sm:$0xff] %v9401_v41  ;;  %v714_v45 = vor.u32 %v712_v25, %v711_v17  ;;  %v444_v3 = vsel %vm9141_vm6, 0, %v443_v6  ;;  %v8497_v1 = vld [vmem:[#allocation12 + $0x98] sm:$0xff]   ;;  %v8640_v15 = vld [vmem:[#allocation4 + $0x10] sm:$0xff]  ;;  %v8504_v19 = vld [vmem:[#allocation12 + $0xd0] sm:$0xff]   ;;  %s10654_s8 = scalar_lea.vmem [#allocation17], %s6608_s1 }
  0xca   : > { %7224 = vmatmul.mubr.bf16.gmra.mrb[12].mxu1 %v9221_v13  ;;  %879 = vst [vmem:[#allocation4 + $0x68] sm:$0xff] %v9405_v42  ;;  %v781_v13 = vld [vmem:[#allocation2 + $0x70] sm:$0xff]  ;;  %445 = vst [vmem:[#allocation4] sm:$0x80] %v444_v3  ;;  %v8505_v20 = vld [vmem:[#allocation12 + $0xd8] sm:$0xff]   ;;  %s6786_s16 = sshll.u32 %s8941_s28, 12 }
  0xcb   : > { %7227 = vmatprep.mubr.bf16.mxu1 %v9259_v60  ;;  %7256 = vmatpush3.bf16.msra.mxu1 %v8490_v55  ;;  %v9414_v53 = vsel %vm9169_vm9, %v707_v35, %v781_v13  ;;  %v880_v51 = vld [vmem:[#allocation4 + $0x70] sm:$0xff]  ;;  %v8641_v23 = vld [vmem:[#allocation4 + $0x18] sm:$0xff]  ;;  %v8642_v24 = vld [vmem:[#allocation4 + $0x20] sm:$0xff]  ;;  %s6492_s11 = sshll.u32 %s10654_s8, 4  ;;  %s10774_s18 = scalar_lea.hbm %s10830_s7, %s6786_s16  ;;  %s10776_s11 = int_to_ptr.vmem [resolvable:$true] %s6492_s11 }
  0xcc   : > { %7257 = vmatprep.subr.bf16.mxu1 %v8493_v29  ;;  %v9418_v59 = vsel %vm9179_vm10, %v817_v43, %v880_v51  ;;  %783 = vst [vmem:[#allocation2 + $0x70] sm:$0xff] %v9414_v53  ;;  %v784_v60 = vld [vmem:[#allocation2 + $0x78] sm:$0xff]  ;;  %v8506_v25 = vld [vmem:[#allocation12 + $0xe0] sm:$0xff]   ;;  %v8507_v26 = vld [vmem:[#allocation12 + $0xe8] sm:$0xff]   ;;  %s6479_s28 = scalar_lea.sflag [#allocation11], %s9119_s20  ;;  %s8792_s22 = scalar_lea.vmem %s10776_s11, 4096 }
  0xcd   : > { %882 = vst [vmem:[#allocation4 + $0x70] sm:$0xff] %v9418_v59  ;;  %v9424_v55 = vsel %vm9169_vm9, %v714_v45, %v784_v60  ;;  %v8643_v17 = vld [vmem:[#allocation4 + $0x28] sm:$0xff]  ;;  %v8508_v31 = vld [vmem:[#allocation12 + $0xf0] sm:$0xff]   ;;  %v8645_v35 = vld [vmem:[#allocation4 + $0x38] sm:$0xff]  ;;  %p8793_p10 = scmp.ne.s32.totalorder %s10776_s11, %s8792_s22 }
  0xce   : > { %v883_v62 = vld [vmem:[#allocation4 + $0x78] sm:$0xff]  ;;  %786 = vst [vmem:[#allocation2 + $0x78] sm:$0xff] %v9424_v55  ;;  %v8509_v30 = vld [vmem:[#allocation12 + $0xf8] sm:$0xff]   ;;  %v8647_v44 = vld [vmem:[#allocation2 + $0x10] sm:$0xff] }
  0xcf   : > { %7258 = vmatpush3.bf16.msra.mxu1 %v8493_v29  ;;  %v9428_v63 = vsel %vm9179_vm10, %v819_v58, %v883_v62  ;;  %v889_v38 = vld [vmem:[#allocation2] sm:$0xff]  ;;  %v8515_v43 = vld [vmem:[#allocation14 + $0x14] ss:$8 sps:$4 sm:$0xff]   ;;  %v8650_v45 = vld [vmem:[#allocation2 + $0x28] sm:$0xff]  ;;  %p8794_p3 = pnand %p8793_p10, %p9068_p5 }
  0xd0   : > { %7291 = vmatprep.subr.bf16.mxu1 %v8494_v52  ;;  %885 = vst [vmem:[#allocation4 + $0x78] sm:$0xff] %v9428_v63  ;;  %v8644_v29 = vld [vmem:[#allocation4 + $0x30] sm:$0xff]  ;;  %v8651_v60 = vld [vmem:[#allocation2 + $0x30] sm:$0xff]  ;;  %v8652_v62 = vld [vmem:[#allocation2 + $0x38] sm:$0xff] }
  0xd1   : > { %v8512_v37 = vld [vmem:[#allocation14 + $0x4] ss:$8 sps:$4 sm:$0xff]   ;;  %v8510_v39 = vld [vmem:[#allocation14] ss:$8 sps:$4 sm:$0xff]   ;;  %p8795_p7 = pneg %p8794_p3 }
  0xd2   : > { %7228 = vmatmul.mubr.bf16.gmra.mrb[16].mxu1 %v9264_v0  ;;  %v8495_v0 = vld [vmem:[#allocation12 + $0x88] sm:$0xff]   ;;  %v8649_v13 = vld [vmem:[#allocation2 + $0x20] sm:$0xff] }
  0xd3   : > { %7231 = vmatprep.mubr.bf16.mxu1 %v9284_v21  ;;  %v8496_v21 = vld [vmem:[#allocation12 + $0x90] sm:$0xff]   ;;  %v8524_v51 = vld [vmem:[#allocation14 + $0x44] ss:$8 sps:$4 sm:$0xff]   ;;  %v8522_v58 = vld [vmem:[#allocation14 + $0x40] ss:$8 sps:$4 sm:$0xff]  }
  0xd4   : > { %v8530_v6 = vld [vmem:[#allocation14 + $0x64] ss:$8 sps:$4 sm:$0xff]   ;;  %v8528_v3 = vld [vmem:[#allocation14 + $0x60] ss:$8 sps:$4 sm:$0xff]  }
  0xd5   : > { %v2606_v28 = vld [vmem:[#allocation2 + $0x48] sm:$0xff] }
  0xda   : > { %7232 = vmatmul.mubr.bf16.gmra.mrb[20].mxu1 %v9300_v46  ;;  %v8498_v46 = vld [vmem:[#allocation12 + $0xa0] sm:$0xff]  }
  0xdb   : > { %7235 = vmatprep.mubr.bf16.mxu1 %v9325_v2  ;;  %v8499_v2 = vld [vmem:[#allocation12 + $0xa8] sm:$0xff]  }
  0xe2   : > { %7236 = vmatmul.mubr.bf16.gmra.mrb[24].mxu1 %v9335_v16  ;;  %v1371_v16 = vld [vmem:[#allocation4] sm:$0xff] }
  0xe3   : > { %7239 = vmatprep.mubr.bf16.mxu1 %v9359_v48 }
  0xea   : > { %7240 = vmatmul.mubr.bf16.gmra.mrb[28].mxu1 %v9378_v61 }
  0xeb   : > { %7259 = vmatprep.mubr.bf16.mxu1 %v889_v38  ;;  %v8534_v38 = vld [vmem:[#allocation14 + $0x74] ss:$8 sps:$4 sm:$0xff]  }
  0xf2   : > { %7260 = vmatmul.mubr.bf16.vlgmr.msra.gmra.mrb[0].mxu1 %v9190_v40  ;;  %v8500_v40 = vld [vmem:[#allocation12 + $0xb0] sm:$0xff]  }
  0xf3   : > { %7292 = vmatpush3.bf16.msra.mxu1 %v8494_v52  ;;  %7263 = vmatprep.mubr.bf16.mxu1 %v9206_v57  ;;  %v8501_v57 = vld [vmem:[#allocation12 + $0xb8] sm:$0xff]  }
  0xf4   : > { %7293 = vmatprep.subr.bf16.mxu1 %v8495_v0  ;;  %v8519_v52 = vld [vmem:[#allocation14 + $0x30] ss:$8 sps:$4 sm:$0xff]  }
  0xf7   : > { %7294 = vmatpush3.bf16.msra.mxu1 %v8495_v0  ;;  %v8653_v0 = vld [vmem:[#allocation2 + $0x40] sm:$0xff] }
  0xf8   : > { %7295 = vmatprep.subr.bf16.mxu1 %v8496_v21 }
  0xfa   : > { %7264 = vmatmul.mubr.bf16.gmra.mrb[4].mxu1 %v9225_v14  ;;  %v8502_v14 = vld [vmem:[#allocation12 + $0xc0] sm:$0xff]  }
  0xfb   : > { %7267 = vmatprep.mubr.bf16.mxu1 %v9239_v36  ;;  %7296 = vmatpush3.bf16.msra.mxu1 %v8496_v21  ;;  %v434_v36 = vld [vmem:[#allocation2 + $0x80] sm:$0x1]  ;;  %v8654_v21 = vld [vmem:[#allocation2 + $0x48] sm:$0xff] }
  0xfc   : > { %7297 = vmatprep.subr.bf16.mxu1 %v8497_v1 }
  0xff   : > { %7298 = vmatpush3.bf16.msra.mxu1 %v8497_v1  ;;  %v8532_v1 = vld [vmem:[#allocation14 + $0x70] ss:$8 sps:$4 sm:$0xff]  }
 0x100   : > { %7299 = vmatprep.subr.bf16.mxu1 %v8498_v46 }
 0x102   : > { %7268 = vmatmul.mubr.bf16.gmra.mrb[8].mxu1 %v9251_v50  ;;  %v435_v50 = vsel %vm9137_vm4, 0, %v434_v36  ;;  %v8542_v36 = vld [vmem:[#allocation12 + $0x178] sm:$0xff]  }
 0x103   : > { %7271 = vmatprep.mubr.bf16.mxu1 %v9274_v12  ;;  %7300 = vmatpush3.bf16.msra.mxu1 %v8498_v46  ;;  %436 = vst [vmem:[#allocation2 + $0x80] sm:$0x1] %v435_v50  ;;  %v9456_v12 = vld [vmem:[%s9123_s23 + $0x78] sm:$0xff]   ;;  %v8535_v46 = vld [vmem:[#allocation12 + $0x140] sm:$0xff]  }
 0x104   : > { %7301 = vmatprep.subr.bf16.mxu1 %v8499_v2  ;;  %v8659_v50 = vld [vmem:[%s9123_s23 + $0x18] sm:$0xff]  }
 0x107   : > { %7302 = vmatpush3.bf16.msra.mxu1 %v8499_v2  ;;  %v9487_v2 = vld [vmem:[#allocation2 + $0x88] sm:$0xff] }
 0x108   : > { %7303 = vmatprep.subr.bf16.mxu1 %v8500_v40  ;;  %10887 = vst [vmem:[#allocation27_spill] sm:$0xff] %v9487_v2 }
 0x10a   : > { %7272 = vmatmul.mubr.bf16.gmra.mrb[12].mxu1 %v9288_v27  ;;  %v716_v27 = vshrl.u32 %v9456_v12, 16  ;;  %v787_v61 = vld [vmem:[#allocation2 + $0x80] sm:$0xff] }
 0x10b   : > { %7275 = vmatprep.mubr.bf16.mxu1 %v9304_v47  ;;  %7304 = vmatpush3.bf16.msra.mxu1 %v8500_v40  ;;  %v719_v47 = vshll.u32 %v9456_v12, 16  ;;  %v8536_v40 = vld [vmem:[#allocation12 + $0x148] sm:$0xff]  }
 0x10c   : > { %7305 = vmatprep.subr.bf16.mxu1 %v8501_v57 }
 0x10f   : > { %7306 = vmatpush3.bf16.msra.mxu1 %v8501_v57  ;;  %v8656_v57 = vld [vmem:[%s9123_s23] sm:$0xff]  }
 0x110   : > { %7339 = vmatprep.subr.bf16.mxu1 %v8502_v14 }
 0x112   : > { %7276 = vmatmul.mubr.bf16.gmra.mrb[16].mxu1 %v9320_v22  ;;  %v718_v22 = vrot.slane %v716_v27, 7 }
 0x113   : > { %7279 = vmatprep.mubr.bf16.mxu1 %v9346_v32 }
 0x114   : > { %v721_v48 = vor.u32 %v719_v47, %v718_v22  ;;  %v9501_v22 = vld [vmem:[#allocation12 + $0x180] sm:$0xff]  }
 0x116   : > { %v9468_v7 = vsel %vm9169_vm9, %v721_v48, %v787_v61  ;;  %v9505_v48 = vld [vmem:[#allocation12 + $0x1c0] sm:$0xff]   ;;  %v9510_v61 = vld [vmem:[#allocation12 + $0x1c8] sm:$0xff]  }
 0x117   : > { %789 = vst [vmem:[#allocation2 + $0x80] sm:$0xff] %v9468_v7  ;;  %7483 = vmatprep.subr.bf16.mxu0 %v9505_v48 }
 0x118   : > { %7484 = vmatpush3.bf16.msra.mxu0 %v9505_v48 }
 0x119   : > { %7485 = vmatprep.subr.bf16.mxu0 %v9510_v61 }
 0x11a   : > { %7280 = vmatmul.mubr.bf16.gmra.mrb[20].mxu1 %v9364_v49 }
 0x11b   : > { %7283 = vmatprep.mubr.bf16.mxu1 %v9384_v9 }
 0x11c   : > { %7486 = vmatpush3.bf16.msra.mxu0 %v9510_v61 }
 0x122   : > { %7284 = vmatmul.mubr.bf16.gmra.mrb[24].mxu1 %v9401_v41 }
 0x123   : > { %7287 = vmatprep.mubr.bf16.mxu1 %v9414_v53 }
 0x12a   : > { %7288 = vmatmul.mubr.bf16.gmra.mrb[28].mxu1 %v9424_v55 }
 0x12b   : > { %7307 = vmatprep.mubr.bf16.mxu1 %v1371_v16  ;;  %v8660_v16 = vld [vmem:[%s9123_s23 + $0x20] sm:$0xff]  }
 0x132   : > { %7308 = vmatmul.mubr.bf16.vlgmr.msra.gmra.mrb[0].mxu1 %v8639_v10  ;;  %v9515_v10 = vld [vmem:[#allocation12 + $0x1d0] sm:$0xff]  }
 0x133   : > { %7340 = vmatpush3.bf16.msra.mxu1 %v8502_v14  ;;  %7311 = vmatprep.mubr.bf16.mxu1 %v8640_v15  ;;  %v8541_v14 = vld [vmem:[#allocation12 + $0x170] sm:$0xff]   ;;  %v9520_v15 = vld [vmem:[#allocation12 + $0x1d8] sm:$0xff]  }
 0x134   : > { %7341 = vmatprep.subr.bf16.mxu1 %v8503_v11  ;;  %7487 = vmatprep.subr.bf16.mxu0 %v9515_v10 }
 0x135   : > { %7488 = vmatpush3.bf16.msra.mxu0 %v9515_v10 }
 0x136   : > { %7489 = vmatprep.subr.bf16.mxu0 %v9520_v15 }
 0x137   : > { %7342 = vmatpush3.bf16.msra.mxu1 %v8503_v11  ;;  %v8661_v11 = vld [vmem:[%s9123_s23 + $0x28] sm:$0xff]  }
 0x138   : > { %7343 = vmatprep.subr.bf16.mxu1 %v8504_v19 }
 0x139   : > { %7490 = vmatpush3.bf16.msra.mxu0 %v9520_v15 }
 0x13a   : > { %7312 = vmatmul.mubr.bf16.gmra.mrb[4].mxu1 %v8641_v23  ;;  %v8662_v23 = vld [vmem:[%s9123_s23 + $0x30] sm:$0xff]  }
 0x13b   : > { %7315 = vmatprep.mubr.bf16.mxu1 %v8642_v24  ;;  %7344 = vmatpush3.bf16.msra.mxu1 %v8504_v19  ;;  %v491_v19 = vld [vmem:[#allocation4 + $0x80] sm:$0x80]  ;;  %v9527_v24 = vld [vmem:[#allocation12 + $0x1e0] sm:$0xff]  }
 0x13c   : > { %7345 = vmatprep.subr.bf16.mxu1 %v8505_v20  ;;  %7491 = vmatprep.subr.bf16.mxu0 %v9527_v24 }
 0x13d   : > { %7492 = vmatpush3.bf16.msra.mxu0 %v9527_v24 }
 0x13f   : > { %7346 = vmatpush3.bf16.msra.mxu1 %v8505_v20  ;;  %v492_v20 = vsel %vm9141_vm6, 0, %v491_v19 }
 0x140   : > { %7347 = vmatprep.subr.bf16.mxu1 %v8506_v25  ;;  %493 = vst [vmem:[#allocation4 + $0x80] sm:$0x80] %v492_v20 }
 0x142   : > { %7316 = vmatmul.mubr.bf16.gmra.mrb[8].mxu1 %v8643_v17 }
 0x143   : > { %7319 = vmatprep.mubr.bf16.mxu1 %v8644_v29  ;;  %7348 = vmatpush3.bf16.msra.mxu1 %v8506_v25  ;;  %v820_v25 = vrot.slane %v719_v47, 1  ;;  %v9546_v47 = vld [vmem:[#allocation12 + $0x1f0] sm:$0xff]  }
 0x144   : > { %7349 = vmatprep.subr.bf16.mxu1 %v8507_v26 }
 0x145   : > { %v821_v17 = vor.u32 %v820_v25, %v716_v27  ;;  %v9551_v27 = vld [vmem:[#allocation12 + $0x1f8] sm:$0xff]  }
 0x147   : > { %7350 = vmatpush3.bf16.msra.mxu1 %v8507_v26  ;;  %v9534_v26 = vld [vmem:[#allocation12 + $0x1e8] sm:$0xff]   ;;  %v886_v29 = vld [vmem:[#allocation4 + $0x80] sm:$0xff] }
 0x148   : > { %7351 = vmatprep.subr.bf16.mxu1 %v8508_v31  ;;  %7493 = vmatprep.subr.bf16.mxu0 %v9534_v26 }
 0x149   : > { %7494 = vmatpush3.bf16.msra.mxu0 %v9534_v26 }
 0x14a   : > { %7320 = vmatmul.mubr.bf16.gmra.mrb[12].mxu1 %v8645_v35  ;;  %7495 = vmatprep.subr.bf16.mxu0 %v9546_v47  ;;  %v8664_v35 = vld [vmem:[%s9123_s23 + $0x40] sm:$0xff]  }
 0x14b   : > { %7323 = vmatprep.mubr.bf16.mxu1 %v9311_v54  ;;  %7352 = vmatpush3.bf16.msra.mxu1 %v8508_v31  ;;  %v8646_v54 = vld [vmem:[#allocation2 + $0x8] sm:$0xff]  ;;  %v9542_v31 = vsel %vm9179_vm10, %v821_v17, %v886_v29  ;;  %v8676_v17 = vld [vmem:[#allocation4 + $0x70] sm:$0xff] }
 0x14c   : > { %7353 = vmatprep.subr.bf16.mxu1 %v8509_v30  ;;  %888 = vst [vmem:[#allocation4 + $0x80] sm:$0xff] %v9542_v31  ;;  %v8677_v29 = vld [vmem:[#allocation4 + $0x78] sm:$0xff] }
 0x14d   : > { %7496 = vmatpush3.bf16.msra.mxu0 %v9546_v47 }
 0x14e   : > { %7497 = vmatprep.subr.bf16.mxu0 %v9551_v27 }
 0x14f   : > { %7354 = vmatpush3.bf16.msra.mxu1 %v8509_v30  ;;  %v8663_v30 = vld [vmem:[%s9123_s23 + $0x38] sm:$0xff]  }
 0x150   : > { %2029 = vmatprep.subr.bf16.mxu1 %v8512_v37  ;;  %v9559_v37 = vld [vmem:[%s9123_s23 + $0x48] sm:$0xff]  }
 0x151   : > { %7498 = vmatpush3.bf16.msra.mxu0 %v9551_v27 }
 0x152   : > { %7324 = vmatmul.mubr.bf16.gmra.mrb[16].mxu1 %v9330_v8  ;;  %v8648_v8 = vld [vmem:[#allocation2 + $0x18] sm:$0xff] }
 0x153   : > { %7327 = vmatprep.mubr.bf16.mxu1 %v9350_v34  ;;  %v8513_v34 = vld [vmem:[#allocation14 + $0x10] ss:$8 sps:$4 sm:$0xff]  }
 0x15a   : > { %7328 = vmatmul.mubr.bf16.gmra.mrb[20].mxu1 %v9369_v56  ;;  %v8518_v56 = vld [vmem:[#allocation14 + $0x24] ss:$8 sps:$4 sm:$0xff]  }
 0x15b   : > { %7331 = vmatprep.mubr.bf16.mxu1 %v9389_v18  ;;  %v8516_v18 = vld [vmem:[#allocation14 + $0x20] ss:$8 sps:$4 sm:$0xff]  }
 0x162   : > { %7332 = vmatmul.mubr.bf16.gmra.mrb[24].mxu1 %v9405_v42  ;;  %v8521_v42 = vld [vmem:[#allocation14 + $0x34] ss:$8 sps:$4 sm:$0xff]  }
 0x163   : > { %7335 = vmatprep.mubr.bf16.mxu1 %v9418_v59  ;;  %v8527_v59 = vld [vmem:[#allocation14 + $0x54] ss:$8 sps:$4 sm:$0xff]  }
 0x16a   : > { %7336 = vmatmul.mubr.bf16.gmra.mrb[28].mxu1 %v9428_v63  ;;  %v8525_v63 = vld [vmem:[#allocation14 + $0x50] ss:$8 sps:$4 sm:$0xff]  }
 0x16b   : > { %7355 = vmatprep.mubr.bf16.mxu1 %v8646_v54  ;;  %v9564_v54 = vld [vmem:[%s9123_s23 + $0x50] sm:$0xff]  }
 0x172   : > { %7356 = vmatmul.mubr.bf16.vlgmr.msra.gmra.mrb[0].mxu1 %v8647_v44  ;;  %v9580_v44 = vld [vmem:[%s9123_s23 + $0x68] sm:$0xff]  }
 0x173   : > { %2030 = vmatpush1.bf16.msra.mxu1 %v8510_v39  ;;  %7359 = vmatprep.mubr.bf16.mxu1 %v8648_v8  ;;  %v9569_v39 = vld [vmem:[%s9123_s23 + $0x58] sm:$0xff]   ;;  %v437_v8 = vld [vmem:[#allocation2 + $0x88] sm:$0x1] }
 0x174   : > { %2031 = vmatprep.subr.bf16.mxu1 %v8515_v43  ;;  %v9575_v43 = vld [vmem:[%s9123_s23 + $0x60] sm:$0xff]  }
 0x177   : > { %2032 = vmatpush1.bf16.msra.mxu1 %v8513_v34  ;;  %v438_v34 = vsel %vm9137_vm4, 0, %v437_v8 }
 0x178   : > { %2033 = vmatprep.subr.bf16.mxu1 %v8518_v56  ;;  %v9587_v56 = vld [vmem:[%s9123_s23 + $0x70] sm:$0xff]   ;;  %439 = vst [vmem:[#allocation2 + $0x88] sm:$0x1] %v438_v34 }
 0x17a   : > { %7360 = vmatmul.mubr.bf16.gmra.mrb[4].mxu1 %v8649_v13  ;;  %v9594_v13 = vld [vmem:[#allocation4 + $0x18] sm:$0xff] }
 0x17b   : > { %7363 = vmatprep.mubr.bf16.mxu1 %v8650_v45  ;;  %2034 = vmatpush1.bf16.msra.mxu1 %v8516_v18  ;;  %v2325_v18 = vld [vmem:[#allocation4 + $0x8] sm:$0xff]  ;;  %v8544_v45 = vld [vmem:[#allocation12 + $0x188] sm:$0xff]  }
 0x17c   : > { %2035 = vmatprep.subr.bf16.mxu1 %v8521_v42  ;;  %v9592_v42 = vld [vmem:[#allocation4 + $0x10] sm:$0xff] }
 0x17f   : > { %2036 = vmatpush1.bf16.msra.mxu1 %v8519_v52  ;;  %v8545_v52 = vld [vmem:[#allocation12 + $0x190] sm:$0xff]  }
 0x180   : > { %2037 = vmatprep.subr.bf16.mxu1 %v8524_v51  ;;  %v9599_v51 = vld [vmem:[#allocation4 + $0x20] sm:$0xff] }
 0x182   : > { %7364 = vmatmul.mubr.bf16.gmra.mrb[8].mxu1 %v8651_v60  ;;  %v8547_v60 = vld [vmem:[#allocation12 + $0x1a0] sm:$0xff]  }
 0x183   : > { %7367 = vmatprep.mubr.bf16.mxu1 %v8652_v62  ;;  %2038 = vmatpush1.bf16.msra.mxu1 %v8522_v58  ;;  %v9601_v58 = vld [vmem:[#allocation4 + $0x28] sm:$0xff]  ;;  %v9605_v62 = vld [vmem:[#allocation4 + $0x30] sm:$0xff] }
 0x184   : > { %2039 = vmatprep.subr.bf16.mxu1 %v8527_v59  ;;  %v8546_v59 = vld [vmem:[#allocation12 + $0x198] sm:$0xff]  }
 0x187   : > { %2040 = vmatpush1.bf16.msra.mxu1 %v8525_v63  ;;  %v9607_v63 = vld [vmem:[#allocation4 + $0x38] sm:$0xff] }
 0x188   : > { %2041 = vmatprep.subr.bf16.mxu1 %v8530_v6  ;;  %v8550_v6 = vld [vmem:[#allocation12 + $0x1a8] sm:$0xff]  }
 0x18a   : > { %7368 = vmatmul.mubr.bf16.gmra.mrb[12].mxu1 %v8653_v0 }
 0x18b   : > { %7371 = vmatprep.mubr.bf16.mxu1 %v8654_v21  ;;  %2042 = vmatpush1.bf16.msra.mxu1 %v8528_v3  ;;  %v8553_v3 = vld [vmem:[#allocation12 + $0x1b0] sm:$0xff]  }
 0x18c   : > { %2043 = vmatprep.subr.bf16.mxu1 %v8534_v38 }
 0x18f   : > { %2044 = vmatpush1.bf16.msra.mxu1 %v8532_v1  ;;  %v9617_v1 = vld [vmem:[#allocation4 + $0x40] sm:$0xff] }
 0x190   : > { %7387 = vmatprep.subr.bf16.mxu1 %v8535_v46 }
 0x192   : > { %7372 = vmatmul.mubr.bf16.gmra.mrb[16].mxu1 %v9346_v32  ;;  %v8537_v32 = vld [vmem:[#allocation12 + $0x150] sm:$0xff]  }
 0x193   : > { %7375 = vmatprep.mubr.bf16.mxu1 %v9364_v49  ;;  %v8538_v49 = vld [vmem:[#allocation12 + $0x158] sm:$0xff]  }
 0x19a   : > { %7376 = vmatmul.mubr.bf16.gmra.mrb[20].mxu1 %v9384_v9  ;;  %v8657_v9 = vld [vmem:[%s9123_s23 + $0x8] sm:$0xff]  }
 0x19b   : > { %7379 = vmatprep.mubr.bf16.mxu1 %v9401_v41  ;;  %v8539_v41 = vld [vmem:[#allocation12 + $0x160] sm:$0xff]  }
 0x1a2   : > { %7380 = vmatmul.mubr.bf16.gmra.mrb[24].mxu1 %v9414_v53  ;;  %v8540_v53 = vld [vmem:[#allocation12 + $0x168] sm:$0xff]  }
 0x1a3   : > { %7383 = vmatprep.mubr.bf16.mxu1 %v9424_v55  ;;  %v9495_v55 = vld [vmem:[%s9123_s23 + $0x10] sm:$0xff]   ;;  %s8877_s23 = smov [#allocation17]  }
 0x1a4   : > { %7500 = vmatmul.mubr.bf16.vlgmr.msra.gmra.mrb[0].mxu0 %v9495_v55  ;;  %s8796_s30 = sshll.u32 %s8877_s23, 4  ;;  %s8797_s30 = int_to_ptr.vmem [resolvable:$false] %s8796_s30 }
 0x1a5   : > { %7503 = vmatprep.mubr.bf16.mxu0 %v8659_v50  ;;  %s8798_s9 = scalar_lea.vmem %s8797_s30, 8192  ;;  %p8799_p12 = scmp.lt.s32.totalorder %s10776_s11, %s8797_s30 }
 0x1a6   : > { %p8800_p1 = scmp.lt.s32.totalorder %s8798_s9, %s8792_s22 }
 0x1a8   : > { %p8801_p2 = por %p8800_p1, %p8799_p12 }
 0x1aa   : > { %7384 = vmatmul.mubr.bf16.gmra.mrb[28].mxu1 %v9468_v7  ;;  %p8802_p4 = pnand %p8801_p2, %p8795_p7 }
 0x1ab   : > { %2061 = vmatprep.mubr.bf16.mxu1 %v9487_v2 }
 0x1ac   : > { %7504 = vmatmul.mubr.bf16.gmra.mrb[4].mxu0 %v8660_v16 }
 0x1ad   : > { %7507 = vmatprep.mubr.bf16.mxu0 %v8661_v11 }
 0x1b2   : > { %2062 = vmatmul.mubr.bf16.vlgmr.msra.gmra.mrb[32].mxu1 %v8656_v57  ;;  %v8671_v57 = vld [vmem:[#allocation4 + $0x48] sm:$0xff] }
 0x1b3   : > { %7388 = vmatpush3.bf16.msra.mxu1 %v8535_v46  ;;  %2071 = vmatprep.mubr.bf16.mxu1 %v9487_v2 }
 0x1b4   : > { %7389 = vmatprep.subr.bf16.mxu1 %v8536_v40  ;;  %7508 = vmatmul.mubr.bf16.gmra.mrb[8].mxu0 %v8662_v23 }
 0x1b5   : > { %7511 = vmatprep.mubr.bf16.mxu0 %v8663_v30 }
 0x1b7   : > { %7390 = vmatpush3.bf16.msra.mxu1 %v8536_v40  ;;  %v8556_v40 = vld [vmem:[#allocation12 + $0x1b8] sm:$0xff]  }
 0x1b8   : > { %7391 = vmatprep.subr.bf16.mxu1 %v8537_v32 }
 0x1ba   : > { %2072 = vmatmul.mubr.bf16.gmra.mrb[36].mxu1 %v8657_v9 }
 0x1bb   : > { %2081 = vmatprep.mubr.bf16.mxu1 %v9487_v2  ;;  %7392 = vmatpush3.bf16.msra.mxu1 %v8537_v32 }
 0x1bc   : > { %7393 = vmatprep.subr.bf16.mxu1 %v8538_v49  ;;  %7512 = vmatmul.mubr.bf16.gmra.mrb[12].mxu0 %v8664_v35 }
 0x1bd   : > { %7595 = vmatprep.mubr.bf16.mxu0 %v9487_v2 }
 0x1bf   : > { %7394 = vmatpush3.bf16.msra.mxu1 %v8538_v49 }
 0x1c0   : > { %7395 = vmatprep.subr.bf16.mxu1 %v8539_v41 }
 0x1c2   : > { %2082 = vmatmul.mubr.bf16.gmra.mrb[40].mxu1 %v9495_v55  ;;  %v8673_v55 = vld [vmem:[#allocation4 + $0x58] sm:$0xff] }
 0x1c3   : > { %2091 = vmatprep.mubr.bf16.mxu1 %v9487_v2  ;;  %7396 = vmatpush3.bf16.msra.mxu1 %v8539_v41 }
 0x1c4   : > { %7397 = vmatprep.subr.bf16.mxu1 %v8540_v53 }
 0x1c7   : > { %7398 = vmatpush3.bf16.msra.mxu1 %v8540_v53  ;;  %v8672_v53 = vld [vmem:[#allocation4 + $0x50] sm:$0xff] }
 0x1c8   : > { %7399 = vmatprep.subr.bf16.mxu1 %v8541_v14 }
 0x1ca   : > { %2092 = vmatmul.mubr.bf16.gmra.mrb[44].mxu1 %v8659_v50 }
 0x1cb   : > { %2101 = vmatprep.mubr.bf16.mxu1 %v9487_v2  ;;  %7400 = vmatpush3.bf16.msra.mxu1 %v8541_v14 }
 0x1cc   : > { %7401 = vmatprep.subr.bf16.mxu1 %v8542_v36 }
 0x1cf   : > { %7402 = vmatpush3.bf16.msra.mxu1 %v8542_v36 }
 0x1d0   : > { %7435 = vmatprep.subr.bf16.mxu1 %v9501_v22 }
 0x1d2   : > { %2102 = vmatmul.mubr.bf16.gmra.mrb[48].mxu1 %v8660_v16  ;;  %v8674_v16 = vld [vmem:[#allocation4 + $0x60] sm:$0xff] }
 0x1d3   : > { %2111 = vmatprep.mubr.bf16.mxu1 %v9487_v2 }
 0x1da   : > { %2112 = vmatmul.mubr.bf16.gmra.mrb[52].mxu1 %v8661_v11  ;;  %v8675_v11 = vld [vmem:[#allocation4 + $0x68] sm:$0xff] }
 0x1db   : > { %2121 = vmatprep.mubr.bf16.mxu1 %v9487_v2 }
 0x1e2   : > { %2122 = vmatmul.mubr.bf16.gmra.mrb[56].mxu1 %v8662_v23 }
 0x1e3   : > { %2131 = vmatprep.mubr.bf16.mxu1 %v9487_v2 }
 0x1ea   : > { %2132 = vmatmul.mubr.bf16.gmra.mrb[60].mxu1 %v8663_v30 }
 0x1eb   : > { %2141 = vmatprep.mubr.bf16.mxu1 %v9487_v2 }
 0x1f2   : > { %2142 = vmatmul.mubr.bf16.gmra.mrb[64].mxu1 %v8664_v35 }
 0x1f3   : > { %2151 = vmatprep.mubr.bf16.mxu1 %v9487_v2 }
 0x1fa   : > { %2152 = vmatmul.mubr.bf16.gmra.mrb[68].mxu1 %v9559_v37 }
 0x1fb   : > { %2161 = vmatprep.mubr.bf16.mxu1 %v9487_v2 }
 0x202   : > { %2162 = vmatmul.mubr.bf16.gmra.mrb[72].mxu1 %v9564_v54 }
 0x203   : > { %2171 = vmatprep.mubr.bf16.mxu1 %v9487_v2 }
 0x20a   : > { %2172 = vmatmul.mubr.bf16.gmra.mrb[76].mxu1 %v9569_v39 }
 0x20b   : > { %2181 = vmatprep.mubr.bf16.mxu1 %v9487_v2 }
 0x212   : > { %2182 = vmatmul.mubr.bf16.gmra.mrb[80].mxu1 %v9575_v43 }
 0x213   : > { %2191 = vmatprep.mubr.bf16.mxu1 %v9487_v2 }
 0x21a   : > { %2192 = vmatmul.mubr.bf16.gmra.mrb[84].mxu1 %v9580_v44 }
 0x21b   : > { %2201 = vmatprep.mubr.bf16.mxu1 %v9487_v2 }
 0x222   : > { %2202 = vmatmul.mubr.bf16.gmra.mrb[88].mxu1 %v9587_v56 }
 0x223   : > { %2211 = vmatprep.mubr.bf16.mxu1 %v9487_v2 }
 0x22a   : > { %2212 = vmatmul.mubr.bf16.gmra.mrb[92].mxu1 %v9456_v12 }
 0x22b   : > { %7403 = vmatprep.mubr.bf16.mxu1 %v2325_v18  ;;  %v2599_v18 = vld [vmem:[#allocation2 + $0x10] sm:$0xff] }
 0x232   : > { %7404 = vmatmul.mubr.bf16.vlgmr.msra.gmra.mrb[96].mxu1 %v9592_v42 }
 0x233   : > { %7436 = vmatpush3.bf16.msra.mxu1 %v9501_v22  ;;  %7407 = vmatprep.mubr.bf16.mxu1 %v9594_v13 }
 0x234   : > { %7437 = vmatprep.subr.bf16.mxu1 %v8544_v45 }
 0x237   : > { %7438 = vmatpush3.bf16.msra.mxu1 %v8544_v45 }
 0x238   : > { %7439 = vmatprep.subr.bf16.mxu1 %v8545_v52 }
 0x23a   : > { %7408 = vmatmul.mubr.bf16.gmra.mrb[100].mxu1 %v9599_v51 }
 0x23b   : > { %7411 = vmatprep.mubr.bf16.mxu1 %v9601_v58  ;;  %7440 = vmatpush3.bf16.msra.mxu1 %v8545_v52 }
 0x23c   : > { %7441 = vmatprep.subr.bf16.mxu1 %v8546_v59 }
 0x23f   : > { %7442 = vmatpush3.bf16.msra.mxu1 %v8546_v59 }
 0x240   : > { %7443 = vmatprep.subr.bf16.mxu1 %v8547_v60 }
 0x242   : > { %7412 = vmatmul.mubr.bf16.gmra.mrb[104].mxu1 %v9605_v62 }
 0x243   : > { %7415 = vmatprep.mubr.bf16.mxu1 %v9607_v63  ;;  %7444 = vmatpush3.bf16.msra.mxu1 %v8547_v60  ;;  %v2600_v60 = vld [vmem:[#allocation2 + $0x18] sm:$0xff] }
 0x244   : > { %7445 = vmatprep.subr.bf16.mxu1 %v8550_v6 }
 0x245   : > { %v9611_v38 = vpop.f32.mrb[0].mxu1 }
 0x246   : > { %v9613_v0 = vpop.f32.mrb[1].mxu1 }
 0x247   : > { %v9615_v21 = vpop.f32.mrb[2].mxu1  ;;  %7446 = vmatpush3.bf16.msra.mxu1 %v8550_v6 }
 0x248   : > { %v9619_v46 = vpop.f32.mrb[3].mxu1  ;;  %7447 = vmatprep.subr.bf16.mxu1 %v8553_v3 }
 0x24a   : > { %7416 = vmatmul.mubr.bf16.gmra.mrb[108].mxu1 %v9617_v1 }
 0x24b   : > { %7419 = vmatprep.mubr.bf16.mxu1 %v8671_v57  ;;  %7448 = vmatpush3.bf16.msra.mxu1 %v8553_v3  ;;  %v2601_v3 = vld [vmem:[#allocation2 + $0x20] sm:$0xff] }
 0x24c   : > { %7449 = vmatprep.subr.bf16.mxu1 %v8556_v40 }
 0x24d   : > { %v9622_v32 = vpop.f32.mrb[4].mxu1 }
 0x24e   : > { %v9624_v49 = vpop.f32.mrb[5].mxu1 }
 0x24f   : > { %v9626_v9 = vpop.f32.mrb[6].mxu1  ;;  %7450 = vmatpush3.bf16.msra.mxu1 %v8556_v40 }
 0x250   : > { %v9628_v41 = vpop.f32.mrb[7].mxu1  ;;  %8011 = vmatprep.subr.bf16.mxu1 %v9505_v48 }
 0x252   : > { %7420 = vmatmul.mubr.bf16.gmra.mrb[112].mxu1 %v8672_v53 }
 0x253   : > { %7423 = vmatprep.mubr.bf16.mxu1 %v8673_v55  ;;  %v2602_v55 = vld [vmem:[#allocation2 + $0x28] sm:$0xff] }
 0x255   : > { %v9631_v14 = vpop.f32.mrb[8].mxu1 }
 0x256   : > { %v9633_v36 = vpop.f32.mrb[9].mxu1 }
 0x257   : > { %v9635_v50 = vpop.f32.mrb[10].mxu1 }
 0x258   : > { %v9637_v22 = vpop.f32.mrb[11].mxu1 }
 0x25a   : > { %7424 = vmatmul.mubr.bf16.gmra.mrb[116].mxu1 %v8674_v16 }
 0x25b   : > { %7427 = vmatprep.mubr.bf16.mxu1 %v8675_v11  ;;  %v2603_v11 = vld [vmem:[#allocation2 + $0x30] sm:$0xff] }
 0x25d   : > { %v9639_v19 = vpop.f32.mrb[12].mxu1 }
 0x25e   : > { %v9641_v20 = vpop.f32.mrb[13].mxu1 }
 0x25f   : > { %v9643_v23 = vpop.f32.mrb[14].mxu1 }
 0x260   : > { %v9645_v25 = vpop.f32.mrb[15].mxu1 }
 0x262   : > { %7428 = vmatmul.mubr.bf16.gmra.mrb[120].mxu1 %v8676_v17 }
 0x263   : > { %7431 = vmatprep.mubr.bf16.mxu1 %v8677_v29 }
 0x265   : > { %v9647_v30 = vpop.f32.mrb[16].mxu1 }
 0x266   : > { %v9649_v35 = vpop.f32.mrb[17].mxu1 }
 0x267   : > { %v9651_v8 = vpop.f32.mrb[18].mxu1 }
 0x268   : > { %v9653_v34 = vpop.f32.mrb[19].mxu1 }
 0x26a   : > { %7432 = vmatmul.mubr.bf16.gmra.mrb[124].mxu1 %v9542_v31 }
 0x26b   : > { %7451 = vmatprep.mubr.bf16.mxu1 %v2599_v18  ;;  %v2604_v18 = vld [vmem:[#allocation2 + $0x38] sm:$0xff] }
 0x26d   : > { %v9656_v45 = vpop.f32.mrb[20].mxu1 }
 0x26e   : > { %v9658_v52 = vpop.f32.mrb[21].mxu1 }
 0x26f   : > { %v9660_v59 = vpop.f32.mrb[22].mxu1 }
 0x270   : > { %v9662_v6 = vpop.f32.mrb[23].mxu1 }
 0x272   : > { %7452 = vmatmul.mubr.bf16.vlgmr.msra.gmra.mrb[128].mxu1 %v2600_v60  ;;  %v2605_v60 = vld [vmem:[#allocation2 + $0x40] sm:$0xff] }
 0x273   : > { %8019 = vmatpush3.bf16.msra.mxu1 %v9505_v48  ;;  %7455 = vmatprep.mubr.bf16.mxu1 %v2601_v3  ;;  %v494_v3 = vld [vmem:[#allocation4 + $0x88] sm:$0x80] }
 0x274   : > { %8012 = vmatprep.subr.bf16.mxu1 %v9510_v61 }
 0x275   : > { %v9666_v40 = vpop.f32.mrb[24].mxu1 }
 0x276   : > { %v9668_v57 = vpop.f32.mrb[25].mxu1 }
 0x277   : > { %v9670_v53 = vpop.f32.mrb[26].mxu1  ;;  %8020 = vmatpush3.bf16.msra.mxu1 %v9510_v61 }
 0x278   : > { %v9673_v16 = vpop.f32.mrb[27].mxu1  ;;  %8013 = vmatprep.subr.bf16.mxu1 %v9515_v10 }
 0x27a   : > { %7456 = vmatmul.mubr.bf16.gmra.mrb[132].mxu1 %v2602_v55 }
 0x27b   : > { %7459 = vmatprep.mubr.bf16.mxu1 %v2603_v11  ;;  %8021 = vmatpush3.bf16.msra.mxu1 %v9515_v10  ;;  %v495_v10 = vsel %vm9141_vm6, 0, %v494_v3 }
 0x27c   : > { %8014 = vmatprep.subr.bf16.mxu1 %v9520_v15  ;;  %496 = vst [vmem:[#allocation4 + $0x88] sm:$0x80] %v495_v10 }
 0x27d   : > { %v9678_v48 = vpop.f32.mrb[28].mxu1 }
 0x27e   : > { %v9680_v17 = vpop.f32.mrb[29].mxu1 }
 0x27f   : > { %v9682_v29 = vpop.f32.mrb[30].mxu1  ;;  %8022 = vmatpush3.bf16.msra.mxu1 %v9520_v15 }
 0x280   : > { %v9685_v61 = vpop.f32.mrb[31].mxu1  ;;  %8015 = vmatprep.subr.bf16.mxu1 %v9527_v24 }
 0x282   : > { %7460 = vmatmul.mubr.bf16.gmra.mrb[136].mxu1 %v2604_v18 }
 0x283   : > { %7463 = vmatprep.mubr.bf16.mxu1 %v2605_v60  ;;  %8023 = vmatpush3.bf16.msra.mxu1 %v9527_v24  ;;  %v2607_v60 = vld [vmem:[#allocation2 + $0x50] sm:$0xff]  ;;  %v8559_v24 = vld [vmem:[#allocation12 + $0x200] sm:$0xff]  }
 0x284   : > { %8016 = vmatprep.subr.bf16.mxu1 %v9534_v26 }
 0x285   : > { %v2063_v55 = vpop.f32.mrb[32].mxu1 }
 0x286   : > { %v9693_v11 = vadd.f32 %v2063_v55, %v9613_v0  ;;  %v9695_v15 = vpop.f32.mrb[33].mxu1  ;;  %v2609_v55 = vld [vmem:[#allocation2 + $0x60] sm:$0xff] }
 0x287   : > { %10888 = vst [vmem:[#allocation28_spill] sm:$0xff] %v9695_v15  ;;  %v2067_v33 = vpop.f32.mrb[34].mxu1  ;;  %8024 = vmatpush3.bf16.msra.mxu1 %v9534_v26 }
 0x288   : > { %v9699_v5 = vadd.f32 %v2067_v33, %v9619_v46  ;;  %v9701_v18 = vpop.f32.mrb[35].mxu1  ;;  %8017 = vmatprep.subr.bf16.mxu1 %v9546_v47  ;;  %v2608_v46 = vld [vmem:[#allocation2 + $0x58] sm:$0xff] }
 0x289   : > { %10889 = vst [vmem:[#allocation29_spill] sm:$0xff] %v9701_v18  ;;  %v2610_v18 = vld [vmem:[#allocation2 + $0x68] sm:$0xff] }
 0x28a   : > { %7464 = vmatmul.mubr.bf16.gmra.mrb[140].mxu1 %v2606_v28 }
 0x28b   : > { %7467 = vmatprep.mubr.bf16.mxu1 %v2607_v60  ;;  %8025 = vmatpush3.bf16.msra.mxu1 %v9546_v47 }
 0x28c   : > { %8018 = vmatprep.subr.bf16.mxu1 %v9551_v27 }
 0x28d   : > { %v2073_v0 = vpop.f32.mrb[36].mxu1 }
 0x28e   : > { %v9707_v3 = vadd.f32 %v9611_v38, %v2073_v0  ;;  %v9709_v26 = vpop.f32.mrb[37].mxu1 }
 0x28f   : > { %10890 = vst [vmem:[#allocation30_spill] sm:$0xff] %v9709_v26  ;;  %v2077_v33 = vpop.f32.mrb[38].mxu1  ;;  %8026 = vmatpush3.bf16.msra.mxu1 %v9551_v27 }
 0x290   : > { %v9713_v10 = vadd.f32 %v9615_v21, %v2077_v33  ;;  %v9715_v28 = vpop.f32.mrb[39].mxu1  ;;  %7531 = vmatprep.subr.bf16.mxu1 %v8559_v24  ;;  %v2611_v21 = vld [vmem:[#allocation2 + $0x70] sm:$0xff] }
 0x291   : > { %10891 = vst [vmem:[#allocation31_spill] sm:$0xff] %v9715_v28 }
 0x292   : > { %7468 = vmatmul.mubr.bf16.gmra.mrb[144].mxu1 %v2608_v46 }
 0x293   : > { %7471 = vmatprep.mubr.bf16.mxu1 %v2609_v55 }
 0x295   : > { %v2083_v47 = vpop.f32.mrb[40].mxu1 }
 0x296   : > { %v9718_v60 = vadd.f32 %v2083_v47, %v9624_v49  ;;  %v9720_v38 = vpop.f32.mrb[41].mxu1  ;;  %v2612_v47 = vld [vmem:[#allocation2 + $0x78] sm:$0xff] }
 0x297   : > { %10892 = vst [vmem:[#allocation32_spill] sm:$0xff] %v9720_v38  ;;  %v2087_v0 = vpop.f32.mrb[42].mxu1 }
 0x298   : > { %v9723_v15 = vadd.f32 %v2087_v0, %v9628_v41  ;;  %v9725_v27 = vpop.f32.mrb[43].mxu1 }
 0x299   : > { %10893 = vst [vmem:[#allocation33_spill] sm:$0xff] %v9725_v27 }
 0x29a   : > { %7472 = vmatmul.mubr.bf16.gmra.mrb[148].mxu1 %v2610_v18 }
 0x29b   : > { %7475 = vmatprep.mubr.bf16.mxu1 %v2611_v21  ;;  %v2614_v21 = vld [vmem:[#allocation2 + $0x88] sm:$0xff] }
 0x29d   : > { %v2093_v33 = vpop.f32.mrb[44].mxu1 }
 0x29e   : > { %v9728_v46 = vadd.f32 %v9622_v32, %v2093_v33  ;;  %v9730_v55 = vpop.f32.mrb[45].mxu1 }
 0x29f   : > { %10894 = vst [vmem:[#allocation34_spill] sm:$0xff] %v9730_v55  ;;  %v2097_v49 = vpop.f32.mrb[46].mxu1 }
 0x2a0   : > { %v9733_v38 = vadd.f32 %v9626_v9, %v2097_v49  ;;  %v9735_v28 = vpop.f32.mrb[47].mxu1 }
 0x2a1   : > { %10895 = vst [vmem:[#allocation35_spill] sm:$0xff] %v9735_v28 }
 0x2a2   : > { %7476 = vmatmul.mubr.bf16.gmra.mrb[152].mxu1 %v2612_v47 }
 0x2a3   : > { %7479 = vmatprep.mubr.bf16.mxu1 %v9468_v7 }
 0x2a5   : > { %v2103_v41 = vpop.f32.mrb[48].mxu1 }
 0x2a6   : > { %v9739_v18 = vadd.f32 %v2103_v41, %v9633_v36  ;;  %v9741_v0 = vpop.f32.mrb[49].mxu1 }
 0x2a7   : > { %10896 = vst [vmem:[#allocation36_spill] sm:$0xff] %v9741_v0  ;;  %v2107_v32 = vpop.f32.mrb[50].mxu1  ;;  %v8560_v0 = vld [vmem:[#allocation12 + $0x208] sm:$0xff]  }
 0x2a8   : > { %v9744_v33 = vadd.f32 %v2107_v32, %v9637_v22  ;;  %v9746_v27 = vpop.f32.mrb[51].mxu1 }
 0x2a9   : > { %10897 = vst [vmem:[#allocation37_spill] sm:$0xff] %v9746_v27 }
 0x2aa   : > { %7480 = vmatmul.mubr.bf16.gmra.mrb[156].mxu1 %v2614_v21 }
 0x2ab   : > { %7515 = vmatprep.mubr.bf16.mxu1 %v9559_v37  ;;  %v8561_v37 = vld [vmem:[#allocation12 + $0x210] sm:$0xff]  }
 0x2ad   : > { %v2113_v9 = vpop.f32.mrb[52].mxu1 }
 0x2ae   : > { %v9750_v49 = vadd.f32 %v9631_v14, %v2113_v9  ;;  %v9752_v7 = vpop.f32.mrb[53].mxu1 }
 0x2af   : > { %10898 = vst [vmem:[#allocation38_spill] sm:$0xff] %v9752_v7  ;;  %v2117_v36 = vpop.f32.mrb[54].mxu1  ;;  %v3155_v7 = vld [vmem:[#allocation4 + $0x50] sm:$0xff] }
 0x2b0   : > { %v9755_v47 = vadd.f32 %v9635_v50, %v2117_v36  ;;  %v9757_v41 = vpop.f32.mrb[55].mxu1 }
 0x2b1   : > { %10899 = vst [vmem:[#allocation39_spill] sm:$0xff] %v9757_v41 }
 0x2b2   : > { %7516 = vmatmul.mubr.bf16.vlgmr.msra.gmra.mrb[160].mxu1 %v9564_v54  ;;  %v8562_v54 = vld [vmem:[#allocation12 + $0x218] sm:$0xff]  }
 0x2b3   : > { %7532 = vmatpush3.bf16.msra.mxu1 %v8559_v24  ;;  %7519 = vmatprep.mubr.bf16.mxu1 %v9569_v39  ;;  %v8563_v39 = vld [vmem:[#allocation12 + $0x220] sm:$0xff]  }
 0x2b4   : > { %7533 = vmatprep.subr.bf16.mxu1 %v8560_v0 }
 0x2b5   : > { %v2123_v22 = vpop.f32.mrb[56].mxu1 }
 0x2b6   : > { %v9762_v14 = vadd.f32 %v2123_v22, %v9641_v20  ;;  %v9764_v32 = vpop.f32.mrb[57].mxu1 }
 0x2b7   : > { %10900 = vst [vmem:[#allocation40_spill] sm:$0xff] %v9764_v32  ;;  %v2127_v21 = vpop.f32.mrb[58].mxu1  ;;  %7534 = vmatpush3.bf16.msra.mxu1 %v8560_v0 }
 0x2b8   : > { %v9767_v50 = vadd.f32 %v2127_v21, %v9645_v25  ;;  %v9769_v9 = vpop.f32.mrb[59].mxu1  ;;  %7535 = vmatprep.subr.bf16.mxu1 %v8561_v37 }
 0x2b9   : > { %10901 = vst [vmem:[#allocation41_spill] sm:$0xff] %v9769_v9 }
 0x2ba   : > { %7520 = vmatmul.mubr.bf16.gmra.mrb[164].mxu1 %v9575_v43  ;;  %v8564_v43 = vld [vmem:[#allocation12 + $0x228] sm:$0xff]  }
 0x2bb   : > { %7536 = vmatpush3.bf16.msra.mxu1 %v8561_v37  ;;  %7523 = vmatprep.mubr.bf16.mxu1 %v9580_v44  ;;  %v8565_v44 = vld [vmem:[#allocation12 + $0x230] sm:$0xff]  }
 0x2bc   : > { %7537 = vmatprep.subr.bf16.mxu1 %v8562_v54 }
 0x2bd   : > { %v2133_v20 = vpop.f32.mrb[60].mxu1 }
 0x2be   : > { %v9774_v24 = vadd.f32 %v9639_v19, %v2133_v20  ;;  %v9776_v36 = vpop.f32.mrb[61].mxu1 }
 0x2bf   : > { %10902 = vst [vmem:[#allocation42_spill] sm:$0xff] %v9776_v36  ;;  %v2137_v0 = vpop.f32.mrb[62].mxu1  ;;  %7538 = vmatpush3.bf16.msra.mxu1 %v8562_v54 }
 0x2c0   : > { %v9779_v25 = vadd.f32 %v9643_v23, %v2137_v0  ;;  %v9781_v22 = vpop.f32.mrb[63].mxu1  ;;  %7539 = vmatprep.subr.bf16.mxu1 %v8563_v39  ;;  %v9790_v23 = vpop.f32.mrb[0].mxu0 }
 0x2c1   : > { %10903 = vst [vmem:[#allocation43_spill] sm:$0xff] %v9781_v22 }
 0x2c2   : > { %7524 = vmatmul.mubr.bf16.gmra.mrb[168].mxu1 %v9587_v56  ;;  %v8566_v56 = vld [vmem:[#allocation12 + $0x238] sm:$0xff]  }
 0x2c3   : > { %7540 = vmatpush3.bf16.msra.mxu1 %v8563_v39  ;;  %7527 = vmatprep.mubr.bf16.mxu1 %v9456_v12  ;;  %v9797_v12 = vpop.f32.mrb[1].mxu0 }
 0x2c4   : > { %7541 = vmatprep.subr.bf16.mxu1 %v8564_v43  ;;  %v9799_v39 = vpop.f32.mrb[2].mxu0 }
 0x2c5   : > { %v2143_v19 = vpop.f32.mrb[64].mxu1 }
 0x2c6   : > { %v9786_v37 = vadd.f32 %v2143_v19, %v9649_v35  ;;  %v9788_v21 = vpop.f32.mrb[65].mxu1  ;;  %v9802_v35 = vpop.f32.mrb[3].mxu0 }
 0x2c7   : > { %10904 = vst [vmem:[#allocation44_spill] sm:$0xff] %v9788_v21  ;;  %v2147_v54 = vpop.f32.mrb[66].mxu1  ;;  %7542 = vmatpush3.bf16.msra.mxu1 %v8564_v43 }
 0x2c8   : > { %v9793_v20 = vadd.f32 %v2147_v54, %v9653_v34  ;;  %v9795_v0 = vpop.f32.mrb[67].mxu1  ;;  %7543 = vmatprep.subr.bf16.mxu1 %v8565_v44 }
 0x2c9   : > { %10905 = vst [vmem:[#allocation45_spill] sm:$0xff] %v9795_v0  ;;  %v9810_v0 = vpop.f32.mrb[4].mxu0 }
 0x2ca   : > { %7528 = vmatmul.mubr.bf16.gmra.mrb[172].mxu1 %v9487_v2  ;;  %v9817_v22 = vpop.f32.mrb[5].mxu0 }
 0x2cb   : > { %7544 = vmatpush3.bf16.msra.mxu1 %v8565_v44  ;;  %7547 = vmatprep.mubr.bf16.mxu1 %v9592_v42  ;;  %v9819_v44 = vpop.f32.mrb[6].mxu0 }
 0x2cc   : > { %7545 = vmatprep.subr.bf16.mxu1 %v8566_v56  ;;  %v9822_v42 = vpop.f32.mrb[7].mxu0 }
 0x2cd   : > { %v2153_v43 = vpop.f32.mrb[68].mxu1 }
 0x2ce   : > { %v9806_v34 = vadd.f32 %v9647_v30, %v2153_v43  ;;  %v9808_v19 = vpop.f32.mrb[69].mxu1 }
 0x2cf   : > { %10906 = vst [vmem:[#allocation46_spill] sm:$0xff] %v9808_v19  ;;  %v2157_v54 = vpop.f32.mrb[70].mxu1  ;;  %7546 = vmatpush3.bf16.msra.mxu1 %v8566_v56 }
 0x2d0   : > { %v9813_v21 = vadd.f32 %v9651_v8, %v2157_v54  ;;  %v9815_v9 = vpop.f32.mrb[71].mxu1  ;;  %v9830_v54 = vpop.f32.mrb[8].mxu0 }
 0x2d1   : > { %10907 = vst [vmem:[#allocation47_spill] sm:$0xff] %v9815_v9  ;;  %v9837_v32 = vpop.f32.mrb[9].mxu0 }
 0x2d2   : > { %7548 = vmatmul.mubr.bf16.vlgmr.msra.gmra.mrb[176].mxu1 %v9594_v13  ;;  %v9839_v13 = vpop.f32.mrb[10].mxu0 }
 0x2d3   : > { %7551 = vmatprep.mubr.bf16.mxu1 %v9599_v51  ;;  %v9842_v51 = vpop.f32.mrb[11].mxu0 }
 0x2d5   : > { %v2163_v30 = vpop.f32.mrb[72].mxu1 }
 0x2d6   : > { %v9826_v56 = vadd.f32 %v2163_v30, %v9658_v52  ;;  %v9828_v43 = vpop.f32.mrb[73].mxu1 }
 0x2d7   : > { %10908 = vst [vmem:[#allocation48_spill] sm:$0xff] %v9828_v43  ;;  %v2167_v8 = vpop.f32.mrb[74].mxu1 }
 0x2d8   : > { %v9833_v9 = vadd.f32 %v2167_v8, %v9662_v6  ;;  %v9835_v19 = vpop.f32.mrb[75].mxu1  ;;  %v9850_v8 = vpop.f32.mrb[12].mxu0 }
 0x2d9   : > { %10909 = vst [vmem:[#allocation49_spill] sm:$0xff] %v9835_v19  ;;  %v9857_v27 = vpop.f32.mrb[13].mxu0 }
 0x2da   : > { %7552 = vmatmul.mubr.bf16.gmra.mrb[180].mxu1 %v9601_v58  ;;  %v9859_v58 = vpop.f32.mrb[14].mxu0 }
 0x2db   : > { %7555 = vmatprep.mubr.bf16.mxu1 %v9605_v62  ;;  %v9862_v62 = vpop.f32.mrb[15].mxu0 }
 0x2dd   : > { %v2173_v52 = vpop.f32.mrb[76].mxu1 }
 0x2de   : > { %v9846_v30 = vadd.f32 %v9656_v45, %v2173_v52  ;;  %v9848_v43 = vpop.f32.mrb[77].mxu1 }
 0x2df   : > { %10910 = vst [vmem:[#allocation50_spill] sm:$0xff] %v9848_v43  ;;  %v2177_v6 = vpop.f32.mrb[78].mxu1 }
 0x2e0   : > { %v9853_v19 = vadd.f32 %v9660_v59, %v2177_v6  ;;  %v9855_v36 = vpop.f32.mrb[79].mxu1  ;;  %v3154_v6 = vld [vmem:[#allocation4 + $0x48] sm:$0xff] }
 0x2e1   : > { %10911 = vst [vmem:[#allocation51_spill] sm:$0xff] %v9855_v36 }
 0x2e2   : > { %7556 = vmatmul.mubr.bf16.gmra.mrb[184].mxu1 %v9607_v63 }
 0x2e3   : > { %7559 = vmatprep.mubr.bf16.mxu1 %v9617_v1 }
 0x2e5   : > { %v2183_v45 = vpop.f32.mrb[80].mxu1 }
 0x2e6   : > { %v9866_v52 = vadd.f32 %v2183_v45, %v9668_v57  ;;  %v9868_v43 = vpop.f32.mrb[81].mxu1  ;;  %v3156_v45 = vld [vmem:[#allocation4 + $0x58] sm:$0xff] }
 0x2e7   : > { %10912 = vst [vmem:[#allocation52_spill] sm:$0xff] %v9868_v43  ;;  %v2187_v59 = vpop.f32.mrb[82].mxu1 }
 0x2e8   : > { %v9871_v36 = vadd.f32 %v2187_v59, %v9673_v16  ;;  %v9873_v41 = vpop.f32.mrb[83].mxu1  ;;  %v3157_v16 = vld [vmem:[#allocation4 + $0x60] sm:$0xff] }
 0x2e9   : > { %10913 = vst [vmem:[#allocation53_spill] sm:$0xff] %v9873_v41 }
 0x2ea   : > { %7560 = vmatmul.mubr.bf16.gmra.mrb[188].mxu1 %v3154_v6 }
 0x2eb   : > { %7563 = vmatprep.mubr.bf16.mxu1 %v3155_v7 }
 0x2ed   : > { %v2193_v63 = vpop.f32.mrb[84].mxu1 }
 0x2ee   : > { %v9876_v28 = vadd.f32 %v9666_v40, %v2193_v63  ;;  %v9878_v1 = vpop.f32.mrb[85].mxu1  ;;  %v3158_v63 = vld [vmem:[#allocation4 + $0x68] sm:$0xff] }
 0x2ef   : > { %10914 = vst [vmem:[#allocation54_spill] sm:$0xff] %v9878_v1  ;;  %v2197_v57 = vpop.f32.mrb[86].mxu1 }
 0x2f0   : > { %v9881_v43 = vadd.f32 %v9670_v53, %v2197_v57  ;;  %v9883_v55 = vpop.f32.mrb[87].mxu1  ;;  %v3159_v53 = vld [vmem:[#allocation4 + $0x70] sm:$0xff] }
 0x2f1   : > { %10915 = vst [vmem:[#allocation55_spill] sm:$0xff] %v9883_v55 }
 0x2f2   : > { %7564 = vmatmul.mubr.bf16.gmra.mrb[192].mxu1 %v3156_v45 }
 0x2f3   : > { %7567 = vmatprep.mubr.bf16.mxu1 %v3157_v16 }
 0x2f5   : > { %v2203_v59 = vpop.f32.mrb[88].mxu1 }
 0x2f6   : > { %v9886_v6 = vadd.f32 %v2203_v59, %v9680_v17  ;;  %v9888_v7 = vpop.f32.mrb[89].mxu1  ;;  %v3160_v59 = vld [vmem:[#allocation4 + $0x78] sm:$0xff] }
 0x2f7   : > { %10916 = vst [vmem:[#allocation56_spill] sm:$0xff] %v9888_v7  ;;  %v2207_v40 = vpop.f32.mrb[90].mxu1 }
 0x2f8   : > { %v9891_v41 = vadd.f32 %v2207_v40, %v9685_v61  ;;  %v9893_v1 = vpop.f32.mrb[91].mxu1 }
 0x2f9   : > { %10917 = vst [vmem:[#allocation57_spill] sm:$0xff] %v9893_v1 }
 0x2fa   : > { %7568 = vmatmul.mubr.bf16.gmra.mrb[196].mxu1 %v3158_v63 }
 0x2fb   : > { %7571 = vmatprep.mubr.bf16.mxu1 %v3159_v53 }
 0x2fd   : > { %v2213_v57 = vpop.f32.mrb[92].mxu1 }
 0x2fe   : > { %v9896_v45 = vadd.f32 %v9678_v48, %v2213_v57  ;;  %v9898_v16 = vpop.f32.mrb[93].mxu1  ;;  %v3162_v57 = vld [vmem:[#allocation4 + $0x88] sm:$0xff] }
 0x2ff   : > { %10918 = vst [vmem:[#allocation58_spill] sm:$0xff] %v9898_v16  ;;  %v2217_v17 = vpop.f32.mrb[94].mxu1  ;;  %v3519_v16 = vld [vmem:[#allocation5 + $0x8] sm:$0x1] }
 0x300   : > { %v9901_v7 = vadd.f32 %v9682_v29, %v2217_v17  ;;  %v9903_v55 = vpop.f32.mrb[95].mxu1 }
 0x301   : > { %10919 = vst [vmem:[#allocation59_spill] sm:$0xff] %v9903_v55 }
 0x302   : > { %7572 = vmatmul.mubr.bf16.gmra.mrb[200].mxu1 %v3160_v59 }
 0x303   : > { %7575 = vmatprep.mubr.bf16.mxu1 %v9542_v31 }
 0x305   : > { %v7405_v61 = vpop.f32.mrb[96].mxu1 }
 0x306   : > { %v9907_v40 = vadd.f32 %v7405_v61, %v9707_v3  ;;  %v2439_v63 = vpop.f32.mrb[97].mxu1 }
 0x307   : > { %v9910_v48 = vadd.f32 %v2439_v63, %v9693_v11  ;;  %v7406_v53 = vpop.f32.mrb[98].mxu1  ;;  %v8567_v63 = vld [vmem:[#allocation15 + $0x40] sm:$0xff]  }
 0x308   : > { %v9913_v1 = vadd.f32 %v7406_v53, %v9713_v10  ;;  %v2442_v29 = vpop.f32.mrb[99].mxu1  ;;  %7579 = vmatprep.subr.bf16.mxu0 %v8567_v63 }
 0x309   : > { %v9916_v17 = vadd.f32 %v2442_v29, %v9699_v5  ;;  %7580 = vmatpush3.bf16.msra.mxu0 %v8567_v63  ;;  %v8568_v5 = vld [vmem:[#allocation15 + $0x48] sm:$0xff]   ;;  %v8570_v63 = vld [vmem:[#allocation15 + $0x58] sm:$0xff]  }
 0x30a   : > { %7576 = vmatmul.mubr.bf16.gmra.mrb[204].mxu1 %v3162_v57  ;;  %7581 = vmatprep.subr.bf16.mxu0 %v8568_v5 }
 0x30d   : > { %v7409_v59 = vpop.f32.mrb[100].mxu1  ;;  %7582 = vmatpush3.bf16.msra.mxu0 %v8568_v5 }
 0x30e   : > { %v9919_v31 = vadd.f32 %v7409_v59, %v9728_v46  ;;  %v2455_v3 = vpop.f32.mrb[101].mxu1 }
 0x30f   : > { %v9922_v61 = vadd.f32 %v2455_v3, %v9718_v60  ;;  %v7410_v11 = vpop.f32.mrb[102].mxu1 }
 0x310   : > { %v9925_v55 = vadd.f32 %v7410_v11, %v9733_v38  ;;  %v2458_v10 = vpop.f32.mrb[103].mxu1  ;;  %v8569_v38 = vld [vmem:[#allocation15 + $0x50] sm:$0xff]  }
 0x311   : > { %v9928_v53 = vadd.f32 %v2458_v10, %v9723_v15  ;;  %7583 = vmatprep.subr.bf16.mxu0 %v8569_v38 }
 0x312   : > { %7584 = vmatpush3.bf16.msra.mxu0 %v8569_v38  ;;  %v8572_v38 = vld [vmem:[#allocation15 + $0x68] sm:$0xff]  }
 0x313   : > { %7585 = vmatprep.subr.bf16.mxu0 %v8570_v63 }
 0x315   : > { %v7413_v57 = vpop.f32.mrb[104].mxu1 }
 0x316   : > { %v9931_v46 = vadd.f32 %v7413_v57, %v9750_v49  ;;  %v2471_v29 = vpop.f32.mrb[105].mxu1  ;;  %7586 = vmatpush3.bf16.msra.mxu0 %v8570_v63 }
 0x317   : > { %v9934_v60 = vadd.f32 %v2471_v29, %v9739_v18  ;;  %v7414_v59 = vpop.f32.mrb[106].mxu1 }
 0x318   : > { %v9937_v3 = vadd.f32 %v7414_v59, %v9755_v47  ;;  %v2474_v15 = vpop.f32.mrb[107].mxu1  ;;  %v8571_v47 = vld [vmem:[#allocation15 + $0x60] sm:$0xff]  }
 0x319   : > { %v9940_v11 = vadd.f32 %v2474_v15, %v9744_v33  ;;  %7587 = vmatprep.subr.bf16.mxu0 %v8571_v47 }
 0x31a   : > { %7588 = vmatpush3.bf16.msra.mxu0 %v8571_v47  ;;  %v8574_v47 = vld [vmem:[#allocation15 + $0x78] sm:$0xff]  }
 0x31b   : > { %7589 = vmatprep.subr.bf16.mxu0 %v8572_v38 }
 0x31d   : > { %v7417_v10 = vpop.f32.mrb[108].mxu1 }
 0x31e   : > { %v9943_v49 = vadd.f32 %v7417_v10, %v9774_v24  ;;  %v2487_v5 = vpop.f32.mrb[109].mxu1  ;;  %7590 = vmatpush3.bf16.msra.mxu0 %v8572_v38 }
 0x31f   : > { %v9946_v18 = vadd.f32 %v2487_v5, %v9762_v14  ;;  %v7418_v57 = vpop.f32.mrb[110].mxu1 }
 0x320   : > { %v9949_v29 = vadd.f32 %v7418_v57, %v9779_v25  ;;  %v2490_v33 = vpop.f32.mrb[111].mxu1  ;;  %v8573_v25 = vld [vmem:[#allocation15 + $0x70] sm:$0xff]  }
 0x321   : > { %v9952_v59 = vadd.f32 %v2490_v33, %v9767_v50  ;;  %7591 = vmatprep.subr.bf16.mxu0 %v8573_v25  ;;  %v3522_v33 = vld [vmem:[#allocation5 + $0x10] sm:$0x1] }
 0x322   : > { %7592 = vmatpush3.bf16.msra.mxu0 %v8573_v25  ;;  %v3523_v38 = vsel %vm9137_vm4, 0, %v3522_v33  ;;  %v3573_v25 = vld [vmem:[#allocation7 + $0x8] sm:$0x80] }
 0x323   : > { %7593 = vmatprep.subr.bf16.mxu0 %v8574_v47  ;;  %3524 = vst [vmem:[#allocation5 + $0x10] sm:$0x1] %v3523_v38  ;;  %v3528_v38 = vld [vmem:[#allocation5 + $0x20] sm:$0x1] }
 0x325   : > { %v7421_v15 = vpop.f32.mrb[112].mxu1 }
 0x326   : > { %v9955_v24 = vadd.f32 %v7421_v15, %v9806_v34  ;;  %v2503_v63 = vpop.f32.mrb[113].mxu1  ;;  %v3576_v34 = vld [vmem:[#allocation7 + $0x10] sm:$0x80]  ;;  %7594 = vmatpush3.bf16.msra.mxu0 %v8574_v47 }
 0x327   : > { %v9958_v14 = vadd.f32 %v2503_v63, %v9786_v37  ;;  %v7422_v10 = vpop.f32.mrb[114].mxu1  ;;  %v3577_v63 = vsel %vm9141_vm6, 0, %v3576_v34  ;;  %v3574_v34 = vsel %vm9141_vm6, 0, %v3573_v25  ;;  %v3579_v25 = vld [vmem:[#allocation7 + $0x18] sm:$0x80] }
 0x328   : > { %v9961_v5 = vadd.f32 %v7422_v10, %v9813_v21  ;;  %v2506_v50 = vpop.f32.mrb[115].mxu1  ;;  %3578 = vst [vmem:[#allocation7 + $0x10] sm:$0x80] %v3577_v63  ;;  %3575 = vst [vmem:[#allocation7 + $0x8] sm:$0x80] %v3574_v34 }
 0x329   : > { %v9964_v57 = vadd.f32 %v2506_v50, %v9793_v20  ;;  %v3520_v20 = vsel %vm9137_vm4, 0, %v3519_v16  ;;  %v3582_v16 = vld [vmem:[#allocation7 + $0x20] sm:$0x80] }
 0x32a   : > { %3521 = vst [vmem:[#allocation5 + $0x8] sm:$0x1] %v3520_v20  ;;  %v3583_v47 = vsel %vm9141_vm6, 0, %v3582_v16 }
 0x32b   : > { %3584 = vst [vmem:[#allocation7 + $0x20] sm:$0x80] %v3583_v47 }
 0x32d   : > { %v7425_v15 = vpop.f32.mrb[116].mxu1 }
 0x32e   : > { %v9971_v21 = vadd.f32 %v7425_v15, %v9846_v30  ;;  %v2519_v10 = vpop.f32.mrb[117].mxu1 }
 0x32f   : > { %v9976_v50 = vadd.f32 %v2519_v10, %v9826_v56  ;;  %v7426_v33 = vpop.f32.mrb[118].mxu1  ;;  %v3529_v56 = vsel %vm9137_vm4, 0, %v3528_v38 }
 0x330   : > { %v9981_v26 = vadd.f32 %v7426_v33, %v9853_v19  ;;  %v2522_v30 = vpop.f32.mrb[119].mxu1  ;;  %3530 = vst [vmem:[#allocation5 + $0x20] sm:$0x1] %v3529_v56  ;;  %v3525_v19 = vld [vmem:[#allocation5 + $0x18] sm:$0x1] }
 0x331   : > { %v9984_v15 = vadd.f32 %v2522_v30, %v9833_v9  ;;  %v3526_v34 = vsel %vm9137_vm4, 0, %v3525_v19  ;;  %v3580_v30 = vsel %vm9141_vm6, 0, %v3579_v25  ;;  %v3588_v56 = vld [vmem:[#allocation7 + $0x30] sm:$0x80]  ;;  %v3531_v25 = vld [vmem:[#allocation5 + $0x28] sm:$0x1] }
 0x332   : > { %3527 = vst [vmem:[#allocation5 + $0x18] sm:$0x1] %v3526_v34  ;;  %3581 = vst [vmem:[#allocation7 + $0x18] sm:$0x80] %v3580_v30  ;;  %v3532_v30 = vsel %vm9137_vm4, 0, %v3531_v25 }
 0x333   : > { %3533 = vst [vmem:[#allocation5 + $0x28] sm:$0x1] %v3532_v30  ;;  %v3591_v30 = vld [vmem:[#allocation7 + $0x38] sm:$0x80] }
 0x334   : > { %v3592_v2 = vsel %vm9141_vm6, 0, %v3591_v30 }
 0x335   : > { %v7429_v63 = vpop.f32.mrb[120].mxu1  ;;  %3593 = vst [vmem:[#allocation7 + $0x38] sm:$0x80] %v3592_v2 }
 0x336   : > { %v9991_v10 = vadd.f32 %v7429_v63, %v9876_v28  ;;  %v2535_v20 = vpop.f32.mrb[121].mxu1  ;;  %v3534_v63 = vld [vmem:[#allocation5 + $0x30] sm:$0x1] }
 0x337   : > { %v9994_v9 = vadd.f32 %v2535_v20, %v9866_v52  ;;  %v7430_v33 = vpop.f32.mrb[122].mxu1  ;;  %v3535_v47 = vsel %vm9137_vm4, 0, %v3534_v63  ;;  %v3589_v20 = vsel %vm9141_vm6, 0, %v3588_v56  ;;  %v10023_v56 = vld [vmem:[#allocation15] sm:$0xff]  }
 0x338   : > { %v10001_v38 = vadd.f32 %v7430_v33, %v9881_v43  ;;  %v2538_v28 = vpop.f32.mrb[123].mxu1  ;;  %3536 = vst [vmem:[#allocation5 + $0x30] sm:$0x1] %v3535_v47  ;;  %3590 = vst [vmem:[#allocation7 + $0x30] sm:$0x80] %v3589_v20  ;;  %7627 = vmatprep.subr.bf16.mxu0 %v10023_v56 }
 0x339   : > { %v10004_v16 = vadd.f32 %v2538_v28, %v9871_v36  ;;  %v3585_v33 = vld [vmem:[#allocation7 + $0x28] sm:$0x80]  ;;  %v3594_v47 = vld [vmem:[#allocation7 + $0x40] sm:$0x80] }
 0x33a   : > { %v3586_v28 = vsel %vm9141_vm6, 0, %v3585_v33 }
 0x33b   : > { %3587 = vst [vmem:[#allocation7 + $0x28] sm:$0x80] %v3586_v28 }
 0x33d   : > { %v7433_v52 = vpop.f32.mrb[124].mxu1 }
 0x33e   : > { %v10011_v19 = vadd.f32 %v7433_v52, %v9896_v45  ;;  %v2551_v43 = vpop.f32.mrb[125].mxu1 }
 0x33f   : > { %v10014_v36 = vadd.f32 %v2551_v43, %v9886_v6  ;;  %v7434_v34 = vpop.f32.mrb[126].mxu1  ;;  %v3540_v6 = vld [vmem:[#allocation5 + $0x40] sm:$0x1] }
 0x340   : > { %v10021_v63 = vadd.f32 %v7434_v34, %v9901_v7  ;;  %v2554_v45 = vpop.f32.mrb[127].mxu1  ;;  %v3541_v43 = vsel %vm9137_vm4, 0, %v3540_v6  ;;  %v3595_v7 = vsel %vm9141_vm6, 0, %v3594_v47  ;;  %v3537_v34 = vld [vmem:[#allocation5 + $0x38] sm:$0x1] }
 0x341   : > { %v10026_v52 = vadd.f32 %v2554_v45, %v9891_v41  ;;  %3542 = vst [vmem:[#allocation5 + $0x40] sm:$0x1] %v3541_v43  ;;  %3596 = vst [vmem:[#allocation7 + $0x40] sm:$0x80] %v3595_v7  ;;  %v3538_v45 = vsel %vm9137_vm4, 0, %v3537_v34 }
 0x342   : > { %3539 = vst [vmem:[#allocation5 + $0x38] sm:$0x1] %v3538_v45  ;;  %v3600_v34 = vld [vmem:[#allocation7 + $0x50] sm:$0x80] }
 0x343   : > { %v3601_v2 = vsel %vm9141_vm6, 0, %v3600_v34  ;;  %v3552_v34 = vld [vmem:[#allocation5 + $0x60] sm:$0x1] }
 0x344   : > { %3602 = vst [vmem:[#allocation7 + $0x50] sm:$0x80] %v3601_v2 }
 0x345   : > { %v7453_v20 = vpop.f32.mrb[128].mxu1 }
 0x346   : > { %v2842_v25 = vadd.f32 %v7453_v20, %v9907_v40  ;;  %v2713_v33 = vpop.f32.mrb[129].mxu1 }
 0x347   : > { %v2840_v41 = vadd.f32 %v2713_v33, %v9910_v48  ;;  %v7454_v28 = vpop.f32.mrb[130].mxu1  ;;  %v3546_v33 = vld [vmem:[#allocation5 + $0x50] sm:$0x1] }
 0x348   : > { %v2843_v6 = vadd.f32 %v7454_v28, %v9913_v1  ;;  %v10041_v47 = vadd.f32 %v9790_v23, %v2842_v25  ;;  %v2716_v40 = vpop.f32.mrb[131].mxu1  ;;  %v3547_v23 = vsel %vm9137_vm4, 0, %v3546_v33 }
 0x349   : > { %v2841_v20 = vadd.f32 %v2716_v40, %v9916_v17  ;;  %v10045_v43 = vadd.f32 %v9797_v12, %v2840_v41  ;;  %3548 = vst [vmem:[#allocation5 + $0x50] sm:$0x1] %v3547_v23  ;;  %v3543_v12 = vld [vmem:[#allocation5 + $0x48] sm:$0x1] }
 0x34a   : > { %v10048_v48 = vadd.f32 %v9799_v39, %v2843_v6  ;;  %v3597_v39 = vld [vmem:[#allocation7 + $0x48] sm:$0x80]  ;;  %v3544_v41 = vsel %vm9137_vm4, 0, %v3543_v12 }
 0x34b   : > { %v10051_v7 = vadd.f32 %v9802_v35, %v2841_v20  ;;  %v3598_v28 = vsel %vm9141_vm6, 0, %v3597_v39  ;;  %3545 = vst [vmem:[#allocation5 + $0x48] sm:$0x1] %v3544_v41 }
 0x34c   : > { %3599 = vst [vmem:[#allocation7 + $0x48] sm:$0x80] %v3598_v28 }
 0x34d   : > { %v7457_v1 = vpop.f32.mrb[132].mxu1 }
 0x34e   : > { %v2846_v17 = vadd.f32 %v7457_v1, %v9919_v31  ;;  %v2729_v25 = vpop.f32.mrb[133].mxu1  ;;  %v3606_v1 = vld [vmem:[#allocation7 + $0x60] sm:$0x80] }
 0x34f   : > { %v2844_v30 = vadd.f32 %v2729_v25, %v9922_v61  ;;  %v7458_v35 = vpop.f32.mrb[134].mxu1  ;;  %v3607_v23 = vsel %vm9141_vm6, 0, %v3606_v1 }
 0x350   : > { %v2847_v45 = vadd.f32 %v7458_v35, %v9925_v55  ;;  %v10065_v6 = vadd.f32 %v9810_v0, %v2846_v17  ;;  %v2732_v31 = vpop.f32.mrb[135].mxu1  ;;  %v3553_v0 = vsel %vm9137_vm4, 0, %v3552_v34  ;;  %3608 = vst [vmem:[#allocation7 + $0x60] sm:$0x80] %v3607_v23 }
 0x351   : > { %v2845_v40 = vadd.f32 %v2732_v31, %v9928_v53  ;;  %v10069_v20 = vadd.f32 %v9817_v22, %v2844_v30  ;;  %3554 = vst [vmem:[#allocation5 + $0x60] sm:$0x1] %v3553_v0  ;;  %v3549_v22 = vld [vmem:[#allocation5 + $0x58] sm:$0x1]  ;;  %v3612_v31 = vld [vmem:[#allocation7 + $0x70] sm:$0x80] }
 0x352   : > { %v10072_v61 = vadd.f32 %v9819_v44, %v2847_v45  ;;  %v3603_v44 = vld [vmem:[#allocation7 + $0x58] sm:$0x80]  ;;  %v3550_v25 = vsel %vm9137_vm4, 0, %v3549_v22  ;;  %v3558_v45 = vld [vmem:[#allocation5 + $0x70] sm:$0x1] }
 0x353   : > { %v10075_v33 = vadd.f32 %v9822_v42, %v2845_v40  ;;  %v3604_v12 = vsel %vm9141_vm6, 0, %v3603_v44  ;;  %3551 = vst [vmem:[#allocation5 + $0x58] sm:$0x1] %v3550_v25  ;;  %v3613_v40 = vsel %vm9141_vm6, 0, %v3612_v31 }
 0x354   : > { %3605 = vst [vmem:[#allocation7 + $0x58] sm:$0x80] %v3604_v12  ;;  %3614 = vst [vmem:[#allocation7 + $0x70] sm:$0x80] %v3613_v40 }
 0x355   : > { %v7461_v55 = vpop.f32.mrb[136].mxu1 }
 0x356   : > { %v2850_v53 = vadd.f32 %v7461_v55, %v9931_v46  ;;  %v2745_v2 = vpop.f32.mrb[137].mxu1 }
 0x357   : > { %v2848_v17 = vadd.f32 %v2745_v2, %v9934_v60  ;;  %v7462_v42 = vpop.f32.mrb[138].mxu1 }
 0x358   : > { %v2851_v39 = vadd.f32 %v7462_v42, %v9937_v3  ;;  %v10089_v30 = vadd.f32 %v9830_v54, %v2850_v53  ;;  %v2748_v46 = vpop.f32.mrb[139].mxu1  ;;  %v3559_v54 = vsel %vm9137_vm4, 0, %v3558_v45  ;;  %v3618_v42 = vld [vmem:[#allocation7 + $0x80] sm:$0x80] }
 0x359   : > { %v2849_v35 = vadd.f32 %v2748_v46, %v9940_v11  ;;  %v10093_v41 = vadd.f32 %v9837_v32, %v2848_v17  ;;  %3560 = vst [vmem:[#allocation5 + $0x70] sm:$0x1] %v3559_v54  ;;  %v3555_v32 = vld [vmem:[#allocation5 + $0x68] sm:$0x1]  ;;  %v3564_v17 = vld [vmem:[#allocation5 + $0x80] sm:$0x1] }
 0x35a   : > { %v10096_v60 = vadd.f32 %v9839_v13, %v2851_v39  ;;  %v3609_v13 = vld [vmem:[#allocation7 + $0x68] sm:$0x80]  ;;  %v3556_v55 = vsel %vm9137_vm4, 0, %v3555_v32  ;;  %v3619_v25 = vsel %vm9141_vm6, 0, %v3618_v42 }
 0x35b   : > { %v10099_v28 = vadd.f32 %v9842_v51, %v2849_v35  ;;  %v3610_v0 = vsel %vm9141_vm6, 0, %v3609_v13  ;;  %3557 = vst [vmem:[#allocation5 + $0x68] sm:$0x1] %v3556_v55  ;;  %3620 = vst [vmem:[#allocation7 + $0x80] sm:$0x80] %v3619_v25 }
 0x35c   : > { %3611 = vst [vmem:[#allocation7 + $0x68] sm:$0x80] %v3610_v0 }
 0x35d   : > { %v7465_v3 = vpop.f32.mrb[140].mxu1 }
 0x35e   : > { %v2854_v11 = vadd.f32 %v7465_v3, %v9943_v49  ;;  %v2761_v34 = vpop.f32.mrb[141].mxu1 }
 0x35f   : > { %v2852_v1 = vadd.f32 %v2761_v34, %v9946_v18  ;;  %v7466_v51 = vpop.f32.mrb[142].mxu1 }
 0x360   : > { %v2855_v23 = vadd.f32 %v7466_v51, %v9949_v29  ;;  %v10113_v53 = vadd.f32 %v9850_v8, %v2854_v11  ;;  %v2764_v49 = vpop.f32.mrb[143].mxu1  ;;  %v3565_v8 = vsel %vm9137_vm4, 0, %v3564_v17 }
 0x361   : > { %v2853_v2 = vadd.f32 %v2764_v49, %v9952_v59  ;;  %v10117_v22 = vadd.f32 %v9857_v27, %v2852_v1  ;;  %3566 = vst [vmem:[#allocation5 + $0x80] sm:$0x1] %v3565_v8  ;;  %v3561_v27 = vld [vmem:[#allocation5 + $0x78] sm:$0x1] }
 0x362   : > { %v10120_v18 = vadd.f32 %v9859_v58, %v2855_v23  ;;  %v3615_v58 = vld [vmem:[#allocation7 + $0x78] sm:$0x80]  ;;  %v3562_v46 = vsel %vm9137_vm4, 0, %v3561_v27 }
 0x363   : > { %v10123_v44 = vadd.f32 %v9862_v62, %v2853_v2  ;;  %v3616_v35 = vsel %vm9141_vm6, 0, %v3615_v58  ;;  %3563 = vst [vmem:[#allocation5 + $0x78] sm:$0x1] %v3562_v46 }
 0x364   : > { %3617 = vst [vmem:[#allocation7 + $0x78] sm:$0x80] %v3616_v35 }
 0x365   : > { %v7469_v29 = vpop.f32.mrb[144].mxu1 }
 0x366   : > { %v2858_v59 = vadd.f32 %v7469_v29, %v9955_v24  ;;  %v2777_v12 = vpop.f32.mrb[145].mxu1  ;;  %v3516_v24 = vld [vmem:[#allocation5] sm:$0x1] }
 0x367   : > { %v2856_v39 = vadd.f32 %v2777_v12, %v9958_v14  ;;  %v7470_v62 = vpop.f32.mrb[146].mxu1  ;;  %v3517_v54 = vsel %vm9137_vm4, 0, %v3516_v24 }
 0x368   : > { %v2859_v45 = vadd.f32 %v7470_v62, %v9961_v5  ;;  %v2780_v31 = vpop.f32.mrb[147].mxu1  ;;  %3518 = vst [vmem:[#allocation5] sm:$0x1] %v3517_v54 }
 0x369   : > { %v2857_v3 = vadd.f32 %v2780_v31, %v9964_v57 }
 0x36d   : > { %v7473_v14 = vpop.f32.mrb[148].mxu1 }
 0x36e   : > { %v2862_v40 = vadd.f32 %v7473_v14, %v9971_v21  ;;  %v2793_v11 = vpop.f32.mrb[149].mxu1 }
 0x36f   : > { %v2860_v34 = vadd.f32 %v2793_v11, %v9976_v50  ;;  %v7474_v32 = vpop.f32.mrb[150].mxu1 }
 0x370   : > { %v2863_v13 = vadd.f32 %v7474_v32, %v9981_v26  ;;  %v2796_v5 = vpop.f32.mrb[151].mxu1 }
 0x371   : > { %v2861_v1 = vadd.f32 %v2796_v5, %v9984_v15 }
 0x375   : > { %v7477_v51 = vpop.f32.mrb[152].mxu1 }
 0x376   : > { %v2866_v55 = vadd.f32 %v7477_v51, %v9991_v10  ;;  %v2809_v57 = vpop.f32.mrb[153].mxu1 }
 0x377   : > { %v2864_v0 = vadd.f32 %v2809_v57, %v9994_v9  ;;  %v7478_v23 = vpop.f32.mrb[154].mxu1 }
 0x378   : > { %v2867_v49 = vadd.f32 %v7478_v23, %v10001_v38  ;;  %v2812_v2 = vpop.f32.mrb[155].mxu1  ;;  %v10186_v23 = vld [vmem:[%s10826_s3] ss:$0 sm:$0xff] }
 0x379   : > { %v2865_v21 = vadd.f32 %v2812_v2, %v10004_v16 }
 0x37d   : > { %v7481_v17 = vpop.f32.mrb[156].mxu1 }
 0x37e   : > { %v2870_v50 = vadd.f32 %v7481_v17, %v10011_v19  ;;  %v2825_v42 = vpop.f32.mrb[157].mxu1 }
 0x37f   : > { %v2868_v26 = vadd.f32 %v2825_v42, %v10014_v36  ;;  %v7482_v29 = vpop.f32.mrb[158].mxu1 }
 0x380   : > { %v2871_v15 = vadd.f32 %v7482_v29, %v10021_v63  ;;  %v2828_v8 = vpop.f32.mrb[159].mxu1 }
 0x381   : > { %v2869_v10 = vadd.f32 %v2828_v8, %v10026_v52 }
 0x385   : > { %v7517_v25 = vpop.f32.mrb[160].mxu1 }
 0x386   : > { %v10151_v9 = vadd.f32 %v7517_v25, %v2858_v59  ;;  %v3051_v12 = vpop.f32.mrb[161].mxu1 }
 0x387   : > { %v10153_v38 = vadd.f32 %v3051_v12, %v2856_v39  ;;  %v7518_v27 = vpop.f32.mrb[162].mxu1 }
 0x388   : > { %v10155_v16 = vadd.f32 %v7518_v27, %v2859_v45  ;;  %v3054_v58 = vpop.f32.mrb[163].mxu1 }
 0x389   : > { %v10157_v19 = vadd.f32 %v3054_v58, %v2857_v3 }
 0x38d   : > { %v7521_v62 = vpop.f32.mrb[164].mxu1 }
 0x38e   : > { %v10159_v36 = vadd.f32 %v7521_v62, %v2862_v40  ;;  %v3067_v46 = vpop.f32.mrb[165].mxu1 }
 0x38f   : > { %v10161_v63 = vadd.f32 %v3067_v46, %v2860_v34  ;;  %v7522_v35 = vpop.f32.mrb[166].mxu1 }
 0x390   : > { %v10163_v52 = vadd.f32 %v7522_v35, %v2863_v13  ;;  %v3070_v59 = vpop.f32.mrb[167].mxu1 }
 0x391   : > { %v10165_v31 = vadd.f32 %v3070_v59, %v2861_v1 }
 0x395   : > { %v7525_v39 = vpop.f32.mrb[168].mxu1 }
 0x396   : > { %v10167_v24 = vadd.f32 %v7525_v39, %v2866_v55  ;;  %v3083_v45 = vpop.f32.mrb[169].mxu1 }
 0x397   : > { %v10169_v54 = vadd.f32 %v3083_v45, %v2864_v0  ;;  %v7526_v3 = vpop.f32.mrb[170].mxu1 }
 0x398   : > { %v10171_v14 = vadd.f32 %v7526_v3, %v2867_v49  ;;  %v3086_v40 = vpop.f32.mrb[171].mxu1 }
 0x399   : > { %v10173_v11 = vadd.f32 %v3086_v40, %v2865_v21  ;;  %v3570_v21 = vld [vmem:[#allocation7] sm:$0x80] }
 0x39a   : > { %v3571_v42 = vsel %vm9141_vm6, 0, %v3570_v21 }
 0x39b   : > { %3572 = vst [vmem:[#allocation7] sm:$0x80] %v3571_v42 }
 0x39d   : > { %v7529_v34 = vpop.f32.mrb[172].mxu1 }
 0x39e   : > { %v10175_v32 = vadd.f32 %v7529_v34, %v2870_v50  ;;  %v3099_v13 = vpop.f32.mrb[173].mxu1 }
 0x39f   : > { %v10177_v5 = vadd.f32 %v3099_v13, %v2868_v26  ;;  %v7530_v1 = vpop.f32.mrb[174].mxu1 }
 0x3a0   : > { %v10179_v51 = vadd.f32 %v7530_v1, %v2871_v15  ;;  %v3102_v55 = vpop.f32.mrb[175].mxu1 }
 0x3a1   : > { %v10181_v57 = vadd.f32 %v3102_v55, %v2869_v10 }
 0x3a5   : > { %v7549_v0 = vpop.f32.mrb[176].mxu1 }
 0x3a6   : > { %v3390_v49 = vadd.f32 %v7549_v0, %v10041_v47  ;;  %v3261_v2 = vpop.f32.mrb[177].mxu1 }
 0x3a7   : > { %v3388_v17 = vadd.f32 %v3261_v2, %v10045_v43  ;;  %v7550_v50 = vpop.f32.mrb[178].mxu1 }
 0x3a8   : > { %v3429_v26 = vadd.f32 %v10186_v23, %v3390_v49  ;;  %v3391_v29 = vadd.f32 %v7550_v50, %v10048_v48  ;;  %v3264_v15 = vpop.f32.mrb[179].mxu1 }
 0x3a9   : > { %v3427_v8 = vadd.f32 %v10186_v23, %v3388_v17  ;;  %v3389_v10 = vadd.f32 %v3264_v15, %v10051_v7  ;;  %v8576_v7 = vld [vmem:[#allocation15 + $0x8] sm:$0xff]   ;;  %v3870_v17 = vld [vmem:[#allocation7 + $0x10] sm:$0xff] }
 0x3aa   : > { %v3430_v47 = vadd.f32 %v10186_v23, %v3391_v29  ;;  %v3461_v12 = vmax.f32 %v3429_v26, 0.0  ;;  %v8577_v29 = vld [vmem:[#allocation15 + $0x10] sm:$0xff]  }
 0x3ab   : > { %v3428_v25 = vadd.f32 %v10186_v23, %v3389_v10  ;;  %v3459_v27 = vmax.f32 %v3427_v8, 0.0  ;;  %v3770_v8 = vld [vmem:[#allocation5 + $0x8] sm:$0xff]  ;;  %v3867_v10 = vld [vmem:[#allocation7 + $0x8] sm:$0xff] }
 0x3ac   : > { %v3462_v43 = vmax.f32 %v3430_v47, 0.0 }
 0x3ad   : > { %v3460_v58 = vmax.f32 %v3428_v25, 0.0  ;;  %v7553_v62 = vpop.f32.mrb[180].mxu1 }
 0x3ae   : > { %v10198_v46 = vpack.c.bf16 %v3462_v43, %v3461_v12  ;;  %v3394_v35 = vadd.f32 %v7553_v62, %v10065_v6  ;;  %v3277_v48 = vpop.f32.mrb[181].mxu1 }
 0x3af   : > { %v10201_v59 = vpack.c.bf16 %v3460_v58, %v3459_v27  ;;  %v3392_v39 = vadd.f32 %v3277_v48, %v10069_v20  ;;  %v7554_v45 = vpop.f32.mrb[182].mxu1  ;;  %v8587_v48 = vld [vmem:[#allocation15 + $0xa0] sm:$0xff]  }
 0x3b0   : > { %v3649_v3 = vshrl.u32 %v10198_v46, 16  ;;  %v3652_v40 = vshll.u32 %v10198_v46, 16  ;;  %v3433_v34 = vadd.f32 %v10186_v23, %v3394_v35  ;;  %v3395_v13 = vadd.f32 %v7554_v45, %v10072_v61  ;;  %v3280_v1 = vpop.f32.mrb[183].mxu1  ;;  %v3773_v61 = vld [vmem:[#allocation5 + $0x10] sm:$0xff] }
 0x3b1   : > { %v3642_v55 = vshrl.u32 %v10201_v59, 16  ;;  %v3645_v6 = vshll.u32 %v10201_v59, 16  ;;  %v3431_v0 = vadd.f32 %v10186_v23, %v3392_v39  ;;  %v3393_v49 = vadd.f32 %v3280_v1, %v10075_v33  ;;  %7596 = vmatmul.mubr.bf16.vlgmr.msra.gmra.mrb[16].mxu0 %v10201_v59 }
 0x3b2   : > { %v3651_v20 = vrot.slane %v3649_v3, 7  ;;  %v3820_v2 = vrot.slane %v3652_v40, 1  ;;  %v3434_v21 = vadd.f32 %v10186_v23, %v3395_v13  ;;  %7599 = vmatprep.mubr.bf16.mxu0 %v10198_v46  ;;  %7628 = vmatpush3.bf16.msra.mxu0 %v10023_v56  ;;  %v3465_v47 = vmax.f32 %v3433_v34, 0.0  ;;  %v8586_v56 = vld [vmem:[#allocation15 + $0x98] sm:$0xff]  }
 0x3b3   : > { %v3644_v50 = vrot.slane %v3642_v55, 7  ;;  %v3818_v42 = vrot.slane %v3645_v6, 1  ;;  %v3432_v26 = vadd.f32 %v10186_v23, %v3393_v49  ;;  %7629 = vmatprep.subr.bf16.mxu0 %v8576_v7  ;;  %v3463_v27 = vmax.f32 %v3431_v0, 0.0  ;;  %v8578_v0 = vld [vmem:[#allocation15 + $0x18] sm:$0xff]  }
 0x3b4   : > { %v3654_v15 = vor.u32 %v3652_v40, %v3651_v20  ;;  %v3821_v33 = vor.u32 %v3820_v2, %v3649_v3  ;;  %v3466_v25 = vmax.f32 %v3434_v21, 0.0 }
 0x3b5   : > { %v3647_v12 = vor.u32 %v3645_v6, %v3644_v50  ;;  %v3819_v43 = vor.u32 %v3818_v42, %v3642_v55  ;;  %v3464_v58 = vmax.f32 %v3432_v26, 0.0  ;;  %v7557_v62 = vpop.f32.mrb[184].mxu1 }
 0x3b6   : > { %v10219_v35 = vsel %vm9169_vm9, %v3654_v15, %v3773_v61  ;;  %v3871_v39 = vsel %vm9179_vm10, %v3821_v33, %v3870_v17  ;;  %v10223_v45 = vpack.c.bf16 %v3466_v25, %v3465_v47  ;;  %v3398_v3 = vadd.f32 %v7557_v62, %v10089_v30  ;;  %v3293_v40 = vpop.f32.mrb[185].mxu1  ;;  %7630 = vmatpush3.bf16.msra.mxu0 %v8576_v7  ;;  %v3779_v15 = vld [vmem:[#allocation5 + $0x20] sm:$0xff] }
 0x3b7   : > { %3775 = vst [vmem:[#allocation5 + $0x10] sm:$0xff] %v10219_v35  ;;  %3872 = vst [vmem:[#allocation7 + $0x10] sm:$0xff] %v3871_v39  ;;  %v10229_v34 = vsel %vm9169_vm9, %v3647_v12, %v3770_v8  ;;  %v3868_v13 = vsel %vm9179_vm10, %v3819_v43, %v3867_v10  ;;  %v10233_v1 = vpack.c.bf16 %v3464_v58, %v3463_v27  ;;  %v7558_v6 = vpop.f32.mrb[186].mxu1  ;;  %7631 = vmatprep.subr.bf16.mxu0 %v8577_v29  ;;  %v8579_v47 = vld [vmem:[#allocation15 + $0x20] sm:$0xff]   ;;  %v3873_v43 = vld [vmem:[#allocation7 + $0x18] sm:$0xff] }
 0x3b8   : > { %v3396_v55 = vadd.f32 %v3293_v40, %v10093_v41  ;;  %3772 = vst [vmem:[#allocation5 + $0x8] sm:$0xff] %v10229_v34  ;;  %3869 = vst [vmem:[#allocation7 + $0x8] sm:$0xff] %v3868_v13  ;;  %v3663_v30 = vshrl.u32 %v10223_v45, 16  ;;  %v3666_v7 = vshll.u32 %v10223_v45, 16  ;;  %v3437_v49 = vadd.f32 %v10186_v23, %v3398_v3  ;;  %v3296_v2 = vpop.f32.mrb[187].mxu1 }
 0x3b9   : > { %v3399_v20 = vadd.f32 %v7558_v6, %v10096_v60  ;;  %v3656_v21 = vshrl.u32 %v10233_v1, 16  ;;  %v3659_v61 = vshll.u32 %v10233_v1, 16  ;;  %v3397_v17 = vadd.f32 %v3296_v2, %v10099_v28  ;;  %7600 = vmatmul.mubr.bf16.gmra.mrb[20].mxu0 %v10233_v1  ;;  %v3876_v60 = vld [vmem:[#allocation7 + $0x20] sm:$0xff]  ;;  %v3776_v28 = vld [vmem:[#allocation5 + $0x18] sm:$0xff] }
 0x3ba   : > { %v3435_v41 = vadd.f32 %v10186_v23, %v3396_v55  ;;  %v3665_v50 = vrot.slane %v3663_v30, 7  ;;  %v3824_v42 = vrot.slane %v3666_v7, 1  ;;  %7603 = vmatprep.mubr.bf16.mxu0 %v10223_v45  ;;  %7632 = vmatpush3.bf16.msra.mxu0 %v8577_v29  ;;  %v3469_v27 = vmax.f32 %v3437_v49, 0.0 }
 0x3bb   : > { %v3438_v26 = vadd.f32 %v10186_v23, %v3399_v20  ;;  %v3658_v33 = vrot.slane %v3656_v21, 7  ;;  %v3822_v8 = vrot.slane %v3659_v61, 1  ;;  %v3436_v10 = vadd.f32 %v10186_v23, %v3397_v17  ;;  %7633 = vmatprep.subr.bf16.mxu0 %v8578_v0 }
 0x3bc   : > { %v3668_v25 = vor.u32 %v3666_v7, %v3665_v50  ;;  %v3825_v12 = vor.u32 %v3824_v42, %v3663_v30  ;;  %v3467_v3 = vmax.f32 %v3435_v41, 0.0 }
 0x3bd   : > { %v3470_v58 = vmax.f32 %v3438_v26, 0.0  ;;  %v3661_v62 = vor.u32 %v3659_v61, %v3658_v33  ;;  %v3823_v39 = vor.u32 %v3822_v8, %v3656_v21  ;;  %v3468_v40 = vmax.f32 %v3436_v10, 0.0  ;;  %v7561_v13 = vpop.f32.mrb[188].mxu1 }
 0x3be   : > { %v10251_v29 = vsel %vm9169_vm9, %v3668_v25, %v3779_v15  ;;  %v10255_v55 = vsel %vm9179_vm10, %v3825_v12, %v3876_v60  ;;  %v3402_v30 = vadd.f32 %v7561_v13, %v10113_v53  ;;  %v3309_v7 = vpop.f32.mrb[189].mxu1  ;;  %7634 = vmatpush3.bf16.msra.mxu0 %v8578_v0  ;;  %v8580_v53 = vld [vmem:[#allocation15 + $0x28] sm:$0xff]   ;;  %v3785_v25 = vld [vmem:[#allocation5 + $0x30] sm:$0xff] }
 0x3bf   : > { %v10257_v6 = vpack.c.bf16 %v3470_v58, %v3469_v27  ;;  %3781 = vst [vmem:[#allocation5 + $0x20] sm:$0xff] %v10251_v29  ;;  %3878 = vst [vmem:[#allocation7 + $0x20] sm:$0xff] %v10255_v55  ;;  %v10264_v49 = vsel %vm9169_vm9, %v3661_v62, %v3776_v28  ;;  %v10268_v20 = vsel %vm9179_vm10, %v3823_v39, %v3873_v43  ;;  %v7562_v61 = vpop.f32.mrb[190].mxu1  ;;  %7635 = vmatprep.subr.bf16.mxu0 %v8579_v47  ;;  %v8581_v27 = vld [vmem:[#allocation15 + $0x30] sm:$0xff]   ;;  %v3879_v39 = vld [vmem:[#allocation7 + $0x28] sm:$0xff] }
 0x3c0   : > { %v10270_v2 = vpack.c.bf16 %v3468_v40, %v3467_v3  ;;  %v3400_v21 = vadd.f32 %v3309_v7, %v10117_v22  ;;  %3778 = vst [vmem:[#allocation5 + $0x18] sm:$0xff] %v10264_v49  ;;  %3875 = vst [vmem:[#allocation7 + $0x18] sm:$0xff] %v10268_v20  ;;  %v3441_v17 = vadd.f32 %v10186_v23, %v3402_v30  ;;  %v3312_v42 = vpop.f32.mrb[191].mxu1 }
 0x3c1   : > { %v3677_v0 = vshrl.u32 %v10257_v6, 16  ;;  %v3680_v41 = vshll.u32 %v10257_v6, 16  ;;  %v3403_v50 = vadd.f32 %v7562_v61, %v10120_v18  ;;  %v3401_v60 = vadd.f32 %v3312_v42, %v10123_v44  ;;  %v3882_v18 = vld [vmem:[#allocation7 + $0x30] sm:$0xff]  ;;  %v3782_v44 = vld [vmem:[#allocation5 + $0x28] sm:$0xff] }
 0x3c2   : > { %v3670_v26 = vshrl.u32 %v10270_v2, 16  ;;  %v3673_v22 = vshll.u32 %v10270_v2, 16  ;;  %v3439_v15 = vadd.f32 %v10186_v23, %v3400_v21  ;;  %7604 = vmatmul.mubr.bf16.gmra.mrb[24].mxu0 %v10270_v2  ;;  %v3473_v3 = vmax.f32 %v3441_v17, 0.0 }
 0x3c3   : > { %v3679_v33 = vrot.slane %v3677_v0, 7  ;;  %v3828_v8 = vrot.slane %v3680_v41, 1  ;;  %v3442_v10 = vadd.f32 %v10186_v23, %v3403_v50  ;;  %7607 = vmatprep.mubr.bf16.mxu0 %v10257_v6  ;;  %7636 = vmatpush3.bf16.msra.mxu0 %v8579_v47  ;;  %v3440_v43 = vadd.f32 %v10186_v23, %v3401_v60 }
 0x3c4   : > { %v3672_v12 = vrot.slane %v3670_v26, 7  ;;  %v3826_v28 = vrot.slane %v3673_v22, 1  ;;  %7637 = vmatprep.subr.bf16.mxu0 %v8580_v53  ;;  %v3471_v7 = vmax.f32 %v3439_v15, 0.0 }
 0x3c5   : > { %v3682_v58 = vor.u32 %v3680_v41, %v3679_v33  ;;  %v3829_v62 = vor.u32 %v3828_v8, %v3677_v0  ;;  %v3474_v40 = vmax.f32 %v3442_v10, 0.0  ;;  %v3472_v21 = vmax.f32 %v3440_v43, 0.0  ;;  %v7565_v61 = vpop.f32.mrb[192].mxu1 }
 0x3c6   : > { %v3675_v13 = vor.u32 %v3673_v22, %v3672_v12  ;;  %v3827_v30 = vor.u32 %v3826_v28, %v3670_v26  ;;  %v3406_v0 = vadd.f32 %v7565_v61, %v10151_v9  ;;  %v3325_v41 = vpop.f32.mrb[193].mxu1  ;;  %v8582_v9 = vld [vmem:[#allocation15 + $0x38] sm:$0xff]  }
 0x3c7   : > { %v10289_v47 = vsel %vm9169_vm9, %v3682_v58, %v3785_v25  ;;  %v10293_v50 = vsel %vm9179_vm10, %v3829_v62, %v3882_v18  ;;  %v10295_v42 = vpack.c.bf16 %v3474_v40, %v3473_v3  ;;  %7638 = vmatpush3.bf16.msra.mxu0 %v8580_v53  ;;  %v10308_v22 = vpack.c.bf16 %v3472_v21, %v3471_v7  ;;  %v7566_v60 = vpop.f32.mrb[194].mxu1  ;;  %v3788_v7 = vld [vmem:[#allocation5 + $0x38] sm:$0xff]  ;;  %v3885_v21 = vld [vmem:[#allocation7 + $0x38] sm:$0xff] }
 0x3c8   : > { %3787 = vst [vmem:[#allocation5 + $0x30] sm:$0xff] %v10289_v47  ;;  %3884 = vst [vmem:[#allocation7 + $0x30] sm:$0xff] %v10293_v50  ;;  %v10302_v17 = vsel %vm9169_vm9, %v3675_v13, %v3782_v44  ;;  %v10306_v26 = vsel %vm9179_vm10, %v3827_v30, %v3879_v39  ;;  %v3404_v15 = vadd.f32 %v3325_v41, %v10153_v38  ;;  %7639 = vmatprep.subr.bf16.mxu0 %v8581_v27  ;;  %v3328_v25 = vpop.f32.mrb[195].mxu1  ;;  %v3791_v44 = vld [vmem:[#allocation5 + $0x40] sm:$0xff] }
 0x3c9   : > { %3784 = vst [vmem:[#allocation5 + $0x28] sm:$0xff] %v10302_v17  ;;  %3881 = vst [vmem:[#allocation7 + $0x28] sm:$0xff] %v10306_v26  ;;  %v3691_v53 = vshrl.u32 %v10295_v42, 16  ;;  %v3694_v33 = vshll.u32 %v10295_v42, 16  ;;  %v3445_v8 = vadd.f32 %v10186_v23, %v3406_v0  ;;  %v3407_v10 = vadd.f32 %v7566_v60, %v10155_v16  ;;  %v3888_v16 = vld [vmem:[#allocation7 + $0x40] sm:$0xff]  ;;  %v10325_v13 = vld [vmem:[#allocation15 + $0x80] sm:$0xff]  }
 0x3ca   : > { %v3684_v18 = vshrl.u32 %v10308_v22, 16  ;;  %v3687_v38 = vshll.u32 %v10308_v22, 16  ;;  %v3443_v12 = vadd.f32 %v10186_v23, %v3404_v15  ;;  %v3405_v28 = vadd.f32 %v3328_v25, %v10157_v19  ;;  %7608 = vmatmul.mubr.bf16.gmra.mrb[28].mxu0 %v10308_v22 }
 0x3cb   : > { %v3693_v43 = vrot.slane %v3691_v53, 7  ;;  %v3832_v58 = vrot.slane %v3694_v33, 1  ;;  %v3446_v62 = vadd.f32 %v10186_v23, %v3407_v10  ;;  %7611 = vmatprep.mubr.bf16.mxu0 %v10295_v42  ;;  %7640 = vmatpush3.bf16.msra.mxu0 %v8581_v27  ;;  %v3477_v61 = vmax.f32 %v3445_v8, 0.0 }
 0x3cc   : > { %v3686_v39 = vrot.slane %v3684_v18, 7  ;;  %v3830_v3 = vrot.slane %v3687_v38, 1  ;;  %v3444_v40 = vadd.f32 %v10186_v23, %v3405_v28  ;;  %7641 = vmatprep.subr.bf16.mxu0 %v8582_v9  ;;  %v3475_v60 = vmax.f32 %v3443_v12, 0.0 }
 0x3cd   : > { %v3696_v30 = vor.u32 %v3694_v33, %v3693_v43  ;;  %v3833_v19 = vor.u32 %v3832_v58, %v3691_v53  ;;  %v3478_v0 = vmax.f32 %v3446_v62, 0.0  ;;  %v7569_v27 = vpop.f32.mrb[196].mxu1 }
 0x3ce   : > { %v3689_v41 = vor.u32 %v3687_v38, %v3686_v39  ;;  %v3831_v15 = vor.u32 %v3830_v3, %v3684_v18  ;;  %v3476_v10 = vmax.f32 %v3444_v40, 0.0  ;;  %v3410_v53 = vadd.f32 %v7569_v27, %v10159_v36  ;;  %v3341_v33 = vpop.f32.mrb[197].mxu1 }
 0x3cf   : > { %v10329_v25 = vsel %vm9169_vm9, %v3696_v30, %v3791_v44  ;;  %v10333_v28 = vsel %vm9179_vm10, %v3833_v19, %v3888_v16  ;;  %v10335_v37 = vpack.c.bf16 %v3478_v0, %v3477_v61  ;;  %7642 = vmatpush3.bf16.msra.mxu0 %v8582_v9  ;;  %v3408_v12 = vadd.f32 %v3341_v33, %v10161_v63  ;;  %v7570_v43 = vpop.f32.mrb[198].mxu1 }
 0x3d0   : > { %3793 = vst [vmem:[#allocation5 + $0x40] sm:$0xff] %v10329_v25  ;;  %3890 = vst [vmem:[#allocation7 + $0x40] sm:$0xff] %v10333_v28  ;;  %v10342_v8 = vsel %vm9169_vm9, %v3689_v41, %v3788_v7  ;;  %v10346_v18 = vsel %vm9179_vm10, %v3831_v15, %v3885_v21  ;;  %v10348_v38 = vpack.c.bf16 %v3476_v10, %v3475_v60  ;;  %7675 = vmatprep.subr.bf16.mxu0 %v10325_v13  ;;  %v3344_v44 = vpop.f32.mrb[199].mxu1  ;;  %v3797_v7 = vld [vmem:[#allocation5 + $0x50] sm:$0xff]  ;;  %v3894_v21 = vld [vmem:[#allocation7 + $0x50] sm:$0xff] }
 0x3d1   : > { %3790 = vst [vmem:[#allocation5 + $0x38] sm:$0xff] %v10342_v8  ;;  %3887 = vst [vmem:[#allocation7 + $0x38] sm:$0xff] %v10346_v18  ;;  %v3705_v36 = vshrl.u32 %v10335_v37, 16  ;;  %v3708_v9 = vshll.u32 %v10335_v37, 16  ;;  %v3449_v58 = vadd.f32 %v10186_v23, %v3410_v53  ;;  %v3411_v62 = vadd.f32 %v7570_v43, %v10163_v52  ;;  %v3794_v60 = vld [vmem:[#allocation5 + $0x48] sm:$0xff]  ;;  %v3891_v10 = vld [vmem:[#allocation7 + $0x48] sm:$0xff] }
 0x3d2   : > { %v3698_v16 = vshrl.u32 %v10348_v38, 16  ;;  %v3701_v63 = vshll.u32 %v10348_v38, 16  ;;  %v3447_v39 = vadd.f32 %v10186_v23, %v3408_v12  ;;  %v3409_v3 = vadd.f32 %v3344_v44, %v10165_v31  ;;  %7612 = vmatmul.mubr.bf16.gmra.mrb[32].mxu0 %v10348_v38 }
 0x3d3   : > { %v3707_v40 = vrot.slane %v3705_v36, 7  ;;  %v3836_v30 = vrot.slane %v3708_v9, 1  ;;  %v3450_v19 = vadd.f32 %v10186_v23, %v3411_v62  ;;  %7615 = vmatprep.mubr.bf16.mxu0 %v10335_v37  ;;  %v3481_v27 = vmax.f32 %v3449_v58, 0.0 }
 0x3d4   : > { %v3700_v52 = vrot.slane %v3698_v16, 7  ;;  %v3834_v61 = vrot.slane %v3701_v63, 1  ;;  %v3448_v0 = vadd.f32 %v10186_v23, %v3409_v3  ;;  %v3479_v12 = vmax.f32 %v3447_v39, 0.0 }
 0x3d5   : > { %v3710_v41 = vor.u32 %v3708_v9, %v3707_v40  ;;  %v3837_v15 = vor.u32 %v3836_v30, %v3705_v36  ;;  %v3482_v31 = vmax.f32 %v3450_v19, 0.0  ;;  %v7573_v44 = vpop.f32.mrb[200].mxu1 }
 0x3d6   : > { %v3703_v53 = vor.u32 %v3701_v63, %v3700_v52  ;;  %v3835_v33 = vor.u32 %v3834_v61, %v3698_v16  ;;  %v3480_v43 = vmax.f32 %v3448_v0, 0.0  ;;  %v3414_v36 = vadd.f32 %v7573_v44, %v10167_v24  ;;  %v3357_v9 = vpop.f32.mrb[201].mxu1  ;;  %v3897_v44 = vld [vmem:[#allocation7 + $0x58] sm:$0xff] }
 0x3d7   : > { %v10368_v62 = vsel %vm9169_vm9, %v3710_v41, %v3797_v7  ;;  %v10372_v4 = vsel %vm9179_vm10, %v3837_v15, %v3894_v21  ;;  %v10374_v3 = vpack.c.bf16 %v3482_v31, %v3481_v27  ;;  %v3412_v39 = vadd.f32 %v3357_v9, %v10169_v54  ;;  %v7574_v40 = vpop.f32.mrb[202].mxu1  ;;  %v3900_v27 = vld [vmem:[#allocation7 + $0x60] sm:$0xff] }
 0x3d8   : > { %3799 = vst [vmem:[#allocation5 + $0x50] sm:$0xff] %v10368_v62  ;;  %3896 = vst [vmem:[#allocation7 + $0x50] sm:$0xff] %v10372_v4  ;;  %v10381_v58 = vsel %vm9169_vm9, %v3703_v53, %v3794_v60  ;;  %v10385_v16 = vsel %vm9179_vm10, %v3835_v33, %v3891_v10  ;;  %v10387_v63 = vpack.c.bf16 %v3480_v43, %v3479_v12  ;;  %v3360_v21 = vpop.f32.mrb[203].mxu1  ;;  %v3803_v10 = vld [vmem:[#allocation5 + $0x60] sm:$0xff]  ;;  %v3800_v43 = vld [vmem:[#allocation5 + $0x58] sm:$0xff] }
 0x3d9   : > { %10923 = vst [vmem:[#allocation25_spill] sm:$0xff] %v10374_v3  ;;  %3796 = vst [vmem:[#allocation5 + $0x48] sm:$0xff] %v10381_v58  ;;  %v3719_v24 = vshrl.u32 %v10374_v3, 16  ;;  %v3722_v30 = vshll.u32 %v10374_v3, 16  ;;  %v3453_v19 = vadd.f32 %v10186_v23, %v3414_v36  ;;  %v3415_v7 = vadd.f32 %v7574_v40, %v10171_v14 }
 0x3da   : > { %10924 = vst [vmem:[#allocation26_spill] sm:$0xff] %v10387_v63  ;;  %3893 = vst [vmem:[#allocation7 + $0x48] sm:$0xff] %v10385_v16  ;;  %v3712_v52 = vshrl.u32 %v10387_v63, 16  ;;  %v3715_v61 = vshll.u32 %v10387_v63, 16  ;;  %v3451_v54 = vadd.f32 %v10186_v23, %v3412_v39  ;;  %v3413_v0 = vadd.f32 %v3360_v21, %v10173_v11  ;;  %7616 = vmatmul.mubr.bf16.gmra.mrb[36].mxu0 %v10387_v63 }
 0x3db   : > { %v3721_v41 = vrot.slane %v3719_v24, 7  ;;  %v3840_v15 = vrot.slane %v3722_v30, 1  ;;  %v3454_v60 = vadd.f32 %v10186_v23, %v3415_v7  ;;  %7619 = vmatprep.mubr.bf16.mxu0 %v10374_v3  ;;  %v3485_v36 = vmax.f32 %v3453_v19, 0.0 }
 0x3dc   : > { %v3714_v14 = vrot.slane %v3712_v52, 7  ;;  %v3838_v31 = vrot.slane %v3715_v61, 1  ;;  %v3452_v53 = vadd.f32 %v10186_v23, %v3413_v0  ;;  %v3483_v40 = vmax.f32 %v3451_v54, 0.0 }
 0x3dd   : > { %v3724_v33 = vor.u32 %v3722_v30, %v3721_v41  ;;  %v3841_v12 = vor.u32 %v3840_v15, %v3719_v24  ;;  %v3486_v11 = vmax.f32 %v3454_v60, 0.0  ;;  %v7577_v63 = vpop.f32.mrb[204].mxu1 }
 0x3de   : > { %v3717_v9 = vor.u32 %v3715_v61, %v3714_v14  ;;  %v3839_v39 = vor.u32 %v3838_v31, %v3712_v52  ;;  %v3484_v21 = vmax.f32 %v3452_v53, 0.0  ;;  %v3418_v24 = vadd.f32 %v7577_v63, %v10175_v32  ;;  %v3373_v30 = vpop.f32.mrb[205].mxu1 }
 0x3df   : > { %v10406_v7 = vsel %vm9169_vm9, %v3724_v33, %v3803_v10  ;;  %v10410_v3 = vsel %vm9179_vm10, %v3841_v12, %v3900_v27  ;;  %v10412_v0 = vpack.c.bf16 %v3486_v11, %v3485_v36  ;;  %v3416_v54 = vadd.f32 %v3373_v30, %v10177_v5  ;;  %v7578_v41 = vpop.f32.mrb[206].mxu1 }
 0x3e0   : > { %3805 = vst [vmem:[#allocation5 + $0x60] sm:$0xff] %v10406_v7  ;;  %3902 = vst [vmem:[#allocation7 + $0x60] sm:$0xff] %v10410_v3  ;;  %v10419_v19 = vsel %vm9169_vm9, %v3717_v9, %v3800_v43  ;;  %v10423_v52 = vsel %vm9179_vm10, %v3839_v39, %v3897_v44  ;;  %v10425_v61 = vpack.c.bf16 %v3484_v21, %v3483_v40  ;;  %v3376_v10 = vpop.f32.mrb[207].mxu1  ;;  %v3809_v43 = vld [vmem:[#allocation5 + $0x70] sm:$0xff]  ;;  %v3906_v44 = vld [vmem:[#allocation7 + $0x70] sm:$0xff] }
 0x3e1   : > { %10925 = vst [vmem:[#allocation60_spill] sm:$0xff] %v10412_v0  ;;  %3802 = vst [vmem:[#allocation5 + $0x58] sm:$0xff] %v10419_v19  ;;  %v3733_v32 = vshrl.u32 %v10412_v0, 16  ;;  %v3736_v63 = vshll.u32 %v10412_v0, 16  ;;  %v3457_v15 = vadd.f32 %v10186_v23, %v3418_v24  ;;  %v3419_v60 = vadd.f32 %v7578_v41, %v10179_v51  ;;  %v3806_v40 = vld [vmem:[#allocation5 + $0x68] sm:$0xff]  ;;  %v3903_v21 = vld [vmem:[#allocation7 + $0x68] sm:$0xff] }
 0x3e2   : > { %10926 = vst [vmem:[#allocation61_spill] sm:$0xff] %v10425_v61  ;;  %3899 = vst [vmem:[#allocation7 + $0x58] sm:$0xff] %v10423_v52  ;;  %v3726_v27 = vshrl.u32 %v10425_v61, 16  ;;  %v3729_v14 = vshll.u32 %v10425_v61, 16  ;;  %v3455_v5 = vadd.f32 %v10186_v23, %v3416_v54  ;;  %v3417_v31 = vadd.f32 %v3376_v10, %v10181_v57  ;;  %7620 = vmatmul.mubr.bf16.gmra.mrb[40].mxu0 %v10425_v61 }
 0x3e3   : > { %v3735_v53 = vrot.slane %v3733_v32, 7  ;;  %v3844_v33 = vrot.slane %v3736_v63, 1  ;;  %v3458_v12 = vadd.f32 %v10186_v23, %v3419_v60  ;;  %7623 = vmatprep.mubr.bf16.mxu0 %v10412_v0  ;;  %v3489_v24 = vmax.f32 %v3457_v15, 0.0  ;;  %v3915_v15 = vld [vmem:[#allocation5] sm:$0xff] }
 0x3e4   : > { %v3728_v51 = vrot.slane %v3726_v27, 7  ;;  %v3842_v36 = vrot.slane %v3729_v14, 1  ;;  %v3456_v11 = vadd.f32 %v10186_v23, %v3417_v31  ;;  %v3487_v41 = vmax.f32 %v3455_v5, 0.0 }
 0x3e5   : > { %v3738_v9 = vor.u32 %v3736_v63, %v3735_v53  ;;  %v3845_v39 = vor.u32 %v3844_v33, %v3733_v32  ;;  %v3490_v57 = vmax.f32 %v3458_v12, 0.0  ;;  %v3815_v12 = vld [vmem:[#allocation5 + $0x80] sm:$0xff] }
 0x3e6   : > { %v3731_v30 = vor.u32 %v3729_v14, %v3728_v51  ;;  %v3843_v54 = vor.u32 %v3842_v36, %v3726_v27  ;;  %v3488_v10 = vmax.f32 %v3456_v11, 0.0 }
 0x3e7   : > { %v10444_v60 = vsel %vm9169_vm9, %v3738_v9, %v3809_v43  ;;  %v10448_v0 = vsel %vm9179_vm10, %v3845_v39, %v3906_v44  ;;  %v10450_v61 = vpack.c.bf16 %v3490_v57, %v3489_v24  ;;  %v3912_v43 = vld [vmem:[#allocation7 + $0x80] sm:$0xff]  ;;  %v3812_v9 = vld [vmem:[#allocation5 + $0x78] sm:$0xff]  ;;  %v3909_v39 = vld [vmem:[#allocation7 + $0x78] sm:$0xff] }
 0x3e8   : > { %3811 = vst [vmem:[#allocation5 + $0x70] sm:$0xff] %v10444_v60  ;;  %3908 = vst [vmem:[#allocation7 + $0x70] sm:$0xff] %v10448_v0  ;;  %v10456_v23 = vsel %vm9169_vm9, %v3731_v30, %v3806_v40  ;;  %v10460_v32 = vsel %vm9179_vm10, %v3843_v54, %v3903_v21  ;;  %v10462_v63 = vpack.c.bf16 %v3488_v10, %v3487_v41  ;;  %v8584_v41 = vld [vmem:[#allocation15 + $0x88] sm:$0xff]   ;;  %v8585_v10 = vld [vmem:[#allocation15 + $0x90] sm:$0xff]  }
 0x3e9   : > { %3808 = vst [vmem:[#allocation5 + $0x68] sm:$0xff] %v10456_v23  ;;  %3905 = vst [vmem:[#allocation7 + $0x68] sm:$0xff] %v10460_v32  ;;  %v3747_v27 = vshrl.u32 %v10450_v61, 16  ;;  %v3750_v14 = vshll.u32 %v10450_v61, 16 }
 0x3ea   : > { %v3740_v5 = vshrl.u32 %v10462_v63, 16  ;;  %v3743_v31 = vshll.u32 %v10462_v63, 16  ;;  %7624 = vmatmul.mubr.bf16.gmra.mrb[44].mxu0 %v10462_v63 }
 0x3eb   : > { %v3749_v53 = vrot.slane %v3747_v27, 7  ;;  %v3848_v33 = vrot.slane %v3750_v14, 1  ;;  %7643 = vmatprep.mubr.bf16.mxu0 %v3915_v15  ;;  %v8588_v15 = vld [vmem:[#allocation15 + $0xa8] sm:$0xff]  }
 0x3ec   : > { %v3742_v44 = vrot.slane %v3740_v5, 7  ;;  %v3846_v51 = vrot.slane %v3743_v31, 1 }
 0x3ed   : > { %v3752_v36 = vor.u32 %v3750_v14, %v3749_v53  ;;  %v3849_v11 = vor.u32 %v3848_v33, %v3747_v27  ;;  %v10510_v27 = vld [vmem:[#allocation7 + $0x10] sm:$0xff]  ;;  %v8593_v14 = vld [vmem:[#allocation15 + $0xd0] sm:$0xff]   ;;  %v8596_v53 = vld [vmem:[#allocation15 + $0xe8] sm:$0xff]  }
 0x3ee   : > { %v3745_v40 = vor.u32 %v3743_v31, %v3742_v44  ;;  %v3847_v21 = vor.u32 %v3846_v51, %v3740_v5  ;;  %v8594_v5 = vld [vmem:[#allocation15 + $0xd8] sm:$0xff]   ;;  %v8595_v31 = vld [vmem:[#allocation15 + $0xe0] sm:$0xff]   ;;  %v8597_v33 = vld [vmem:[#allocation15 + $0xf0] sm:$0xff]  }
 0x3ef   : > { %v10473_v24 = vsel %vm9169_vm9, %v3752_v36, %v3815_v12  ;;  %v10477_v57 = vsel %vm9179_vm10, %v3849_v11, %v3912_v43  ;;  %v8598_v12 = vld [vmem:[#allocation15 + $0xf8] sm:$0xff]   ;;  %v10532_v43 = vld [vmem:[#allocation5 + $0x20] sm:$0xff]  ;;  %v8604_v51 = vld [vmem:[#allocation15 + $0x128] sm:$0xff]  }
 0x3f0   : > { %3817 = vst [vmem:[#allocation5 + $0x80] sm:$0xff] %v10473_v24  ;;  %3914 = vst [vmem:[#allocation7 + $0x80] sm:$0xff] %v10477_v57  ;;  %v10483_v30 = vsel %vm9169_vm9, %v3745_v40, %v3812_v9  ;;  %v10487_v54 = vsel %vm9179_vm10, %v3847_v21, %v3909_v39  ;;  %v8603_v44 = vld [vmem:[#allocation15 + $0x120] sm:$0xff]   ;;  %v10536_v36 = vld [vmem:[#allocation5 + $0x30] sm:$0xff] }
 0x3f1   : > { %3814 = vst [vmem:[#allocation5 + $0x78] sm:$0xff] %v10483_v30  ;;  %3911 = vst [vmem:[#allocation7 + $0x78] sm:$0xff] %v10487_v54  ;;  %v8605_v11 = vld [vmem:[#allocation15 + $0x130] sm:$0xff]   ;;  %v8606_v9 = vld [vmem:[#allocation15 + $0x138] sm:$0xff]  }
 0x3f2   : > { %7644 = vmatmul.mubr.bf16.vlgmr.msra.gmra.mrb[16].mxu0 %v10229_v34  ;;  %v8590_v34 = vld [vmem:[#allocation15 + $0xb8] sm:$0xff]   ;;  %v8615_v39 = vld [vmem:[#allocation15 + $0x180] sm:$0xff]   ;;  %v10928_v21 = vld [vmem:[#allocation25_spill] sm:$0xff] }
 0x3f3   : > { %7647 = vmatprep.mubr.bf16.mxu0 %v10219_v35  ;;  %7676 = vmatpush3.bf16.msra.mxu0 %v10325_v13  ;;  %v8589_v35 = vld [vmem:[#allocation15 + $0xb0] sm:$0xff]   ;;  %v10507_v13 = vld [vmem:[#allocation7 + $0x8] sm:$0xff] }
 0x3f4   : > { %7677 = vmatprep.subr.bf16.mxu0 %v8584_v41  ;;  %v10927_v40 = vld [vmem:[#allocation26_spill] sm:$0xff] }
 0x3f7   : > { %7678 = vmatpush3.bf16.msra.mxu0 %v8584_v41  ;;  %v10929_v41 = vld [vmem:[#allocation61_spill] sm:$0xff] }
 0x3f8   : > { %7679 = vmatprep.subr.bf16.mxu0 %v8585_v10 }
 0x3fa   : > { %7648 = vmatmul.mubr.bf16.gmra.mrb[20].mxu0 %v10264_v49  ;;  %v4397_v49 = vld [vmem:[#allocation7] sm:$0xff] }
 0x3fb   : > { %7651 = vmatprep.mubr.bf16.mxu0 %v10251_v29  ;;  %7680 = vmatpush3.bf16.msra.mxu0 %v8585_v10  ;;  %v8591_v29 = vld [vmem:[#allocation15 + $0xc0] sm:$0xff]   ;;  %v3567_v10 = vld [vmem:[#allocation5 + $0x88] sm:$0x1] }
 0x3fc   : > { %7681 = vmatprep.subr.bf16.mxu0 %v8586_v56 }
 0x3ff   : > { %7682 = vmatpush3.bf16.msra.mxu0 %v8586_v56  ;;  %v10936_v56 = vld [vmem:[#allocation31_spill] sm:$0xff] }
 0x400   : > { %7683 = vmatprep.subr.bf16.mxu0 %v8587_v48 }
 0x402   : > { %7652 = vmatmul.mubr.bf16.gmra.mrb[24].mxu0 %v10302_v17 }
 0x403   : > { %7655 = vmatprep.mubr.bf16.mxu0 %v10289_v47  ;;  %7684 = vmatpush3.bf16.msra.mxu0 %v8587_v48  ;;  %v8592_v47 = vld [vmem:[#allocation15 + $0xc8] sm:$0xff]   ;;  %v3568_v48 = vsel %vm9137_vm4, 0, %v3567_v10 }
 0x404   : > { %7685 = vmatprep.subr.bf16.mxu0 %v8588_v15  ;;  %3569 = vst [vmem:[#allocation5 + $0x88] sm:$0x1] %v3568_v48 }
 0x407   : > { %7686 = vmatpush3.bf16.msra.mxu0 %v8588_v15  ;;  %v10931_v15 = vld [vmem:[#allocation60_spill] sm:$0xff] }
 0x408   : > { %7687 = vmatprep.subr.bf16.mxu0 %v8589_v35 }
 0x40a   : > { %7656 = vmatmul.mubr.bf16.gmra.mrb[28].mxu0 %v10342_v8 }
 0x40b   : > { %7659 = vmatprep.mubr.bf16.mxu0 %v10329_v25  ;;  %7688 = vmatpush3.bf16.msra.mxu0 %v8589_v35  ;;  %v8616_v35 = vld [vmem:[#allocation15 + $0x188] sm:$0xff]  }
 0x40c   : > { %7689 = vmatprep.subr.bf16.mxu0 %v8590_v34 }
 0x40f   : > { %7690 = vmatpush3.bf16.msra.mxu0 %v8590_v34  ;;  %v10569_v34 = vld [vmem:[#allocation7 + $0x18] sm:$0xff] }
 0x410   : > { %7723 = vmatprep.subr.bf16.mxu0 %v8591_v29 }
 0x412   : > { %7660 = vmatmul.mubr.bf16.gmra.mrb[32].mxu0 %v10381_v58 }
 0x413   : > { %7663 = vmatprep.mubr.bf16.mxu0 %v10368_v62 }
 0x41a   : > { %7664 = vmatmul.mubr.bf16.gmra.mrb[36].mxu0 %v10419_v19 }
 0x41b   : > { %7667 = vmatprep.mubr.bf16.mxu0 %v10406_v7 }
 0x422   : > { %7668 = vmatmul.mubr.bf16.gmra.mrb[40].mxu0 %v10456_v23 }
 0x423   : > { %7671 = vmatprep.mubr.bf16.mxu0 %v10444_v60 }
 0x42a   : > { %7672 = vmatmul.mubr.bf16.gmra.mrb[44].mxu0 %v10483_v30 }
 0x42b   : > { %7691 = vmatprep.mubr.bf16.mxu0 %v4397_v49  ;;  %v8618_v49 = vld [vmem:[#allocation15 + $0x198] sm:$0xff]  }
 0x432   : > { %7692 = vmatmul.mubr.bf16.vlgmr.msra.gmra.mrb[16].mxu0 %v10507_v13 }
 0x433   : > { %7695 = vmatprep.mubr.bf16.mxu0 %v10510_v27  ;;  %7724 = vmatpush3.bf16.msra.mxu0 %v8591_v29  ;;  %v8617_v29 = vld [vmem:[#allocation15 + $0x190] sm:$0xff]  }
 0x434   : > { %7725 = vmatprep.subr.bf16.mxu0 %v8592_v47 }
 0x437   : > { %7726 = vmatpush3.bf16.msra.mxu0 %v8592_v47  ;;  %v10572_v47 = vld [vmem:[#allocation7 + $0x20] sm:$0xff] }
 0x438   : > { %7727 = vmatprep.subr.bf16.mxu0 %v8593_v14 }
 0x43a   : > { %7696 = vmatmul.mubr.bf16.gmra.mrb[20].mxu0 %v10268_v20  ;;  %v4670_v20 = vld [vmem:[#allocation5 + $0x8] sm:$0xff] }
 0x43b   : > { %7699 = vmatprep.mubr.bf16.mxu0 %v10255_v55  ;;  %7728 = vmatpush3.bf16.msra.mxu0 %v8593_v14  ;;  %v8599_v55 = vld [vmem:[#allocation15 + $0x100] sm:$0xff]   ;;  %v10575_v14 = vld [vmem:[#allocation7 + $0x28] sm:$0xff] }
 0x43c   : > { %7729 = vmatprep.subr.bf16.mxu0 %v8594_v5 }
 0x43f   : > { %7730 = vmatpush3.bf16.msra.mxu0 %v8594_v5  ;;  %v8620_v5 = vld [vmem:[#allocation15 + $0x1a8] sm:$0xff]  }
 0x440   : > { %7731 = vmatprep.subr.bf16.mxu0 %v8595_v31 }
 0x442   : > { %7700 = vmatmul.mubr.bf16.gmra.mrb[24].mxu0 %v10306_v26  ;;  %v10526_v26 = vld [vmem:[#allocation5 + $0x10] sm:$0xff] }
 0x443   : > { %7703 = vmatprep.mubr.bf16.mxu0 %v10293_v50  ;;  %7732 = vmatpush3.bf16.msra.mxu0 %v8595_v31  ;;  %v8600_v50 = vld [vmem:[#allocation15 + $0x108] sm:$0xff]   ;;  %v10578_v31 = vld [vmem:[#allocation7 + $0x30] sm:$0xff] }
 0x444   : > { %7733 = vmatprep.subr.bf16.mxu0 %v8596_v53 }
 0x447   : > { %7734 = vmatpush3.bf16.msra.mxu0 %v8596_v53  ;;  %v10581_v53 = vld [vmem:[#allocation7 + $0x38] sm:$0xff] }
 0x448   : > { %7735 = vmatprep.subr.bf16.mxu0 %v8597_v33 }
 0x44a   : > { %7704 = vmatmul.mubr.bf16.gmra.mrb[28].mxu0 %v10346_v18  ;;  %v8602_v18 = vld [vmem:[#allocation15 + $0x118] sm:$0xff]  }
 0x44b   : > { %7707 = vmatprep.mubr.bf16.mxu0 %v10333_v28  ;;  %7736 = vmatpush3.bf16.msra.mxu0 %v8597_v33  ;;  %v10529_v28 = vld [vmem:[#allocation5 + $0x18] sm:$0xff]  ;;  %v8621_v33 = vld [vmem:[#allocation15 + $0x1b0] sm:$0xff]  }
 0x44c   : > { %7737 = vmatprep.subr.bf16.mxu0 %v8598_v12 }
 0x44f   : > { %7738 = vmatpush3.bf16.msra.mxu0 %v8598_v12  ;;  %v8622_v12 = vld [vmem:[#allocation15 + $0x1b8] sm:$0xff]  }
 0x450   : > { %7771 = vmatprep.subr.bf16.mxu0 %v8599_v55 }
 0x452   : > { %7708 = vmatmul.mubr.bf16.gmra.mrb[32].mxu0 %v10385_v16 }
 0x453   : > { %7711 = vmatprep.mubr.bf16.mxu0 %v10372_v4  ;;  %v8601_v4 = vld [vmem:[#allocation15 + $0x110] sm:$0xff]  }
 0x45a   : > { %7712 = vmatmul.mubr.bf16.gmra.mrb[36].mxu0 %v10423_v52 }
 0x45b   : > { %7715 = vmatprep.mubr.bf16.mxu0 %v10410_v3 }
 0x462   : > { %7716 = vmatmul.mubr.bf16.gmra.mrb[40].mxu0 %v10460_v32 }
 0x463   : > { %7719 = vmatprep.mubr.bf16.mxu0 %v10448_v0 }
 0x46a   : > { %7720 = vmatmul.mubr.bf16.gmra.mrb[44].mxu0 %v10487_v54 }
 0x46b   : > { %7739 = vmatprep.mubr.bf16.mxu0 %v4670_v20  ;;  %v8623_v20 = vld [vmem:[#allocation15 + $0x1c0] sm:$0xff]  }
 0x472   : > { %7740 = vmatmul.mubr.bf16.vlgmr.msra.gmra.mrb[16].mxu0 %v10526_v26 }
 0x473   : > { %7743 = vmatprep.mubr.bf16.mxu0 %v10529_v28  ;;  %7772 = vmatpush3.bf16.msra.mxu0 %v8599_v55  ;;  %v10584_v55 = vld [vmem:[#allocation7 + $0x40] sm:$0xff] }
 0x474   : > { %7773 = vmatprep.subr.bf16.mxu0 %v8600_v50 }
 0x477   : > { %7774 = vmatpush3.bf16.msra.mxu0 %v8600_v50  ;;  %v10588_v50 = vld [vmem:[#allocation7 + $0x50] sm:$0xff] }
 0x478   : > { %7775 = vmatprep.subr.bf16.mxu0 %v8601_v4 }
 0x47a   : > { %7744 = vmatmul.mubr.bf16.gmra.mrb[20].mxu0 %v10532_v43 }
 0x47b   : > { %7747 = vmatprep.mubr.bf16.mxu0 %v10302_v17  ;;  %7776 = vmatpush3.bf16.msra.mxu0 %v8601_v4  ;;  %v8607_v17 = vld [vmem:[#allocation15 + $0x140] sm:$0xff]   ;;  %v8630_v4 = vld [vmem:[#allocation15 + $0x1f8] sm:$0xff]  }
 0x47c   : > { %7777 = vmatprep.subr.bf16.mxu0 %v8602_v18 }
 0x47f   : > { %7778 = vmatpush3.bf16.msra.mxu0 %v8602_v18  ;;  %v5497_v18 = vld [vmem:[#allocation5 + $0x48] sm:$0xff] }
 0x480   : > { %7779 = vmatprep.subr.bf16.mxu0 %v8603_v44 }
 0x482   : > { %7748 = vmatmul.mubr.bf16.gmra.mrb[24].mxu0 %v10536_v36 }
 0x483   : > { %7751 = vmatprep.mubr.bf16.mxu0 %v10342_v8  ;;  %7780 = vmatpush3.bf16.msra.mxu0 %v8603_v44  ;;  %v8609_v8 = vld [vmem:[#allocation15 + $0x150] sm:$0xff]   ;;  %v8631_v44 = vld [vmem:[#allocation15 + $0x200] sm:$0xff]  }
 0x484   : > { %7781 = vmatprep.subr.bf16.mxu0 %v8604_v51 }
 0x487   : > { %7782 = vmatpush3.bf16.msra.mxu0 %v8604_v51  ;;  %v5499_v51 = vld [vmem:[#allocation5 + $0x58] sm:$0xff] }
 0x488   : > { %7783 = vmatprep.subr.bf16.mxu0 %v8605_v11 }
 0x48a   : > { %7752 = vmatmul.mubr.bf16.gmra.mrb[28].mxu0 %v10329_v25  ;;  %v8608_v25 = vld [vmem:[#allocation15 + $0x148] sm:$0xff]  }
 0x48b   : > { %7755 = vmatprep.mubr.bf16.mxu0 %v10381_v58  ;;  %7784 = vmatpush3.bf16.msra.mxu0 %v8605_v11  ;;  %v8611_v58 = vld [vmem:[#allocation15 + $0x160] sm:$0xff]   ;;  %v3621_v11 = vld [vmem:[#allocation7 + $0x88] sm:$0x80] }
 0x48c   : > { %7785 = vmatprep.subr.bf16.mxu0 %v8606_v9 }
 0x48f   : > { %7786 = vmatpush3.bf16.msra.mxu0 %v8606_v9 }
 0x490   : > { %7819 = vmatprep.subr.bf16.mxu0 %v8607_v17 }
 0x492   : > { %7756 = vmatmul.mubr.bf16.gmra.mrb[32].mxu0 %v10368_v62  ;;  %v8610_v62 = vld [vmem:[#allocation15 + $0x158] sm:$0xff]  }
 0x493   : > { %7759 = vmatprep.mubr.bf16.mxu0 %v10419_v19  ;;  %v8614_v19 = vld [vmem:[#allocation15 + $0x178] sm:$0xff]  }
 0x49a   : > { %7760 = vmatmul.mubr.bf16.gmra.mrb[36].mxu0 %v10406_v7  ;;  %v8613_v7 = vld [vmem:[#allocation15 + $0x170] sm:$0xff]  }
 0x49b   : > { %7763 = vmatprep.mubr.bf16.mxu0 %v10456_v23 }
 0x4a2   : > { %7764 = vmatmul.mubr.bf16.gmra.mrb[40].mxu0 %v10444_v60 }
 0x4a3   : > { %7767 = vmatprep.mubr.bf16.mxu0 %v10483_v30 }
 0x4aa   : > { %7768 = vmatmul.mubr.bf16.gmra.mrb[44].mxu0 %v10473_v24 }
 0x4ab   : > { %7787 = vmatprep.mubr.bf16.mxu0 %v10201_v59  ;;  %v8612_v59 = vld [vmem:[#allocation15 + $0x168] sm:$0xff]  }
 0x4b2   : > { %7788 = vmatmul.mubr.bf16.vlgmr.msra.gmra.mrb[16].mxu0 %v10198_v46 }
 0x4b3   : > { %7791 = vmatprep.mubr.bf16.mxu0 %v10233_v1  ;;  %7820 = vmatpush3.bf16.msra.mxu0 %v8607_v17  ;;  %v3622_v17 = vsel %vm9141_vm6, 0, %v3621_v11 }
 0x4b4   : > { %7821 = vmatprep.subr.bf16.mxu0 %v8608_v25  ;;  %3623 = vst [vmem:[#allocation7 + $0x88] sm:$0x80] %v3622_v17 }
 0x4b7   : > { %7822 = vmatpush3.bf16.msra.mxu0 %v8608_v25  ;;  %v5505_v25 = vld [vmem:[#allocation5 + $0x88] sm:$0xff] }
 0x4b8   : > { %7823 = vmatprep.subr.bf16.mxu0 %v8609_v8 }
 0x4ba   : > { %7792 = vmatmul.mubr.bf16.gmra.mrb[20].mxu0 %v10223_v45 }
 0x4bb   : > { %7795 = vmatprep.mubr.bf16.mxu0 %v10270_v2  ;;  %7824 = vmatpush3.bf16.msra.mxu0 %v8609_v8  ;;  %v8632_v8 = vld [vmem:[#allocation15 + $0x208] sm:$0xff]  }
 0x4bc   : > { %7825 = vmatprep.subr.bf16.mxu0 %v8610_v62 }
 0x4bf   : > { %7826 = vmatpush3.bf16.msra.mxu0 %v8610_v62  ;;  %v10639_v62 = vld [vmem:[%s10829_s6] ss:$0 sm:$0xff] }
 0x4c0   : > { %7827 = vmatprep.subr.bf16.mxu0 %v8611_v58  ;;  %v2264_v48 = vadd.f32 %v10639_v62, %v10936_v56 }
 0x4c2   : > { %7796 = vmatmul.mubr.bf16.gmra.mrb[24].mxu0 %v10257_v6 }
 0x4c3   : > { %7799 = vmatprep.mubr.bf16.mxu0 %v10308_v22  ;;  %7828 = vmatpush3.bf16.msra.mxu0 %v8611_v58 }
 0x4c4   : > { %7829 = vmatprep.subr.bf16.mxu0 %v8612_v59 }
 0x4c7   : > { %7830 = vmatpush3.bf16.msra.mxu0 %v8612_v59  ;;  %v10934_v59 = vld [vmem:[#allocation30_spill] sm:$0xff] }
 0x4c8   : > { %7831 = vmatprep.subr.bf16.mxu0 %v8613_v7 }
 0x4ca   : > { %7800 = vmatmul.mubr.bf16.gmra.mrb[28].mxu0 %v10295_v42 }
 0x4cb   : > { %7803 = vmatprep.mubr.bf16.mxu0 %v10348_v38  ;;  %7832 = vmatpush3.bf16.msra.mxu0 %v8613_v7  ;;  %v2263_v7 = vadd.f32 %v10639_v62, %v10934_v59 }
 0x4cc   : > { %7833 = vmatprep.subr.bf16.mxu0 %v8614_v19 }
 0x4cf   : > { %7834 = vmatpush3.bf16.msra.mxu0 %v8614_v19 }
 0x4d0   : > { %7867 = vmatprep.subr.bf16.mxu0 %v8615_v39 }
 0x4d2   : > { %7804 = vmatmul.mubr.bf16.gmra.mrb[32].mxu0 %v10335_v37 }
 0x4d3   : > { %7807 = vmatprep.mubr.bf16.mxu0 %v10927_v40 }
 0x4da   : > { %7808 = vmatmul.mubr.bf16.gmra.mrb[36].mxu0 %v10928_v21 }
 0x4db   : > { %7811 = vmatprep.mubr.bf16.mxu0 %v10929_v41 }
 0x4e2   : > { %7812 = vmatmul.mubr.bf16.gmra.mrb[40].mxu0 %v10931_v15 }
 0x4e3   : > { %7815 = vmatprep.mubr.bf16.mxu0 %v10462_v63 }
 0x4ea   : > { %7816 = vmatmul.mubr.bf16.gmra.mrb[44].mxu0 %v10450_v61 }
 0x4eb   : > { %7835 = vmatprep.mubr.bf16.mxu0 %v10507_v13  ;;  %v8619_v13 = vld [vmem:[#allocation15 + $0x1a0] sm:$0xff]  }
 0x4f2   : > { %7836 = vmatmul.mubr.bf16.vlgmr.msra.gmra.mrb[16].mxu0 %v10510_v27 }
 0x4f3   : > { %7839 = vmatprep.mubr.bf16.mxu0 %v10569_v34  ;;  %7868 = vmatpush3.bf16.msra.mxu0 %v8615_v39 }
 0x4f4   : > { %7869 = vmatprep.subr.bf16.mxu0 %v8616_v35 }
 0x4f7   : > { %7870 = vmatpush3.bf16.msra.mxu0 %v8616_v35 }
 0x4f8   : > { %7871 = vmatprep.subr.bf16.mxu0 %v8617_v29 }
 0x4fa   : > { %7840 = vmatmul.mubr.bf16.gmra.mrb[20].mxu0 %v10572_v47 }
 0x4fb   : > { %7843 = vmatprep.mubr.bf16.mxu0 %v10575_v14  ;;  %7872 = vmatpush3.bf16.msra.mxu0 %v8617_v29  ;;  %v10937_v29 = vld [vmem:[#allocation29_spill] sm:$0xff] }
 0x4fc   : > { %7873 = vmatprep.subr.bf16.mxu0 %v8618_v49 }
 0x4ff   : > { %7874 = vmatpush3.bf16.msra.mxu0 %v8618_v49  ;;  %v2262_v49 = vadd.f32 %v10639_v62, %v10937_v29 }
 0x500   : > { %7875 = vmatprep.subr.bf16.mxu0 %v8619_v13 }
 0x502   : > { %7844 = vmatmul.mubr.bf16.gmra.mrb[24].mxu0 %v10578_v31 }
 0x503   : > { %7847 = vmatprep.mubr.bf16.mxu0 %v10581_v53  ;;  %7876 = vmatpush3.bf16.msra.mxu0 %v8619_v13 }
 0x504   : > { %7877 = vmatprep.subr.bf16.mxu0 %v8620_v5 }
 0x507   : > { %7878 = vmatpush3.bf16.msra.mxu0 %v8620_v5 }
 0x508   : > { %7879 = vmatprep.subr.bf16.mxu0 %v8621_v33 }
 0x50a   : > { %7848 = vmatmul.mubr.bf16.gmra.mrb[28].mxu0 %v10584_v55 }
 0x50b   : > { %7851 = vmatprep.mubr.bf16.mxu0 %v10385_v16  ;;  %7880 = vmatpush3.bf16.msra.mxu0 %v8621_v33  ;;  %v8624_v16 = vld [vmem:[#allocation15 + $0x1c8] sm:$0xff]  }
 0x50c   : > { %7881 = vmatprep.subr.bf16.mxu0 %v8622_v12 }
 0x50f   : > { %7882 = vmatpush3.bf16.msra.mxu0 %v8622_v12 }
 0x510   : > { %7915 = vmatprep.subr.bf16.mxu0 %v8623_v20 }
 0x512   : > { %7852 = vmatmul.mubr.bf16.gmra.mrb[32].mxu0 %v10588_v50 }
 0x513   : > { %7855 = vmatprep.mubr.bf16.mxu0 %v10423_v52  ;;  %v8625_v52 = vld [vmem:[#allocation15 + $0x1d0] sm:$0xff]  }
 0x51a   : > { %7856 = vmatmul.mubr.bf16.gmra.mrb[36].mxu0 %v10410_v3  ;;  %v8626_v3 = vld [vmem:[#allocation15 + $0x1d8] sm:$0xff]  }
 0x51b   : > { %7859 = vmatprep.mubr.bf16.mxu0 %v10460_v32  ;;  %v5493_v32 = vld [vmem:[#allocation5 + $0x28] sm:$0xff] }
 0x522   : > { %7860 = vmatmul.mubr.bf16.gmra.mrb[40].mxu0 %v10448_v0  ;;  %v8627_v0 = vld [vmem:[#allocation15 + $0x1e0] sm:$0xff]  }
 0x523   : > { %7863 = vmatprep.mubr.bf16.mxu0 %v10487_v54  ;;  %v5495_v54 = vld [vmem:[#allocation5 + $0x38] sm:$0xff] }
 0x52a   : > { %7864 = vmatmul.mubr.bf16.gmra.mrb[44].mxu0 %v10477_v57  ;;  %v8628_v57 = vld [vmem:[#allocation15 + $0x1e8] sm:$0xff]  }
 0x52b   : > { %7883 = vmatprep.mubr.bf16.mxu0 %v10526_v26  ;;  %v5496_v26 = vld [vmem:[#allocation5 + $0x40] sm:$0xff] }
 0x532   : > { %7884 = vmatmul.mubr.bf16.vlgmr.msra.gmra.mrb[16].mxu0 %v10529_v28  ;;  %v8629_v28 = vld [vmem:[#allocation15 + $0x1f0] sm:$0xff]  }
 0x533   : > { %7887 = vmatprep.mubr.bf16.mxu0 %v10532_v43  ;;  %7916 = vmatpush3.bf16.msra.mxu0 %v8623_v20  ;;  %v5498_v43 = vld [vmem:[#allocation5 + $0x50] sm:$0xff]  ;;  %v10938_v20 = vld [vmem:[#allocation34_spill] sm:$0xff] }
 0x534   : > { %7917 = vmatprep.subr.bf16.mxu0 %v8624_v16 }
 0x537   : > { %7918 = vmatpush3.bf16.msra.mxu0 %v8624_v16 }
 0x538   : > { %7919 = vmatprep.subr.bf16.mxu0 %v8625_v52 }
 0x53a   : > { %7888 = vmatmul.mubr.bf16.gmra.mrb[20].mxu0 %v5493_v32 }
 0x53b   : > { %7891 = vmatprep.mubr.bf16.mxu0 %v10536_v36  ;;  %7920 = vmatpush3.bf16.msra.mxu0 %v8625_v52  ;;  %v5500_v36 = vld [vmem:[#allocation5 + $0x60] sm:$0xff] }
 0x53c   : > { %7921 = vmatprep.subr.bf16.mxu0 %v8626_v3 }
 0x53f   : > { %7922 = vmatpush3.bf16.msra.mxu0 %v8626_v3  ;;  %v10939_v3 = vld [vmem:[#allocation32_spill] sm:$0xff] }
 0x540   : > { %7923 = vmatprep.subr.bf16.mxu0 %v8627_v0  ;;  %v2265_v32 = vadd.f32 %v10639_v62, %v10939_v3 }
 0x542   : > { %7892 = vmatmul.mubr.bf16.gmra.mrb[24].mxu0 %v5495_v54  ;;  %v10940_v54 = vld [vmem:[#allocation35_spill] sm:$0xff] }
 0x543   : > { %7895 = vmatprep.mubr.bf16.mxu0 %v5496_v26  ;;  %7924 = vmatpush3.bf16.msra.mxu0 %v8627_v0  ;;  %v2268_v26 = vadd.f32 %v10639_v62, %v10940_v54 }
 0x544   : > { %7925 = vmatprep.subr.bf16.mxu0 %v8628_v57 }
 0x547   : > { %7926 = vmatpush3.bf16.msra.mxu0 %v8628_v57 }
 0x548   : > { %7927 = vmatprep.subr.bf16.mxu0 %v8629_v28 }
 0x54a   : > { %7896 = vmatmul.mubr.bf16.gmra.mrb[28].mxu0 %v5497_v18 }
 0x54b   : > { %7899 = vmatprep.mubr.bf16.mxu0 %v5498_v43  ;;  %7928 = vmatpush3.bf16.msra.mxu0 %v8629_v28  ;;  %v10941_v43 = vld [vmem:[#allocation33_spill] sm:$0xff] }
 0x54c   : > { %7929 = vmatprep.subr.bf16.mxu0 %v8630_v4 }
 0x54f   : > { %7930 = vmatpush3.bf16.msra.mxu0 %v8630_v4 }
 0x550   : > { %7963 = vmatprep.subr.bf16.mxu0 %v8631_v44 }
 0x552   : > { %7900 = vmatmul.mubr.bf16.gmra.mrb[32].mxu0 %v5499_v51 }
 0x553   : > { %7903 = vmatprep.mubr.bf16.mxu0 %v5500_v36 }
 0x55a   : > { %7904 = vmatmul.mubr.bf16.gmra.mrb[36].mxu0 %v10456_v23  ;;  %v8634_v23 = vld [vmem:[#allocation15 + $0x218] sm:$0xff]  }
 0x55b   : > { %7907 = vmatprep.mubr.bf16.mxu0 %v10444_v60  ;;  %v8633_v60 = vld [vmem:[#allocation15 + $0x210] sm:$0xff]  }
 0x562   : > { %7908 = vmatmul.mubr.bf16.gmra.mrb[40].mxu0 %v10483_v30  ;;  %v6053_v30 = vld [vmem:[#allocation7 + $0x88] sm:$0xff] }
 0x563   : > { %7911 = vmatprep.mubr.bf16.mxu0 %v10473_v24  ;;  %v8635_v24 = vld [vmem:[#allocation15 + $0x220] sm:$0xff]  }
 0x56a   : > { %7912 = vmatmul.mubr.bf16.gmra.mrb[44].mxu0 %v5505_v25 }
 0x56b   : > { %7931 = vmatprep.mubr.bf16.mxu0 %v10198_v46  ;;  %v8636_v46 = vld [vmem:[#allocation15 + $0x228] sm:$0xff]  }
 0x572   : > { %7932 = vmatmul.mubr.bf16.vlgmr.msra.gmra.mrb[16].mxu0 %v10233_v1  ;;  %v8638_v1 = vld [vmem:[#allocation15 + $0x238] sm:$0xff]  }
 0x573   : > { %7935 = vmatprep.mubr.bf16.mxu0 %v10223_v45  ;;  %7964 = vmatpush3.bf16.msra.mxu0 %v8631_v44  ;;  %v8637_v45 = vld [vmem:[#allocation15 + $0x230] sm:$0xff]   ;;  %v2266_v44 = vadd.f32 %v10639_v62, %v10941_v43 }
 0x574   : > { %7965 = vmatprep.subr.bf16.mxu0 %v8632_v8 }
 0x577   : > { %7966 = vmatpush3.bf16.msra.mxu0 %v8632_v8 }
 0x578   : > { %7967 = vmatprep.subr.bf16.mxu0 %v8633_v60 }
 0x57a   : > { %7936 = vmatmul.mubr.bf16.gmra.mrb[20].mxu0 %v10270_v2  ;;  %v6047_v2 = vld [vmem:[#allocation7 + $0x58] sm:$0xff] }
 0x57b   : > { %7939 = vmatprep.mubr.bf16.mxu0 %v10257_v6  ;;  %7968 = vmatpush3.bf16.msra.mxu0 %v8633_v60  ;;  %v10933_v6 = vld [vmem:[#allocation27_spill] sm:$0xff] }
 0x57c   : > { %7969 = vmatprep.subr.bf16.mxu0 %v8634_v23 }
 0x57f   : > { %7970 = vmatpush3.bf16.msra.mxu0 %v8634_v23 }
 0x580   : > { %7971 = vmatprep.subr.bf16.mxu0 %v8635_v24 }
 0x582   : > { %7940 = vmatmul.mubr.bf16.gmra.mrb[24].mxu0 %v10308_v22  ;;  %v6049_v22 = vld [vmem:[#allocation7 + $0x68] sm:$0xff] }
 0x583   : > { %7943 = vmatprep.mubr.bf16.mxu0 %v10295_v42  ;;  %7972 = vmatpush3.bf16.msra.mxu0 %v8635_v24  ;;  %v6048_v42 = vld [vmem:[#allocation7 + $0x60] sm:$0xff]  ;;  %v10942_v24 = vld [vmem:[#allocation38_spill] sm:$0xff] }
 0x584   : > { %7973 = vmatprep.subr.bf16.mxu0 %v8636_v46 }
 0x587   : > { %7974 = vmatpush3.bf16.msra.mxu0 %v8636_v46  ;;  %v2271_v46 = vadd.f32 %v10639_v62, %v10942_v24 }
 0x588   : > { %7975 = vmatprep.subr.bf16.mxu0 %v8637_v45 }
 0x58a   : > { %7944 = vmatmul.mubr.bf16.gmra.mrb[28].mxu0 %v10348_v38  ;;  %v6050_v38 = vld [vmem:[#allocation7 + $0x70] sm:$0xff] }
 0x58b   : > { %7947 = vmatprep.mubr.bf16.mxu0 %v10335_v37  ;;  %7976 = vmatpush3.bf16.msra.mxu0 %v8637_v45  ;;  %v6045_v37 = vld [vmem:[#allocation7 + $0x48] sm:$0xff] }
 0x58c   : > { %7977 = vmatprep.subr.bf16.mxu0 %v8638_v1 }
 0x58f   : > { %7978 = vmatpush3.bf16.msra.mxu0 %v8638_v1 }
 0x592   : > { %7948 = vmatmul.mubr.bf16.gmra.mrb[32].mxu0 %v10927_v40  ;;  %v10935_v40 = vld [vmem:[#allocation28_spill] sm:$0xff] }
 0x593   : > { %7951 = vmatprep.mubr.bf16.mxu0 %v10928_v21  ;;  %v2261_v21 = vadd.f32 %v10639_v62, %v10935_v40 }
 0x59a   : > { %7952 = vmatmul.mubr.bf16.gmra.mrb[36].mxu0 %v10929_v41 }
 0x59b   : > { %7955 = vmatprep.mubr.bf16.mxu0 %v10931_v15 }
 0x5a2   : > { %7956 = vmatmul.mubr.bf16.gmra.mrb[40].mxu0 %v10462_v63  ;;  %v6052_v63 = vld [vmem:[#allocation7 + $0x80] sm:$0xff] }
 0x5a3   : > { %7959 = vmatprep.mubr.bf16.mxu0 %v10450_v61  ;;  %v6051_v61 = vld [vmem:[#allocation7 + $0x78] sm:$0xff] }
 0x5aa   : > { %7960 = vmatmul.mubr.bf16.gmra.mrb[44].mxu0 %v10933_v6  ;;  %v10943_v6 = vld [vmem:[#allocation36_spill] sm:$0xff] }
 0x5ab   : > { %7979 = vmatprep.mubr.bf16.mxu0 %v10510_v27  ;;  %v10634_v27 = vld [vmem:[%s10828_s5] ss:$0 sm:$0xff] }
 0x5b2   : > { %7980 = vmatmul.mubr.bf16.vlgmr.msra.gmra.mrb[16].mxu0 %v10569_v34 }
 0x5b3   : > { %7983 = vmatprep.mubr.bf16.mxu0 %v10572_v47 }
 0x5ba   : > { %7984 = vmatmul.mubr.bf16.gmra.mrb[20].mxu0 %v10575_v14 }
 0x5bb   : > { %7987 = vmatprep.mubr.bf16.mxu0 %v10578_v31 }
 0x5c2   : > { %7988 = vmatmul.mubr.bf16.gmra.mrb[24].mxu0 %v10581_v53 }
 0x5c3   : > { %7991 = vmatprep.mubr.bf16.mxu0 %v10584_v55 }
 0x5ca   : > { %7992 = vmatmul.mubr.bf16.gmra.mrb[28].mxu0 %v6045_v37  ;;  %v2269_v37 = vadd.f32 %v10639_v62, %v10943_v6 }
 0x5cb   : > { %7995 = vmatprep.mubr.bf16.mxu0 %v10588_v50  ;;  %v2267_v50 = vadd.f32 %v10639_v62, %v10938_v20 }
 0x5d2   : > { %7996 = vmatmul.mubr.bf16.gmra.mrb[32].mxu0 %v6047_v2 }
 0x5d3   : > { %7999 = vmatprep.mubr.bf16.mxu0 %v6048_v42 }
 0x5da   : > { %8000 = vmatmul.mubr.bf16.gmra.mrb[36].mxu0 %v6049_v22  ;;  %v10944_v22 = vld [vmem:[#allocation39_spill] sm:$0xff] }
 0x5db   : > { %8003 = vmatprep.mubr.bf16.mxu0 %v6050_v38  ;;  %v2272_v38 = vadd.f32 %v10639_v62, %v10944_v22 }
 0x5e2   : > { %8004 = vmatmul.mubr.bf16.gmra.mrb[40].mxu0 %v6051_v61 }
 0x5e3   : > { %8007 = vmatprep.mubr.bf16.mxu0 %v6052_v63 }
 0x5ea   : > { %8008 = vmatmul.mubr.bf16.gmra.mrb[44].mxu0 %v6053_v30 }
 0x685   : > { %v7981_v58 = vpop.f32.mrb[16].mxu0 }
 0x686   : > { %v6352_v19 = vadd.f32 %v7981_v58, %v10634_v27  ;;  %v6152_v39 = vpop.f32.mrb[17].mxu0  ;;  %v10945_v58 = vld [vmem:[#allocation37_spill] sm:$0xff] }
 0x687   : > { %v6350_v41 = vadd.f32 %v10634_v27, %v6152_v39  ;;  %v7982_v10 = vpop.f32.mrb[18].mxu0  ;;  %v2270_v59 = vadd.f32 %v10639_v62, %v10945_v58 }
 0x688   : > { %v6384_v15 = vadd.f32 %v6352_v19, %v2263_v7  ;;  %v6353_v35 = vadd.f32 %v7982_v10, %v10634_v27  ;;  %v6155_v34 = vpop.f32.mrb[19].mxu0 }
 0x689   : > { %v6382_v47 = vadd.f32 %v6350_v41, %v2261_v21  ;;  %v6351_v14 = vadd.f32 %v10634_v27, %v6155_v34 }
 0x68a   : > { %v6416_v13 = vmax.f32 %v6384_v15, 0.0  ;;  %v6385_v5 = vadd.f32 %v6353_v35, %v2264_v48  ;;  %v10946_v15 = vld [vmem:[#allocation42_spill] sm:$0xff] }
 0x68b   : > { %v6414_v31 = vmax.f32 %v6382_v47, 0.0  ;;  %v6383_v53 = vadd.f32 %v6351_v14, %v2262_v49  ;;  %v2275_v35 = vadd.f32 %v10639_v62, %v10946_v15  ;;  %v10947_v49 = vld [vmem:[#allocation40_spill] sm:$0xff] }
 0x68c   : > { %6448 = vst [vmem:[%s10654_s8 + $0x10] sm:$0xff] %v6416_v13  ;;  %v6417_v33 = vmax.f32 %v6385_v5, 0.0  ;;  %v2273_v47 = vadd.f32 %v10639_v62, %v10947_v49  ;;  %v10948_v5 = vld [vmem:[#allocation43_spill] sm:$0xff] }
 0x68d   : > { %6446 = vst [vmem:[%s10654_s8] sm:$0xff] %v6414_v31  ;;  %v6415_v12 = vmax.f32 %v6383_v53, 0.0  ;;  %v7985_v55 = vpop.f32.mrb[20].mxu0  ;;  %v2276_v31 = vadd.f32 %v10639_v62, %v10948_v5 }
 0x68e   : > { %6449 = vst [vmem:[%s10654_s8 + $0x18] sm:$0xff] %v6417_v33  ;;  %v6356_v16 = vadd.f32 %v7985_v55, %v10634_v27  ;;  %v6168_v52 = vpop.f32.mrb[21].mxu0  ;;  %v10949_v55 = vld [vmem:[#allocation41_spill] sm:$0xff] }
 0x68f   : > { %6447 = vst [vmem:[%s10654_s8 + $0x8] sm:$0xff] %v6415_v12  ;;  %v6354_v0 = vadd.f32 %v10634_v27, %v6168_v52  ;;  %v7986_v57 = vpop.f32.mrb[22].mxu0  ;;  %v2274_v20 = vadd.f32 %v10639_v62, %v10949_v55 }
 0x690   : > { %v6388_v28 = vadd.f32 %v6356_v16, %v2267_v50  ;;  %v6357_v4 = vadd.f32 %v7986_v57, %v10634_v27  ;;  %v6171_v18 = vpop.f32.mrb[23].mxu0 }
 0x691   : > { %v6386_v51 = vadd.f32 %v6354_v0, %v2265_v32  ;;  %v6355_v36 = vadd.f32 %v10634_v27, %v6171_v18 }
 0x692   : > { %v6420_v11 = vmax.f32 %v6388_v28, 0.0  ;;  %v6389_v9 = vadd.f32 %v6357_v4, %v2268_v26  ;;  %v10950_v28 = vld [vmem:[#allocation46_spill] sm:$0xff] }
 0x693   : > { %v6418_v17 = vmax.f32 %v6386_v51, 0.0  ;;  %v6387_v25 = vadd.f32 %v6355_v36, %v2266_v44  ;;  %v2279_v4 = vadd.f32 %v10639_v62, %v10950_v28  ;;  %v10951_v44 = vld [vmem:[#allocation44_spill] sm:$0xff] }
 0x694   : > { %6452 = vst [vmem:[%s10654_s8 + $0x30] sm:$0xff] %v6420_v11  ;;  %v6421_v8 = vmax.f32 %v6389_v9, 0.0  ;;  %v2277_v51 = vadd.f32 %v10639_v62, %v10951_v44  ;;  %v10952_v9 = vld [vmem:[#allocation47_spill] sm:$0xff] }
 0x695   : > { %6450 = vst [vmem:[%s10654_s8 + $0x20] sm:$0xff] %v6418_v17  ;;  %v6419_v60 = vmax.f32 %v6387_v25, 0.0  ;;  %v7989_v23 = vpop.f32.mrb[24].mxu0  ;;  %v2280_v17 = vadd.f32 %v10639_v62, %v10952_v9 }
 0x696   : > { %6453 = vst [vmem:[%s10654_s8 + $0x38] sm:$0xff] %v6421_v8  ;;  %v6360_v45 = vadd.f32 %v7989_v23, %v10634_v27  ;;  %v6184_v1 = vpop.f32.mrb[25].mxu0  ;;  %v10953_v23 = vld [vmem:[#allocation45_spill] sm:$0xff] }
 0x697   : > { %6451 = vst [vmem:[%s10654_s8 + $0x28] sm:$0xff] %v6419_v60  ;;  %v6358_v2 = vadd.f32 %v10634_v27, %v6184_v1  ;;  %v7990_v42 = vpop.f32.mrb[26].mxu0  ;;  %v2278_v24 = vadd.f32 %v10639_v62, %v10953_v23 }
 0x698   : > { %v6392_v61 = vadd.f32 %v6360_v45, %v2271_v46  ;;  %v6361_v63 = vadd.f32 %v7990_v42, %v10634_v27  ;;  %v6187_v30 = vpop.f32.mrb[27].mxu0 }
 0x699   : > { %v6390_v7 = vadd.f32 %v6358_v2, %v2269_v37  ;;  %v6359_v19 = vadd.f32 %v10634_v27, %v6187_v30 }
 0x69a   : > { %v6424_v39 = vmax.f32 %v6392_v61, 0.0  ;;  %v6393_v40 = vadd.f32 %v6361_v63, %v2272_v38  ;;  %v10954_v61 = vld [vmem:[#allocation50_spill] sm:$0xff] }
 0x69b   : > { %v6422_v21 = vmax.f32 %v6390_v7, 0.0  ;;  %v6391_v41 = vadd.f32 %v6359_v19, %v2270_v59  ;;  %v2283_v63 = vadd.f32 %v10639_v62, %v10954_v61  ;;  %v10955_v59 = vld [vmem:[#allocation48_spill] sm:$0xff] }
 0x69c   : > { %6456 = vst [vmem:[%s10654_s8 + $0x50] sm:$0xff] %v6424_v39  ;;  %v6425_v10 = vmax.f32 %v6393_v40, 0.0  ;;  %v2281_v7 = vadd.f32 %v10639_v62, %v10955_v59  ;;  %v10956_v40 = vld [vmem:[#allocation51_spill] sm:$0xff] }
 0x69d   : > { %6454 = vst [vmem:[%s10654_s8 + $0x40] sm:$0xff] %v6422_v21  ;;  %v6423_v56 = vmax.f32 %v6391_v41, 0.0  ;;  %v7993_v48 = vpop.f32.mrb[28].mxu0  ;;  %v2284_v21 = vadd.f32 %v10639_v62, %v10956_v40 }
 0x69e   : > { %6457 = vst [vmem:[%s10654_s8 + $0x58] sm:$0xff] %v6425_v10  ;;  %v6364_v34 = vadd.f32 %v7993_v48, %v10634_v27  ;;  %v6200_v29 = vpop.f32.mrb[29].mxu0  ;;  %v10957_v48 = vld [vmem:[#allocation49_spill] sm:$0xff] }
 0x69f   : > { %6455 = vst [vmem:[%s10654_s8 + $0x48] sm:$0xff] %v6423_v56  ;;  %v6362_v14 = vadd.f32 %v10634_v27, %v6200_v29  ;;  %v7994_v13 = vpop.f32.mrb[30].mxu0  ;;  %v2282_v15 = vadd.f32 %v10639_v62, %v10957_v48 }
 0x6a0   : > { %v6396_v53 = vadd.f32 %v6364_v34, %v2275_v35  ;;  %v6365_v33 = vadd.f32 %v7994_v13, %v10634_v27  ;;  %v6203_v12 = vpop.f32.mrb[31].mxu0 }
 0x6a1   : > { %v6394_v50 = vadd.f32 %v6362_v14, %v2273_v47  ;;  %v6363_v16 = vadd.f32 %v10634_v27, %v6203_v12 }
 0x6a2   : > { %v6428_v52 = vmax.f32 %v6396_v53, 0.0  ;;  %v6397_v3 = vadd.f32 %v6365_v33, %v2276_v31  ;;  %v10958_v53 = vld [vmem:[#allocation54_spill] sm:$0xff] }
 0x6a3   : > { %v6426_v32 = vmax.f32 %v6394_v50, 0.0  ;;  %v6395_v0 = vadd.f32 %v6363_v16, %v2274_v20  ;;  %v2287_v33 = vadd.f32 %v10639_v62, %v10958_v53  ;;  %v10959_v20 = vld [vmem:[#allocation52_spill] sm:$0xff] }
 0x6a4   : > { %6460 = vst [vmem:[%s10654_s8 + $0x70] sm:$0xff] %v6428_v52  ;;  %v6429_v57 = vmax.f32 %v6397_v3, 0.0  ;;  %v2285_v50 = vadd.f32 %v10639_v62, %v10959_v20  ;;  %v10960_v3 = vld [vmem:[#allocation55_spill] sm:$0xff] }
 0x6a5   : > { %6458 = vst [vmem:[%s10654_s8 + $0x60] sm:$0xff] %v6426_v32  ;;  %v6427_v54 = vmax.f32 %v6395_v0, 0.0  ;;  %v7997_v26 = vpop.f32.mrb[32].mxu0  ;;  %v2288_v32 = vadd.f32 %v10639_v62, %v10960_v3 }
 0x6a6   : > { %6461 = vst [vmem:[%s10654_s8 + $0x78] sm:$0xff] %v6429_v57  ;;  %v6368_v18 = vadd.f32 %v7997_v26, %v10634_v27  ;;  %v6216_v43 = vpop.f32.mrb[33].mxu0  ;;  %v10961_v26 = vld [vmem:[#allocation53_spill] sm:$0xff] }
 0x6a7   : > { %6459 = vst [vmem:[%s10654_s8 + $0x68] sm:$0xff] %v6427_v54  ;;  %v6366_v36 = vadd.f32 %v10634_v27, %v6216_v43  ;;  %v7998_v11 = vpop.f32.mrb[34].mxu0  ;;  %v2286_v28 = vadd.f32 %v10639_v62, %v10961_v26 }
 0x6a8   : > { %v6400_v25 = vadd.f32 %v6368_v18, %v2279_v4  ;;  %v6369_v8 = vadd.f32 %v7998_v11, %v10634_v27  ;;  %v6219_v60 = vpop.f32.mrb[35].mxu0 }
 0x6a9   : > { %v6398_v46 = vadd.f32 %v6366_v36, %v2277_v51  ;;  %v6367_v45 = vadd.f32 %v10634_v27, %v6219_v60 }
 0x6aa   : > { %v6432_v1 = vmax.f32 %v6400_v25, 0.0  ;;  %v6401_v6 = vadd.f32 %v6369_v8, %v2280_v17  ;;  %v10962_v25 = vld [vmem:[#allocation58_spill] sm:$0xff] }
 0x6ab   : > { %v6430_v37 = vmax.f32 %v6398_v46, 0.0  ;;  %v6399_v2 = vadd.f32 %v6367_v45, %v2278_v24  ;;  %v2291_v8 = vadd.f32 %v10639_v62, %v10962_v25  ;;  %v10963_v24 = vld [vmem:[#allocation56_spill] sm:$0xff] }
 0x6ac   : > { %6464 = vst [vmem:[%s10654_s8 + $0x90] sm:$0xff] %v6432_v1  ;;  %v6433_v42 = vmax.f32 %v6401_v6, 0.0  ;;  %v2289_v46 = vadd.f32 %v10639_v62, %v10963_v24  ;;  %v10964_v6 = vld [vmem:[#allocation59_spill] sm:$0xff] }
 0x6ad   : > { %6462 = vst [vmem:[%s10654_s8 + $0x80] sm:$0xff] %v6430_v37  ;;  %v6431_v22 = vmax.f32 %v6399_v2, 0.0  ;;  %v8001_v38 = vpop.f32.mrb[36].mxu0  ;;  %v2292_v37 = vadd.f32 %v10639_v62, %v10964_v6 }
 0x6ae   : > { %6465 = vst [vmem:[%s10654_s8 + $0x98] sm:$0xff] %v6433_v42  ;;  %v6372_v30 = vadd.f32 %v8001_v38, %v10634_v27  ;;  %v6232_v58 = vpop.f32.mrb[37].mxu0  ;;  %v10965_v38 = vld [vmem:[#allocation57_spill] sm:$0xff] }
 0x6af   : > { %6463 = vst [vmem:[%s10654_s8 + $0x88] sm:$0xff] %v6431_v22  ;;  %v6370_v19 = vadd.f32 %v10634_v27, %v6232_v58  ;;  %v8002_v39 = vpop.f32.mrb[38].mxu0  ;;  %v2290_v61 = vadd.f32 %v10639_v62, %v10965_v38 }
 0x6b0   : > { %v6404_v41 = vadd.f32 %v6372_v30, %v2283_v63  ;;  %v6373_v10 = vadd.f32 %v8002_v39, %v10634_v27  ;;  %v6235_v56 = vpop.f32.mrb[39].mxu0 }
 0x6b1   : > { %v6402_v35 = vadd.f32 %v6370_v19, %v2281_v7  ;;  %v6371_v34 = vadd.f32 %v10634_v27, %v6235_v56 }
 0x6b2   : > { %v6436_v29 = vmax.f32 %v6404_v41, 0.0  ;;  %v6405_v49 = vadd.f32 %v6373_v10, %v2284_v21 }
 0x6b3   : > { %v6434_v47 = vmax.f32 %v6402_v35, 0.0  ;;  %v6403_v14 = vadd.f32 %v6371_v34, %v2282_v15 }
 0x6b4   : > { %6468 = vst [vmem:[%s10654_s8 + $0xb0] sm:$0xff] %v6436_v29  ;;  %v6437_v13 = vmax.f32 %v6405_v49, 0.0 }
 0x6b5   : > { %6466 = vst [vmem:[%s10654_s8 + $0xa0] sm:$0xff] %v6434_v47  ;;  %v6435_v5 = vmax.f32 %v6403_v14, 0.0  ;;  %v8005_v31 = vpop.f32.mrb[40].mxu0 }
 0x6b6   : > { %6469 = vst [vmem:[%s10654_s8 + $0xb8] sm:$0xff] %v6437_v13  ;;  %v6376_v12 = vadd.f32 %v8005_v31, %v10634_v27  ;;  %v6248_v55 = vpop.f32.mrb[41].mxu0 }
 0x6b7   : > { %6467 = vst [vmem:[%s10654_s8 + $0xa8] sm:$0xff] %v6435_v5  ;;  %v6374_v16 = vadd.f32 %v10634_v27, %v6248_v55  ;;  %v8006_v52 = vpop.f32.mrb[42].mxu0 }
 0x6b8   : > { %v6408_v0 = vadd.f32 %v6376_v12, %v2287_v33  ;;  %v6377_v57 = vadd.f32 %v8006_v52, %v10634_v27  ;;  %v6251_v54 = vpop.f32.mrb[43].mxu0 }
 0x6b9   : > { %v6406_v4 = vadd.f32 %v6374_v16, %v2285_v50  ;;  %v6375_v18 = vadd.f32 %v10634_v27, %v6251_v54 }
 0x6ba   : > { %v6440_v43 = vmax.f32 %v6408_v0, 0.0  ;;  %v6409_v44 = vadd.f32 %v6377_v57, %v2288_v32 }
 0x6bb   : > { %v6438_v51 = vmax.f32 %v6406_v4, 0.0  ;;  %v6407_v36 = vadd.f32 %v6375_v18, %v2286_v28 }
 0x6bc   : > { %6472 = vst [vmem:[%s10654_s8 + $0xd0] sm:$0xff] %v6440_v43  ;;  %v6441_v11 = vmax.f32 %v6409_v44, 0.0 }
 0x6bd   : > { %6470 = vst [vmem:[%s10654_s8 + $0xc0] sm:$0xff] %v6438_v51  ;;  %v6439_v9 = vmax.f32 %v6407_v36, 0.0  ;;  %v8009_v17 = vpop.f32.mrb[44].mxu0 }
 0x6be   : > { %6473 = vst [vmem:[%s10654_s8 + $0xd8] sm:$0xff] %v6441_v11  ;;  %v6380_v60 = vadd.f32 %v8009_v17, %v10634_v27  ;;  %v6264_v23 = vpop.f32.mrb[45].mxu0 }
 0x6bf   : > { %6471 = vst [vmem:[%s10654_s8 + $0xc8] sm:$0xff] %v6439_v9  ;;  %v6378_v45 = vadd.f32 %v10634_v27, %v6264_v23  ;;  %v8010_v1 = vpop.f32.mrb[46].mxu0 }
 0x6c0   : > { %v6412_v2 = vadd.f32 %v6380_v60, %v2291_v8  ;;  %v6381_v42 = vadd.f32 %v8010_v1, %v10634_v27  ;;  %v6267_v22 = vpop.f32.mrb[47].mxu0 }
 0x6c1   : > { %v6410_v63 = vadd.f32 %v6378_v45, %v2289_v46  ;;  %v6379_v30 = vadd.f32 %v10634_v27, %v6267_v22 }
 0x6c2   : > { %v6444_v58 = vmax.f32 %v6412_v2, 0.0  ;;  %v6413_v59 = vadd.f32 %v6381_v42, %v2292_v37 }
 0x6c3   : > { %v6442_v7 = vmax.f32 %v6410_v63, 0.0  ;;  %v6411_v19 = vadd.f32 %v6379_v30, %v2290_v61 }
 0x6c4   : > { %6476 = vst [vmem:[%s10654_s8 + $0xf0] sm:$0xff] %v6444_v58  ;;  %v6445_v39 = vmax.f32 %v6413_v59, 0.0 }
 0x6c5   : > { %6474 = vst [vmem:[%s10654_s8 + $0xe0] sm:$0xff] %v6442_v7  ;;  %v6443_v27 = vmax.f32 %v6411_v19, 0.0 }
 0x6c6   : > { %6477 = vst [vmem:[%s10654_s8 + $0xf8] sm:$0xff] %v6445_v39 }
 0x6c7   : > { %6475 = vst [vmem:[%s10654_s8 + $0xe8] sm:$0xff] %v6443_v27 }
 0x6c8   : > { %8805 = shalt.err (!%p8802_p4)
}
 0x6c9   : > { %s8806_s29 = scalar_lea.hbm %s10774_s18, 4096  ;;  %s8810_s14 = scalar_lea.hbm %s10830_s7, 8192 }
 0x6ca   : > { %p8807_p9 = scmp.ne.s32.totalorder %s10774_s18, %s8806_s29  ;;  %p8811_p8 = scmp.lt.u32.totalorder %s10774_s18, %s10830_s7 }
 0x6cb   : > { %p8812_p13 = scmp.lt.u32.totalorder %s8810_s14, %s8806_s29  ;;  %p8814_p10 = scmp.lt.u32.totalorder %s8806_s29, %s10774_s18 }
 0x6cc   : > { %p8808_p0 = pnand %p8807_p9, %p9068_p5 }
 0x6cd   : > { %p8813_p6 = por %p8812_p13, %p8811_p8 }
 0x6ce   : > { %p8809_p11 = pneg %p8808_p0 }
 0x6cf   : > { %p8815_p3 = por %p8814_p10, %p8813_p6 }
 0x6d1   : > { %p8816_p7 = pnand %p8815_p3, %p8809_p11 }
 0x6d3   : > { %8819 = shalt.err (!%p8816_p7)
}
 0x6d4   : > { %s8878_s16 = smov 128   ;;  %s8879_s12 = smov 8  }
 0x6d5   : > { %8393 = dma.vmem_to_hbm [thread:$0]  (%p9068_p5), %s10776_s11, 4096, %s10774_s18, %s6479_s28, %s8878_s16, %s8878_s16, %s8879_s12  }
 0x6d6 PF: > { %s10966_s17 = sld [smem:[#allocation22_spill]]  ;;  %s6507_s22 = sand.u32 1, %s8854_s24  }
 0x6d7   : > { %p10968_p1 = scmp.ge.s32.totalorder %s8866_s27, 2  ;;  %s6508_s23 = scalar_lea.sflag [#allocation11], %s6507_s22 }
 0x6dc   : > { %p10967_p12 = scmp.ne.s32.totalorder %s10966_s17, 0 }
 0x6de   : > { %p8410_p2 = pnand %p10968_p1, %p10967_p12 }
 0x6e0   : > { %8849 = dma.done.wait (!%p8410_p2), %s6508_s23, 4096  }
 0x6e1   : > { %8851 = vsyncadd (!%p8410_p2), %s6508_s23, 4294963200  ;;  %p22_p4 = scmp.ge.s32.totalorder %s9033_s21, 4   ;;  %s10969_s24 = smov %s8858_s25 }
 0x6e2   : > { %s10970_s25 = smov %s8862_s26  ;;  %s10971_s26 = smov %s9064_s13 }
 0x6e3   : > { %s10972_s27 = smov %s9033_s21  ;;  %24 = sbr.rel (!%p22_p4) target bundleno = 9 (0x9), region = 123 }
 0x6ea   :  { %6513 = vsyncpa [#allocation10], 1 }
 0x6eb   :  { %6515 = vsyncpa [#allocation10 + $0x1], 1 }
 0x6ec   :  { %6516 = vsyncpa [#allocation13], 1 }
 0x6ed   :  { %6517 = vsyncpa [#allocation16], 1 }
 0x6ee   :  { %6518 = vsyncpa [#allocation11], 1 }
 0x6ef   :  { %6520 = vsyncpa [#allocation11 + $0x1], 1 }

</bundles_post_ra>
